<compile_context>
chip_gen: v7x
topology: tpu7x:2x2x1
jax: 0.10.0
libtpu: 0.0.40
codegen_flags: <defaults>
</compile_context>

<pallas_src>
import numpy as np
import jax
import jax.numpy as jnp
from jax.experimental import pallas as pl
from jax.experimental.pallas import tpu as pltpu

BRANCH = 3

# Static geometry (48x64 input -> exactly 960 flat features, as fc4 = Linear(960, 512) requires).
IMG_H, IMG_W = 48, 64
K1, S1 = 8, 4
OH1, OW1 = (IMG_H - K1) // S1 + 1, (IMG_W - K1) // S1 + 1     # 11, 15
OH2, OW2 = (OH1 - 3) // 2 + 1, (OW1 - 3) // 2 + 1             # 5, 7
OH3, OW3 = OH2 - 2, OW2 - 2                                   # 3, 5
NPOS2 = OH2 * OW2                                             # 35 conv2 output positions
NPOS3 = OH3 * OW3                                             # 15 conv3 output positions
C1, C2, C3 = 32, 64, 64
FEAT = NPOS3 * C3                                             # 960


# ---------------------------------------------------------------------------
# Fused kernel: conv1 -> conv2 -> conv3 -> fc4 -> fc5 -> 3 branch heads
# ---------------------------------------------------------------------------
def _fused_forward_kernel(p1_ref, w1_ref, b1_ref, w2_ref, b2_ref, w3_ref, b3_ref,
                          w4_ref, b4_ref, w5_ref, b5_ref,
                          wb1_ref, bb1_ref, wb2_ref, bb2_ref,
                          o_ref,
                          patch2_ref, y2_ref, patch3_ref, y3_ref, flat_ref):
    bf16 = jnp.bfloat16
    f32 = jnp.float32
    bt = flat_ref.shape[0]                       # batch tile handled by this grid step

    def mm(a, b):                                # bf16 MXU operands, f32 accumulation
        return jnp.dot(a, b, preferred_element_type=f32)

    # --- conv1 (+ReLU): 9 matmuls (one per conv2 kernel position), each written
    #     straight into the corresponding 32-lane column block of the conv2
    #     im2col patch matrix.  Rows are (conv2 output position, sample) ordered.
    w1 = w1_ref[...]
    b1 = b1_ref[...]
    for p in range(9):
        y1p = jnp.maximum(mm(p1_ref[0, p], w1) + b1, 0.0)              # (35*bt, 32) f32
        patch2_ref[:, p * C1:(p + 1) * C1] = y1p

    # --- conv2 (+ReLU): ONE deep-K matmul (35*bt, 288) @ (288, 64)
    y2_ref[...] = jnp.maximum(
        mm(patch2_ref[...].astype(bf16), w2_ref[...]) + b2_ref[...], 0.0)

    # --- conv3 im2col: 27 contiguous slab copies.  Because y2 rows are
    #     (position, sample)-ordered, every (kernel position, output row) block
    #     is a contiguous 5*bt-row slab of y2.
    for ki in range(3):
        for kj in range(3):
            p = ki * 3 + kj
            for oh in range(OH3):
                src = ((oh + ki) * OW2 + kj) * bt
                dst = oh * OW3 * bt
                patch3_ref[dst:dst + OW3 * bt, p * C2:(p + 1) * C2] = \
                    y2_ref[src:src + OW3 * bt, :]

    # --- conv3 (+ReLU): ONE deep-K matmul (15*bt, 576) @ (576, 64)
    y3_ref[...] = jnp.maximum(
        mm(patch3_ref[...].astype(bf16), w3_ref[...]) + b3_ref[...], 0.0)

    # --- flatten: 15 static lane-offset (bt, 64) block copies -> (bt, 960)
    for pos in range(NPOS3):
        flat_ref[:, pos * C3:(pos + 1) * C3] = y3_ref[pos * bt:(pos + 1) * bt, :]

    # --- fc4 / fc5 (+ReLU): single deep-K matmuls
    f4 = jnp.maximum(mm(flat_ref[...].astype(bf16), w4_ref[...]) + b4_ref[...], 0.0)   # (bt, 512)
    f5 = jnp.maximum(mm(f4.astype(bf16), w5_ref[...]) + b5_ref[...], 0.0)              # (bt, 512)

    # --- all 3 branch heads fused: (bt,512)@(512,768) + ReLU, then block-diagonal
    #     (768, 3*n_out) second linear; single lane-dense f32 store.
    h = jnp.maximum(mm(f5.astype(bf16), wb1_ref[...]) + bb1_ref[...], 0.0)              # (bt, 768)
    o_ref[0] = mm(h.astype(bf16), wb2_ref[...]) + bb2_ref[...]                          # (bt, 3*n_out)


# ---------------------------------------------------------------------------
# Host-side helpers
# ---------------------------------------------------------------------------
def _conv2_gather_index():
    """Flat index (p-major, conv2-output-position-minor) into conv1's (11*15) grid."""
    idx = np.zeros((9, NPOS2), np.int32)
    for ki in range(3):
        for kj in range(3):
            for oh in range(OH2):
                for ow in range(OW2):
                    idx[ki * 3 + kj, oh * OW2 + ow] = (2 * oh + ki) * OW1 + (2 * ow + kj)
    return idx.reshape(-1)


_CONV2_IDX = _conv2_gather_index()


def _conv1_patches_dup(x_nchw, b_tile):
    """conv1 im2col patches, duplicated & reordered so conv1's output lands directly
    in conv2-im2col order: (B//bt, 9, 35*bt, 8*8*C) bf16, rows = (conv2 pos, sample)."""
    B, C, _, _ = x_nchw.shape
    x = jnp.transpose(x_nchw, (0, 2, 3, 1))                               # NHWC
    cols = []
    for ki in range(K1):
        for kj in range(K1):
            cols.append(x[:, ki:ki + S1 * (OH1 - 1) + 1:S1,
                             kj:kj + S1 * (OW1 - 1) + 1:S1, :])           # (B, 11, 15, C)
    p1 = jnp.stack(cols, axis=3).reshape(B, OH1 * OW1, K1 * K1 * C)       # feature order (ki,kj,c)
    sel = p1[:, _CONV2_IDX, :]                                            # (B, 9*35, F)
    sel = sel.reshape(B, 9, NPOS2, -1)
    nchunks = B // b_tile
    sel = sel.reshape(nchunks, b_tile, 9, NPOS2, -1)
    sel = jnp.transpose(sel, (0, 2, 3, 1, 4))                             # (chunks, 9, 35, bt, F)
    return sel.reshape(nchunks, 9, NPOS2 * b_tile, -1).astype(jnp.bfloat16)


def _kaiming(key, shape, fan_in):
    return jax.random.normal(key, shape, jnp.float32) * np.sqrt(2.0 / fan_in)


def init_params(key, n_channel, n_out):
    ks = jax.random.split(key, 18)
    p = {}
    # Conv weights in im2col layout: rows = (kh, kw, cin), cols = cout.
    p["w_conv1"] = _kaiming(ks[0], (K1 * K1 * n_channel, C1), K1 * K1 * n_channel)
    p["b_conv1"] = jax.random.uniform(ks[1], (C1,), jnp.float32, -0.01, 0.01)
    p["w_conv2"] = _kaiming(ks[2], (9 * C1, C2), 9 * C1)
    p["b_conv2"] = jax.random.uniform(ks[3], (C2,), jnp.float32, -0.01, 0.01)
    p["w_conv3"] = _kaiming(ks[4], (9 * C2, C3), 9 * C2)
    p["b_conv3"] = jax.random.uniform(ks[5], (C3,), jnp.float32, -0.01, 0.01)
    # fc4 input features in (h, w, c) order.
    p["w_fc4"] = _kaiming(ks[6], (FEAT, 512), FEAT)
    p["b_fc4"] = jax.random.uniform(ks[7], (512,), jnp.float32, -0.01, 0.01)
    p["w_fc5"] = _kaiming(ks[8], (512, 512), 512)
    p["b_fc5"] = jax.random.uniform(ks[9], (512,), jnp.float32, -0.01, 0.01)
    # fc6 / fc7: present in the PyTorch module, unused in forward() -> never executed.
    p["w_fc6"] = _kaiming(ks[10], (512, 256), 512)
    p["b_fc6"] = jax.random.uniform(ks[11], (256,), jnp.float32, -0.01, 0.01)
    p["w_fc7"] = _kaiming(ks[12], (256, n_out), 256)
    p["b_fc7"] = jax.random.uniform(ks[13], (n_out,), jnp.float32, -0.01, 0.01)
    # 3 branch heads: Linear(512,256) -> ReLU -> Linear(256, n_out).
    p["w_b1"] = _kaiming(ks[14], (BRANCH, 512, 256), 512)
    p["b_b1"] = jax.random.uniform(ks[15], (BRANCH, 256), jnp.float32, -0.01, 0.01)
    p["w_b2"] = _kaiming(ks[16], (BRANCH, 256, n_out), 256)
    p["b_b2"] = jax.random.uniform(ks[17], (BRANCH, n_out), jnp.float32, -0.01, 0.01)
    return p


def prepare_weights(params):
    """One-time packaging of weights into kernel-ready layouts (bf16 MXU operands, f32 biases)."""
    bf16, f32 = jnp.bfloat16, jnp.float32
    n_out = params["w_b2"].shape[-1]
    h2 = params["w_b2"].shape[1]
    # Branch first linears concatenated along the output axis -> (512, 768).
    wb1 = jnp.concatenate([params["w_b1"][k] for k in range(BRANCH)], axis=1)
    bb1 = params["b_b1"].reshape(1, BRANCH * h2)
    # Branch second linears as a block-diagonal (768, 3*n_out).
    wb2 = jnp.zeros((BRANCH * h2, BRANCH * n_out), f32)
    for k in range(BRANCH):
        wb2 = wb2.at[k * h2:(k + 1) * h2, k * n_out:(k + 1) * n_out].set(params["w_b2"][k])
    bb2 = params["b_b2"].reshape(1, BRANCH * n_out)
    return dict(
        w1=params["w_conv1"].astype(bf16), b1=params["b_conv1"].reshape(1, -1).astype(f32),
        w2=params["w_conv2"].astype(bf16), b2=params["b_conv2"].reshape(1, -1).astype(f32),
        w3=params["w_conv3"].astype(bf16), b3=params["b_conv3"].reshape(1, -1).astype(f32),
        w4=params["w_fc4"].astype(bf16), b4=params["b_fc4"].reshape(1, -1).astype(f32),
        w5=params["w_fc5"].astype(bf16), b5=params["b_fc5"].reshape(1, -1).astype(f32),
        wb1=wb1.astype(bf16), bb1=bb1.astype(f32),
        wb2=wb2.astype(bf16), bb2=bb2.astype(f32),
    )


# ---------------------------------------------------------------------------
# Forward
# ---------------------------------------------------------------------------
def net_forward(prep, x_nchw, c, *, b_tile=None):
    """x_nchw: (B, n_channel, 48, 64) f32; c: (B, 3) direction one-hot.
    Returns (3, B, n_out) = stack([output_str, output_left, output_right])."""
    B = x_nchw.shape[0]
    n_out = prep["bb2"].shape[1] // BRANCH
    k1 = prep["w1"].shape[0]
    if b_tile is None:
        b_tile = B if B <= 8 else next(t for t in (8, 7, 6, 5, 4, 3, 2, 1) if B % t == 0)
    assert B % b_tile == 0, "batch must be divisible by b_tile"
    bt = b_tile
    nchunks = B // bt

    # conv1 im2col, duplicated/reordered for conv2 (one-time XLA gather on the ~36 KB input).
    p1 = _conv1_patches_dup(x_nchw, bt)                       # (nchunks, 9, 35*bt, k1) bf16

    def resident(shape):                                      # weights: constant index_map => DMA'd once
        return pl.BlockSpec(shape, lambda i, _n=len(shape): (0,) * _n)

    in_specs = [
        pl.BlockSpec((1, 9, NPOS2 * bt, k1), lambda i: (i, 0, 0, 0)),
        resident(prep["w1"].shape), resident(prep["b1"].shape),
        resident(prep["w2"].shape), resident(prep["b2"].shape),
        resident(prep["w3"].shape), resident(prep["b3"].shape),
        resident(prep["w4"].shape), resident(prep["b4"].shape),
        resident(prep["w5"].shape), resident(prep["b5"].shape),
        resident(prep["wb1"].shape), resident(prep["bb1"].shape),
        resident(prep["wb2"].shape), resident(prep["bb2"].shape),
    ]
    out_specs = pl.BlockSpec((1, bt, BRANCH * n_out), lambda i: (i, 0, 0))
    scratch_shapes = (
        pltpu.VMEM((NPOS2 * bt, 9 * C1), jnp.float32),        # conv2 im2col patches (35*bt, 288)
        pltpu.VMEM((NPOS2 * bt, C2), jnp.float32),            # y2
        pltpu.VMEM((NPOS3 * bt, 9 * C2), jnp.float32),        # conv3 im2col patches (15*bt, 576)
        pltpu.VMEM((NPOS3 * bt, C3), jnp.float32),            # y3
        pltpu.VMEM((bt, FEAT), jnp.float32),                  # flattened features (bt, 960)
    )

    flops = 2 * B * (9 * NPOS2 * k1 * C1          # conv1 (duplicated sites)
                     + NPOS2 * (9 * C1) * C2      # conv2
                     + NPOS3 * (9 * C2) * C3      # conv3
                     + FEAT * 512                 # fc4
                     + 512 * 512                  # fc5
                     + 512 * BRANCH * 256         # branch first linears
                     + BRANCH * 256 * BRANCH * n_out)
    bytes_accessed = int(np.prod(p1.shape)) * 2 \
        + sum(int(np.prod(v.shape)) * v.dtype.itemsize for v in prep.values()) \
        + nchunks * bt * BRANCH * n_out * 4

    out = pl.pallas_call(
        _fused_forward_kernel,
        out_shape=jax.ShapeDtypeStruct((nchunks, bt, BRANCH * n_out), jnp.float32),
        grid=(nchunks,),
        in_specs=in_specs,
        out_specs=out_specs,
        scratch_shapes=scratch_shapes,
        compiler_params=pltpu.CompilerParams(dimension_semantics=("parallel",)),
        cost_estimate=pl.CostEstimate(flops=int(flops), transcendentals=0,
                                      bytes_accessed=int(bytes_accessed)),
    )(p1,
      prep["w1"], prep["b1"], prep["w2"], prep["b2"], prep["w3"], prep["b3"],
      prep["w4"], prep["b4"], prep["w5"], prep["b5"],
      prep["wb1"], prep["bb1"], prep["wb2"], prep["bb2"])

    # Direction mask + branch split + transpose in the XLA wrapper (kernel stays lane-dense).
    out_flat = out.reshape(B, BRANCH * n_out)
    onehot = jax.nn.one_hot(jnp.argmax(c, axis=-1), BRANCH, dtype=jnp.float32)   # (B, 3)
    mask = jnp.repeat(onehot, n_out, axis=1)                                      # (B, 3*n_out)
    masked = out_flat * mask
    return jnp.transpose(masked.reshape(B, BRANCH, n_out), (1, 0, 2))             # (3, B, n_out)


# ---------------------------------------------------------------------------
# Pure-JAX reference (f32) for a correctness sanity check
# ---------------------------------------------------------------------------
def reference_forward(params, x_nchw, c):
    B, C = x_nchw.shape[0], x_nchw.shape[1]
    n_out = params["w_b2"].shape[-1]
    dn = ("NHWC", "HWIO", "NHWC")
    y = jnp.transpose(x_nchw, (0, 2, 3, 1))
    w1 = params["w_conv1"].reshape(K1, K1, C, C1)
    y = jax.nn.relu(jax.lax.conv_general_dilated(y, w1, (S1, S1), "VALID",
                                                 dimension_numbers=dn) + params["b_conv1"])
    w2 = params["w_conv2"].reshape(3, 3, C1, C2)
    y = jax.nn.relu(jax.lax.conv_general_dilated(y, w2, (2, 2), "VALID",
                                                 dimension_numbers=dn) + params["b_conv2"])
    w3 = params["w_conv3"].reshape(3, 3, C2, C3)
    y = jax.nn.relu(jax.lax.conv_general_dilated(y, w3, (1, 1), "VALID",
                                                 dimension_numbers=dn) + params["b_conv3"])
    feat = y.reshape(B, -1)                       # (h, w, c) order == w_fc4 row order
    f4 = jax.nn.relu(feat @ params["w_fc4"] + params["b_fc4"])
    f5 = jax.nn.relu(f4 @ params["w_fc5"] + params["b_fc5"])
    outs = []
    for k in range(BRANCH):
        h = jax.nn.relu(f5 @ params["w_b1"][k] + params["b_b1"][k])
        outs.append(h @ params["w_b2"][k] + params["b_b2"][k])
    outs = jnp.stack(outs, axis=0)                # (3, B, n_out)
    sel = jnp.argmax(c, axis=-1)
    mask = (jnp.arange(BRANCH)[:, None] == sel[None, :]).astype(jnp.float32)[:, :, None]
    return outs * mask


# ---------------------------------------------------------------------------
if __name__ == "__main__":
    n_channel, n_out = 3, 1
    batch = 2

    key = jax.random.PRNGKey(0)
    k_params, k_x, k_c = jax.random.split(key, 3)

    params = init_params(k_params, n_channel, n_out)
    prep = prepare_weights(params)

    # 48x64 input image => conv stack flattens to exactly 960 features (fc4 input).
    x = jax.random.normal(k_x, (batch, n_channel, IMG_H, IMG_W), jnp.float32)
    c_idx = jax.random.randint(k_c, (batch,), 0, BRANCH)
    c = jax.nn.one_hot(c_idx, BRANCH, dtype=jnp.float32)

    fwd = jax.jit(net_forward)
    out = jax.block_until_ready(fwd(prep, x, c))

    assert out.shape == (BRANCH, batch, n_out), out.shape
    assert bool(jnp.all(jnp.isfinite(out)))

    # Sanity check vs f32 reference (loose tolerance: kernel uses bf16 MXU operands).
    ref = jax.block_until_ready(jax.jit(reference_forward)(params, x, c))
    err = float(jnp.max(jnp.abs(out - ref)))
    scale = float(jnp.max(jnp.abs(ref)))
    assert err <= 0.1 * scale + 0.1, f"kernel/reference mismatch: max_err={err:.4f} scale={scale:.4f}"

    print("KERNEL_OK")
</pallas_src>

<mosaic_0001>
module attributes {stable_mosaic.version = 11 : i64} {
  func.func @_fused_forward_kernel(%arg0: i32, %arg1: memref<1x9x70x192xbf16, #tpu.memory_space<vmem>>, %arg2: memref<192x32xbf16, #tpu.memory_space<vmem>>, %arg3: memref<1x32xf32, #tpu.memory_space<vmem>>, %arg4: memref<288x64xbf16, #tpu.memory_space<vmem>>, %arg5: memref<1x64xf32, #tpu.memory_space<vmem>>, %arg6: memref<576x64xbf16, #tpu.memory_space<vmem>>, %arg7: memref<1x64xf32, #tpu.memory_space<vmem>>, %arg8: memref<960x512xbf16, #tpu.memory_space<vmem>>, %arg9: memref<1x512xf32, #tpu.memory_space<vmem>>, %arg10: memref<512x512xbf16, #tpu.memory_space<vmem>>, %arg11: memref<1x512xf32, #tpu.memory_space<vmem>>, %arg12: memref<512x768xbf16, #tpu.memory_space<vmem>>, %arg13: memref<1x768xf32, #tpu.memory_space<vmem>>, %arg14: memref<768x3xbf16, #tpu.memory_space<vmem>>, %arg15: memref<1x3xf32, #tpu.memory_space<vmem>>, %arg16: memref<1x2x3xf32, #tpu.memory_space<vmem>>, %arg17: memref<70x288xf32, #tpu.memory_space<vmem>>, %arg18: memref<70x64xf32, #tpu.memory_space<vmem>>, %arg19: memref<30x576xf32, #tpu.memory_space<vmem>>, %arg20: memref<30x64xf32, #tpu.memory_space<vmem>>, %arg21: memref<2x960xf32, #tpu.memory_space<vmem>>) attributes {dimension_semantics = [#tpu.dimension_semantics<parallel>], iteration_bounds = array<i64: 1>, scalar_prefetch = 0 : i64, scratch_operands = 5 : i64, tpu.core_type = #tpu.core_type<tc>, window_params = [{transform_indices = @transform_0, window_bounds = array<i64: 1, 9, 70, 192>}, {pipeline_mode = #tpu.pipeline_mode<synchronous>, transform_indices = @transform_1, window_bounds = array<i64: 192, 32>}, {pipeline_mode = #tpu.pipeline_mode<synchronous>, transform_indices = @transform_2, window_bounds = array<i64: 1, 32>}, {pipeline_mode = #tpu.pipeline_mode<synchronous>, transform_indices = @transform_3, window_bounds = array<i64: 288, 64>}, {pipeline_mode = #tpu.pipeline_mode<synchronous>, transform_indices = @transform_4, window_bounds = array<i64: 1, 64>}, {pipeline_mode = #tpu.pipeline_mode<synchronous>, transform_indices = @transform_5, window_bounds = array<i64: 576, 64>}, {pipeline_mode = #tpu.pipeline_mode<synchronous>, transform_indices = @transform_6, window_bounds = array<i64: 1, 64>}, {pipeline_mode = #tpu.pipeline_mode<synchronous>, transform_indices = @transform_7, window_bounds = array<i64: 960, 512>}, {pipeline_mode = #tpu.pipeline_mode<synchronous>, transform_indices = @transform_8, window_bounds = array<i64: 1, 512>}, {pipeline_mode = #tpu.pipeline_mode<synchronous>, transform_indices = @transform_9, window_bounds = array<i64: 512, 512>}, {pipeline_mode = #tpu.pipeline_mode<synchronous>, transform_indices = @transform_10, window_bounds = array<i64: 1, 512>}, {pipeline_mode = #tpu.pipeline_mode<synchronous>, transform_indices = @transform_11, window_bounds = array<i64: 512, 768>}, {pipeline_mode = #tpu.pipeline_mode<synchronous>, transform_indices = @transform_12, window_bounds = array<i64: 1, 768>}, {pipeline_mode = #tpu.pipeline_mode<synchronous>, transform_indices = @transform_13, window_bounds = array<i64: 768, 3>}, {pipeline_mode = #tpu.pipeline_mode<synchronous>, transform_indices = @transform_14, window_bounds = array<i64: 1, 3>}, {transform_indices = @transform_15, window_bounds = array<i64: 1, 2, 3>}]} {
    %c0 = arith.constant 0 : index
    %c0_0 = arith.constant 0 : index
    %0 = vector.load %arg2[%c0, %c0_0] : memref<192x32xbf16, #tpu.memory_space<vmem>>, vector<192x32xbf16>
    %c0_1 = arith.constant 0 : index
    %c0_2 = arith.constant 0 : index
    %1 = vector.load %arg3[%c0_1, %c0_2] : memref<1x32xf32, #tpu.memory_space<vmem>>, vector<1x32xf32>
    %c0_3 = arith.constant 0 : index
    %c0_4 = arith.constant 0 : index
    %c0_5 = arith.constant 0 : index
    %c0_6 = arith.constant 0 : index
    %2 = vector.load %arg1[%c0_3, %c0_4, %c0_5, %c0_6] : memref<1x9x70x192xbf16, #tpu.memory_space<vmem>>, vector<1x1x70x192xbf16>
    %3 = vector.shape_cast %2 : vector<1x1x70x192xbf16> to vector<70x192xbf16>
    %cst = arith.constant dense<0.000000e+00> : vector<70x32xf32>
    %4 = tpu.matmul %3, %0, %cst {dimension_numbers = #tpu.dot_dimension_numbers<[1], [0], [0], [1], [0, 0, 1, 1], [], []>} : vector<70x192xbf16>, vector<192x32xbf16>, vector<70x32xf32> -> vector<70x32xf32>
    %5 = vector.broadcast %1 : vector<1x32xf32> to vector<70x32xf32>
    %6 = arith.addf %4, %5 : vector<70x32xf32>
    %cst_7 = arith.constant 0.000000e+00 : f32
    %7 = vector.broadcast %cst_7 : f32 to vector<70x32xf32>
    %8 = arith.maximumf %6, %7 : vector<70x32xf32>
    %c0_8 = arith.constant 0 : index
    %c0_9 = arith.constant 0 : index
    %9 = vector.load %arg17[%c0_8, %c0_9] : memref<70x288xf32, #tpu.memory_space<vmem>>, vector<70x32xf32>
    tpu.vector_store %arg17[%c0_8, %c0_9], %8 {strides = array<i32>} : memref<70x288xf32, #tpu.memory_space<vmem>>, vector<70x32xf32>,
    %c0_10 = arith.constant 0 : index
    %c1 = arith.constant 1 : index
    %c0_11 = arith.constant 0 : index
    %c0_12 = arith.constant 0 : index
    %10 = vector.load %arg1[%c0_10, %c1, %c0_11, %c0_12] : memref<1x9x70x192xbf16, #tpu.memory_space<vmem>>, vector<1x1x70x192xbf16>
    %11 = vector.shape_cast %10 : vector<1x1x70x192xbf16> to vector<70x192xbf16>
    %cst_13 = arith.constant dense<0.000000e+00> : vector<70x32xf32>
    %12 = tpu.matmul %11, %0, %cst_13 {dimension_numbers = #tpu.dot_dimension_numbers<[1], [0], [0], [1], [0, 0, 1, 1], [], []>} : vector<70x192xbf16>, vector<192x32xbf16>, vector<70x32xf32> -> vector<70x32xf32>
    %13 = vector.broadcast %1 : vector<1x32xf32> to vector<70x32xf32>
    %14 = arith.addf %12, %13 : vector<70x32xf32>
    %cst_14 = arith.constant 0.000000e+00 : f32
    %15 = vector.broadcast %cst_14 : f32 to vector<70x32xf32>
    %16 = arith.maximumf %14, %15 : vector<70x32xf32>
    %c0_15 = arith.constant 0 : index
    %c32 = arith.constant 32 : index
    %17 = vector.load %arg17[%c0_15, %c32] : memref<70x288xf32, #tpu.memory_space<vmem>>, vector<70x32xf32>
    tpu.vector_store %arg17[%c0_15, %c32], %16 {strides = array<i32>} : memref<70x288xf32, #tpu.memory_space<vmem>>, vector<70x32xf32>,
    %c0_16 = arith.constant 0 : index
    %c2 = arith.constant 2 : index
    %c0_17 = arith.constant 0 : index
    %c0_18 = arith.constant 0 : index
    %18 = vector.load %arg1[%c0_16, %c2, %c0_17, %c0_18] : memref<1x9x70x192xbf16, #tpu.memory_space<vmem>>, vector<1x1x70x192xbf16>
    %19 = vector.shape_cast %18 : vector<1x1x70x192xbf16> to vector<70x192xbf16>
    %cst_19 = arith.constant dense<0.000000e+00> : vector<70x32xf32>
    %20 = tpu.matmul %19, %0, %cst_19 {dimension_numbers = #tpu.dot_dimension_numbers<[1], [0], [0], [1], [0, 0, 1, 1], [], []>} : vector<70x192xbf16>, vector<192x32xbf16>, vector<70x32xf32> -> vector<70x32xf32>
    %21 = vector.broadcast %1 : vector<1x32xf32> to vector<70x32xf32>
    %22 = arith.addf %20, %21 : vector<70x32xf32>
    %cst_20 = arith.constant 0.000000e+00 : f32
    %23 = vector.broadcast %cst_20 : f32 to vector<70x32xf32>
    %24 = arith.maximumf %22, %23 : vector<70x32xf32>
    %c0_21 = arith.constant 0 : index
    %c64 = arith.constant 64 : index
    %25 = vector.load %arg17[%c0_21, %c64] : memref<70x288xf32, #tpu.memory_space<vmem>>, vector<70x32xf32>
    tpu.vector_store %arg17[%c0_21, %c64], %24 {strides = array<i32>} : memref<70x288xf32, #tpu.memory_space<vmem>>, vector<70x32xf32>,
    %c0_22 = arith.constant 0 : index
    %c3 = arith.constant 3 : index
    %c0_23 = arith.constant 0 : index
    %c0_24 = arith.constant 0 : index
    %26 = vector.load %arg1[%c0_22, %c3, %c0_23, %c0_24] : memref<1x9x70x192xbf16, #tpu.memory_space<vmem>>, vector<1x1x70x192xbf16>
    %27 = vector.shape_cast %26 : vector<1x1x70x192xbf16> to vector<70x192xbf16>
    %cst_25 = arith.constant dense<0.000000e+00> : vector<70x32xf32>
    %28 = tpu.matmul %27, %0, %cst_25 {dimension_numbers = #tpu.dot_dimension_numbers<[1], [0], [0], [1], [0, 0, 1, 1], [], []>} : vector<70x192xbf16>, vector<192x32xbf16>, vector<70x32xf32> -> vector<70x32xf32>
    %29 = vector.broadcast %1 : vector<1x32xf32> to vector<70x32xf32>
    %30 = arith.addf %28, %29 : vector<70x32xf32>
    %cst_26 = arith.constant 0.000000e+00 : f32
    %31 = vector.broadcast %cst_26 : f32 to vector<70x32xf32>
    %32 = arith.maximumf %30, %31 : vector<70x32xf32>
    %c0_27 = arith.constant 0 : index
    %c96 = arith.constant 96 : index
    %33 = vector.load %arg17[%c0_27, %c96] : memref<70x288xf32, #tpu.memory_space<vmem>>, vector<70x32xf32>
    tpu.vector_store %arg17[%c0_27, %c96], %32 {strides = array<i32>} : memref<70x288xf32, #tpu.memory_space<vmem>>, vector<70x32xf32>,
    %c0_28 = arith.constant 0 : index
    %c4 = arith.constant 4 : index
    %c0_29 = arith.constant 0 : index
    %c0_30 = arith.constant 0 : index
    %34 = vector.load %arg1[%c0_28, %c4, %c0_29, %c0_30] : memref<1x9x70x192xbf16, #tpu.memory_space<vmem>>, vector<1x1x70x192xbf16>
    %35 = vector.shape_cast %34 : vector<1x1x70x192xbf16> to vector<70x192xbf16>
    %cst_31 = arith.constant dense<0.000000e+00> : vector<70x32xf32>
    %36 = tpu.matmul %35, %0, %cst_31 {dimension_numbers = #tpu.dot_dimension_numbers<[1], [0], [0], [1], [0, 0, 1, 1], [], []>} : vector<70x192xbf16>, vector<192x32xbf16>, vector<70x32xf32> -> vector<70x32xf32>
    %37 = vector.broadcast %1 : vector<1x32xf32> to vector<70x32xf32>
    %38 = arith.addf %36, %37 : vector<70x32xf32>
    %cst_32 = arith.constant 0.000000e+00 : f32
    %39 = vector.broadcast %cst_32 : f32 to vector<70x32xf32>
    %40 = arith.maximumf %38, %39 : vector<70x32xf32>
    %c0_33 = arith.constant 0 : index
    %c128 = arith.constant 128 : index
    %41 = vector.load %arg17[%c0_33, %c128] : memref<70x288xf32, #tpu.memory_space<vmem>>, vector<70x32xf32>
    tpu.vector_store %arg17[%c0_33, %c128], %40 {strides = array<i32>} : memref<70x288xf32, #tpu.memory_space<vmem>>, vector<70x32xf32>,
    %c0_34 = arith.constant 0 : index
    %c5 = arith.constant 5 : index
    %c0_35 = arith.constant 0 : index
    %c0_36 = arith.constant 0 : index
    %42 = vector.load %arg1[%c0_34, %c5, %c0_35, %c0_36] : memref<1x9x70x192xbf16, #tpu.memory_space<vmem>>, vector<1x1x70x192xbf16>
    %43 = vector.shape_cast %42 : vector<1x1x70x192xbf16> to vector<70x192xbf16>
    %cst_37 = arith.constant dense<0.000000e+00> : vector<70x32xf32>
    %44 = tpu.matmul %43, %0, %cst_37 {dimension_numbers = #tpu.dot_dimension_numbers<[1], [0], [0], [1], [0, 0, 1, 1], [], []>} : vector<70x192xbf16>, vector<192x32xbf16>, vector<70x32xf32> -> vector<70x32xf32>
    %45 = vector.broadcast %1 : vector<1x32xf32> to vector<70x32xf32>
    %46 = arith.addf %44, %45 : vector<70x32xf32>
    %cst_38 = arith.constant 0.000000e+00 : f32
    %47 = vector.broadcast %cst_38 : f32 to vector<70x32xf32>
    %48 = arith.maximumf %46, %47 : vector<70x32xf32>
    %c0_39 = arith.constant 0 : index
    %c160 = arith.constant 160 : index
    %49 = vector.load %arg17[%c0_39, %c160] : memref<70x288xf32, #tpu.memory_space<vmem>>, vector<70x32xf32>
    tpu.vector_store %arg17[%c0_39, %c160], %48 {strides = array<i32>} : memref<70x288xf32, #tpu.memory_space<vmem>>, vector<70x32xf32>,
    %c0_40 = arith.constant 0 : index
    %c6 = arith.constant 6 : index
    %c0_41 = arith.constant 0 : index
    %c0_42 = arith.constant 0 : index
    %50 = vector.load %arg1[%c0_40, %c6, %c0_41, %c0_42] : memref<1x9x70x192xbf16, #tpu.memory_space<vmem>>, vector<1x1x70x192xbf16>
    %51 = vector.shape_cast %50 : vector<1x1x70x192xbf16> to vector<70x192xbf16>
    %cst_43 = arith.constant dense<0.000000e+00> : vector<70x32xf32>
    %52 = tpu.matmul %51, %0, %cst_43 {dimension_numbers = #tpu.dot_dimension_numbers<[1], [0], [0], [1], [0, 0, 1, 1], [], []>} : vector<70x192xbf16>, vector<192x32xbf16>, vector<70x32xf32> -> vector<70x32xf32>
    %53 = vector.broadcast %1 : vector<1x32xf32> to vector<70x32xf32>
    %54 = arith.addf %52, %53 : vector<70x32xf32>
    %cst_44 = arith.constant 0.000000e+00 : f32
    %55 = vector.broadcast %cst_44 : f32 to vector<70x32xf32>
    %56 = arith.maximumf %54, %55 : vector<70x32xf32>
    %c0_45 = arith.constant 0 : index
    %c192 = arith.constant 192 : index
    %57 = vector.load %arg17[%c0_45, %c192] : memref<70x288xf32, #tpu.memory_space<vmem>>, vector<70x32xf32>
    tpu.vector_store %arg17[%c0_45, %c192], %56 {strides = array<i32>} : memref<70x288xf32, #tpu.memory_space<vmem>>, vector<70x32xf32>,
    %c0_46 = arith.constant 0 : index
    %c7 = arith.constant 7 : index
    %c0_47 = arith.constant 0 : index
    %c0_48 = arith.constant 0 : index
    %58 = vector.load %arg1[%c0_46, %c7, %c0_47, %c0_48] : memref<1x9x70x192xbf16, #tpu.memory_space<vmem>>, vector<1x1x70x192xbf16>
    %59 = vector.shape_cast %58 : vector<1x1x70x192xbf16> to vector<70x192xbf16>
    %cst_49 = arith.constant dense<0.000000e+00> : vector<70x32xf32>
    %60 = tpu.matmul %59, %0, %cst_49 {dimension_numbers = #tpu.dot_dimension_numbers<[1], [0], [0], [1], [0, 0, 1, 1], [], []>} : vector<70x192xbf16>, vector<192x32xbf16>, vector<70x32xf32> -> vector<70x32xf32>
    %61 = vector.broadcast %1 : vector<1x32xf32> to vector<70x32xf32>
    %62 = arith.addf %60, %61 : vector<70x32xf32>
    %cst_50 = arith.constant 0.000000e+00 : f32
    %63 = vector.broadcast %cst_50 : f32 to vector<70x32xf32>
    %64 = arith.maximumf %62, %63 : vector<70x32xf32>
    %c0_51 = arith.constant 0 : index
    %c224 = arith.constant 224 : index
    %65 = vector.load %arg17[%c0_51, %c224] : memref<70x288xf32, #tpu.memory_space<vmem>>, vector<70x32xf32>
    tpu.vector_store %arg17[%c0_51, %c224], %64 {strides = array<i32>} : memref<70x288xf32, #tpu.memory_space<vmem>>, vector<70x32xf32>,
    %c0_52 = arith.constant 0 : index
    %c8 = arith.constant 8 : index
    %c0_53 = arith.constant 0 : index
    %c0_54 = arith.constant 0 : index
    %66 = vector.load %arg1[%c0_52, %c8, %c0_53, %c0_54] : memref<1x9x70x192xbf16, #tpu.memory_space<vmem>>, vector<1x1x70x192xbf16>
    %67 = vector.shape_cast %66 : vector<1x1x70x192xbf16> to vector<70x192xbf16>
    %cst_55 = arith.constant dense<0.000000e+00> : vector<70x32xf32>
    %68 = tpu.matmul %67, %0, %cst_55 {dimension_numbers = #tpu.dot_dimension_numbers<[1], [0], [0], [1], [0, 0, 1, 1], [], []>} : vector<70x192xbf16>, vector<192x32xbf16>, vector<70x32xf32> -> vector<70x32xf32>
    %69 = vector.broadcast %1 : vector<1x32xf32> to vector<70x32xf32>
    %70 = arith.addf %68, %69 : vector<70x32xf32>
    %cst_56 = arith.constant 0.000000e+00 : f32
    %71 = vector.broadcast %cst_56 : f32 to vector<70x32xf32>
    %72 = arith.maximumf %70, %71 : vector<70x32xf32>
    %c0_57 = arith.constant 0 : index
    %c256 = arith.constant 256 : index
    %73 = vector.load %arg17[%c0_57, %c256] : memref<70x288xf32, #tpu.memory_space<vmem>>, vector<70x32xf32>
    tpu.vector_store %arg17[%c0_57, %c256], %72 {strides = array<i32>} : memref<70x288xf32, #tpu.memory_space<vmem>>, vector<70x32xf32>,
    %c0_58 = arith.constant 0 : index
    %c0_59 = arith.constant 0 : index
    %74 = vector.load %arg17[%c0_58, %c0_59] : memref<70x288xf32, #tpu.memory_space<vmem>>, vector<70x288xf32>
    %75 = arith.truncf %74 : vector<70x288xf32> to vector<70x288xbf16>
    %c0_60 = arith.constant 0 : index
    %c0_61 = arith.constant 0 : index
    %76 = vector.load %arg4[%c0_60, %c0_61] : memref<288x64xbf16, #tpu.memory_space<vmem>>, vector<288x64xbf16>
    %cst_62 = arith.constant dense<0.000000e+00> : vector<70x64xf32>
    %77 = tpu.matmul %75, %76, %cst_62 {dimension_numbers = #tpu.dot_dimension_numbers<[1], [0], [0], [1], [0, 0, 1, 1], [], []>} : vector<70x288xbf16>, vector<288x64xbf16>, vector<70x64xf32> -> vector<70x64xf32>
    %c0_63 = arith.constant 0 : index
    %c0_64 = arith.constant 0 : index
    %78 = vector.load %arg5[%c0_63, %c0_64] : memref<1x64xf32, #tpu.memory_space<vmem>>, vector<1x64xf32>
    %79 = vector.broadcast %78 : vector<1x64xf32> to vector<70x64xf32>
    %80 = arith.addf %77, %79 : vector<70x64xf32>
    %cst_65 = arith.constant 0.000000e+00 : f32
    %81 = vector.broadcast %cst_65 : f32 to vector<70x64xf32>
    %82 = arith.maximumf %80, %81 : vector<70x64xf32>
    %c0_66 = arith.constant 0 : index
    %c0_67 = arith.constant 0 : index
    %83 = vector.load %arg18[%c0_66, %c0_67] : memref<70x64xf32, #tpu.memory_space<vmem>>, vector<70x64xf32>
    tpu.vector_store %arg18[%c0_66, %c0_67], %82 {strides = array<i32>} : memref<70x64xf32, #tpu.memory_space<vmem>>, vector<70x64xf32>,
    %c0_68 = arith.constant 0 : index
    %c0_69 = arith.constant 0 : index
    %84 = vector.load %arg18[%c0_68, %c0_69] : memref<70x64xf32, #tpu.memory_space<vmem>>, vector<10x64xf32>
    %c0_70 = arith.constant 0 : index
    %c0_71 = arith.constant 0 : index
    %85 = vector.load %arg19[%c0_70, %c0_71] : memref<30x576xf32, #tpu.memory_space<vmem>>, vector<10x64xf32>
    tpu.vector_store %arg19[%c0_70, %c0_71], %84 {strides = array<i32>} : memref<30x576xf32, #tpu.memory_space<vmem>>, vector<10x64xf32>,
    %c14 = arith.constant 14 : index
    %c0_72 = arith.constant 0 : index
    %86 = vector.load %arg18[%c14, %c0_72] : memref<70x64xf32, #tpu.memory_space<vmem>>, vector<10x64xf32>
    %c10 = arith.constant 10 : index
    %c0_73 = arith.constant 0 : index
    %87 = vector.load %arg19[%c10, %c0_73] : memref<30x576xf32, #tpu.memory_space<vmem>>, vector<10x64xf32>
    tpu.vector_store %arg19[%c10, %c0_73], %86 {strides = array<i32>} : memref<30x576xf32, #tpu.memory_space<vmem>>, vector<10x64xf32>,
    %c28 = arith.constant 28 : index
    %c0_74 = arith.constant 0 : index
    %88 = vector.load %arg18[%c28, %c0_74] : memref<70x64xf32, #tpu.memory_space<vmem>>, vector<10x64xf32>
    %c20 = arith.constant 20 : index
    %c0_75 = arith.constant 0 : index
    %89 = vector.load %arg19[%c20, %c0_75] : memref<30x576xf32, #tpu.memory_space<vmem>>, vector<10x64xf32>
    tpu.vector_store %arg19[%c20, %c0_75], %88 {strides = array<i32>} : memref<30x576xf32, #tpu.memory_space<vmem>>, vector<10x64xf32>,
    %c2_76 = arith.constant 2 : index
    %c0_77 = arith.constant 0 : index
    %90 = vector.load %arg18[%c2_76, %c0_77] : memref<70x64xf32, #tpu.memory_space<vmem>>, vector<10x64xf32>
    %c0_78 = arith.constant 0 : index
    %c64_79 = arith.constant 64 : index
    %91 = vector.load %arg19[%c0_78, %c64_79] : memref<30x576xf32, #tpu.memory_space<vmem>>, vector<10x64xf32>
    tpu.vector_store %arg19[%c0_78, %c64_79], %90 {strides = array<i32>} : memref<30x576xf32, #tpu.memory_space<vmem>>, vector<10x64xf32>,
    %c16 = arith.constant 16 : index
    %c0_80 = arith.constant 0 : index
    %92 = vector.load %arg18[%c16, %c0_80] : memref<70x64xf32, #tpu.memory_space<vmem>>, vector<10x64xf32>
    %c10_81 = arith.constant 10 : index
    %c64_82 = arith.constant 64 : index
    %93 = vector.load %arg19[%c10_81, %c64_82] : memref<30x576xf32, #tpu.memory_space<vmem>>, vector<10x64xf32>
    tpu.vector_store %arg19[%c10_81, %c64_82], %92 {strides = array<i32>} : memref<30x576xf32, #tpu.memory_space<vmem>>, vector<10x64xf32>,
    %c30 = arith.constant 30 : index
    %c0_83 = arith.constant 0 : index
    %94 = vector.load %arg18[%c30, %c0_83] : memref<70x64xf32, #tpu.memory_space<vmem>>, vector<10x64xf32>
    %c20_84 = arith.constant 20 : index
    %c64_85 = arith.constant 64 : index
    %95 = vector.load %arg19[%c20_84, %c64_85] : memref<30x576xf32, #tpu.memory_space<vmem>>, vector<10x64xf32>
    tpu.vector_store %arg19[%c20_84, %c64_85], %94 {strides = array<i32>} : memref<30x576xf32, #tpu.memory_space<vmem>>, vector<10x64xf32>,
    %c4_86 = arith.constant 4 : index
    %c0_87 = arith.constant 0 : index
    %96 = vector.load %arg18[%c4_86, %c0_87] : memref<70x64xf32, #tpu.memory_space<vmem>>, vector<10x64xf32>
    %c0_88 = arith.constant 0 : index
    %c128_89 = arith.constant 128 : index
    %97 = vector.load %arg19[%c0_88, %c128_89] : memref<30x576xf32, #tpu.memory_space<vmem>>, vector<10x64xf32>
    tpu.vector_store %arg19[%c0_88, %c128_89], %96 {strides = array<i32>} : memref<30x576xf32, #tpu.memory_space<vmem>>, vector<10x64xf32>,
    %c18 = arith.constant 18 : index
    %c0_90 = arith.constant 0 : index
    %98 = vector.load %arg18[%c18, %c0_90] : memref<70x64xf32, #tpu.memory_space<vmem>>, vector<10x64xf32>
    %c10_91 = arith.constant 10 : index
    %c128_92 = arith.constant 128 : index
    %99 = vector.load %arg19[%c10_91, %c128_92] : memref<30x576xf32, #tpu.memory_space<vmem>>, vector<10x64xf32>
    tpu.vector_store %arg19[%c10_91, %c128_92], %98 {strides = array<i32>} : memref<30x576xf32, #tpu.memory_space<vmem>>, vector<10x64xf32>,
    %c32_93 = arith.constant 32 : index
    %c0_94 = arith.constant 0 : index
    %100 = vector.load %arg18[%c32_93, %c0_94] : memref<70x64xf32, #tpu.memory_space<vmem>>, vector<10x64xf32>
    %c20_95 = arith.constant 20 : index
    %c128_96 = arith.constant 128 : index
    %101 = vector.load %arg19[%c20_95, %c128_96] : memref<30x576xf32, #tpu.memory_space<vmem>>, vector<10x64xf32>
    tpu.vector_store %arg19[%c20_95, %c128_96], %100 {strides = array<i32>} : memref<30x576xf32, #tpu.memory_space<vmem>>, vector<10x64xf32>,
    %c14_97 = arith.constant 14 : index
    %c0_98 = arith.constant 0 : index
    %102 = vector.load %arg18[%c14_97, %c0_98] : memref<70x64xf32, #tpu.memory_space<vmem>>, vector<10x64xf32>
    %c0_99 = arith.constant 0 : index
    %c192_100 = arith.constant 192 : index
    %103 = vector.load %arg19[%c0_99, %c192_100] : memref<30x576xf32, #tpu.memory_space<vmem>>, vector<10x64xf32>
    tpu.vector_store %arg19[%c0_99, %c192_100], %102 {strides = array<i32>} : memref<30x576xf32, #tpu.memory_space<vmem>>, vector<10x64xf32>,
    %c28_101 = arith.constant 28 : index
    %c0_102 = arith.constant 0 : index
    %104 = vector.load %arg18[%c28_101, %c0_102] : memref<70x64xf32, #tpu.memory_space<vmem>>, vector<10x64xf32>
    %c10_103 = arith.constant 10 : index
    %c192_104 = arith.constant 192 : index
    %105 = vector.load %arg19[%c10_103, %c192_104] : memref<30x576xf32, #tpu.memory_space<vmem>>, vector<10x64xf32>
    tpu.vector_store %arg19[%c10_103, %c192_104], %104 {strides = array<i32>} : memref<30x576xf32, #tpu.memory_space<vmem>>, vector<10x64xf32>,
    %c42 = arith.constant 42 : index
    %c0_105 = arith.constant 0 : index
    %106 = vector.load %arg18[%c42, %c0_105] : memref<70x64xf32, #tpu.memory_space<vmem>>, vector<10x64xf32>
    %c20_106 = arith.constant 20 : index
    %c192_107 = arith.constant 192 : index
    %107 = vector.load %arg19[%c20_106, %c192_107] : memref<30x576xf32, #tpu.memory_space<vmem>>, vector<10x64xf32>
    tpu.vector_store %arg19[%c20_106, %c192_107], %106 {strides = array<i32>} : memref<30x576xf32, #tpu.memory_space<vmem>>, vector<10x64xf32>,
    %c16_108 = arith.constant 16 : index
    %c0_109 = arith.constant 0 : index
    %108 = vector.load %arg18[%c16_108, %c0_109] : memref<70x64xf32, #tpu.memory_space<vmem>>, vector<10x64xf32>
    %c0_110 = arith.constant 0 : index
    %c256_111 = arith.constant 256 : index
    %109 = vector.load %arg19[%c0_110, %c256_111] : memref<30x576xf32, #tpu.memory_space<vmem>>, vector<10x64xf32>
    tpu.vector_store %arg19[%c0_110, %c256_111], %108 {strides = array<i32>} : memref<30x576xf32, #tpu.memory_space<vmem>>, vector<10x64xf32>,
    %c30_112 = arith.constant 30 : index
    %c0_113 = arith.constant 0 : index
    %110 = vector.load %arg18[%c30_112, %c0_113] : memref<70x64xf32, #tpu.memory_space<vmem>>, vector<10x64xf32>
    %c10_114 = arith.constant 10 : index
    %c256_115 = arith.constant 256 : index
    %111 = vector.load %arg19[%c10_114, %c256_115] : memref<30x576xf32, #tpu.memory_space<vmem>>, vector<10x64xf32>
    tpu.vector_store %arg19[%c10_114, %c256_115], %110 {strides = array<i32>} : memref<30x576xf32, #tpu.memory_space<vmem>>, vector<10x64xf32>,
    %c44 = arith.constant 44 : index
    %c0_116 = arith.constant 0 : index
    %112 = vector.load %arg18[%c44, %c0_116] : memref<70x64xf32, #tpu.memory_space<vmem>>, vector<10x64xf32>
    %c20_117 = arith.constant 20 : index
    %c256_118 = arith.constant 256 : index
    %113 = vector.load %arg19[%c20_117, %c256_118] : memref<30x576xf32, #tpu.memory_space<vmem>>, vector<10x64xf32>
    tpu.vector_store %arg19[%c20_117, %c256_118], %112 {strides = array<i32>} : memref<30x576xf32, #tpu.memory_space<vmem>>, vector<10x64xf32>,
    %c18_119 = arith.constant 18 : index
    %c0_120 = arith.constant 0 : index
    %114 = vector.load %arg18[%c18_119, %c0_120] : memref<70x64xf32, #tpu.memory_space<vmem>>, vector<10x64xf32>
    %c0_121 = arith.constant 0 : index
    %c320 = arith.constant 320 : index
    %115 = vector.load %arg19[%c0_121, %c320] : memref<30x576xf32, #tpu.memory_space<vmem>>, vector<10x64xf32>
    tpu.vector_store %arg19[%c0_121, %c320], %114 {strides = array<i32>} : memref<30x576xf32, #tpu.memory_space<vmem>>, vector<10x64xf32>,
    %c32_122 = arith.constant 32 : index
    %c0_123 = arith.constant 0 : index
    %116 = vector.load %arg18[%c32_122, %c0_123] : memref<70x64xf32, #tpu.memory_space<vmem>>, vector<10x64xf32>
    %c10_124 = arith.constant 10 : index
    %c320_125 = arith.constant 320 : index
    %117 = vector.load %arg19[%c10_124, %c320_125] : memref<30x576xf32, #tpu.memory_space<vmem>>, vector<10x64xf32>
    tpu.vector_store %arg19[%c10_124, %c320_125], %116 {strides = array<i32>} : memref<30x576xf32, #tpu.memory_space<vmem>>, vector<10x64xf32>,
    %c46 = arith.constant 46 : index
    %c0_126 = arith.constant 0 : index
    %118 = vector.load %arg18[%c46, %c0_126] : memref<70x64xf32, #tpu.memory_space<vmem>>, vector<10x64xf32>
    %c20_127 = arith.constant 20 : index
    %c320_128 = arith.constant 320 : index
    %119 = vector.load %arg19[%c20_127, %c320_128] : memref<30x576xf32, #tpu.memory_space<vmem>>, vector<10x64xf32>
    tpu.vector_store %arg19[%c20_127, %c320_128], %118 {strides = array<i32>} : memref<30x576xf32, #tpu.memory_space<vmem>>, vector<10x64xf32>,
    %c28_129 = arith.constant 28 : index
    %c0_130 = arith.constant 0 : index
    %120 = vector.load %arg18[%c28_129, %c0_130] : memref<70x64xf32, #tpu.memory_space<vmem>>, vector<10x64xf32>
    %c0_131 = arith.constant 0 : index
    %c384 = arith.constant 384 : index
    %121 = vector.load %arg19[%c0_131, %c384] : memref<30x576xf32, #tpu.memory_space<vmem>>, vector<10x64xf32>
    tpu.vector_store %arg19[%c0_131, %c384], %120 {strides = array<i32>} : memref<30x576xf32, #tpu.memory_space<vmem>>, vector<10x64xf32>,
    %c42_132 = arith.constant 42 : index
    %c0_133 = arith.constant 0 : index
    %122 = vector.load %arg18[%c42_132, %c0_133] : memref<70x64xf32, #tpu.memory_space<vmem>>, vector<10x64xf32>
    %c10_134 = arith.constant 10 : index
    %c384_135 = arith.constant 384 : index
    %123 = vector.load %arg19[%c10_134, %c384_135] : memref<30x576xf32, #tpu.memory_space<vmem>>, vector<10x64xf32>
    tpu.vector_store %arg19[%c10_134, %c384_135], %122 {strides = array<i32>} : memref<30x576xf32, #tpu.memory_space<vmem>>, vector<10x64xf32>,
    %c56 = arith.constant 56 : index
    %c0_136 = arith.constant 0 : index
    %124 = vector.load %arg18[%c56, %c0_136] : memref<70x64xf32, #tpu.memory_space<vmem>>, vector<10x64xf32>
    %c20_137 = arith.constant 20 : index
    %c384_138 = arith.constant 384 : index
    %125 = vector.load %arg19[%c20_137, %c384_138] : memref<30x576xf32, #tpu.memory_space<vmem>>, vector<10x64xf32>
    tpu.vector_store %arg19[%c20_137, %c384_138], %124 {strides = array<i32>} : memref<30x576xf32, #tpu.memory_space<vmem>>, vector<10x64xf32>,
    %c30_139 = arith.constant 30 : index
    %c0_140 = arith.constant 0 : index
    %126 = vector.load %arg18[%c30_139, %c0_140] : memref<70x64xf32, #tpu.memory_space<vmem>>, vector<10x64xf32>
    %c0_141 = arith.constant 0 : index
    %c448 = arith.constant 448 : index
    %127 = vector.load %arg19[%c0_141, %c448] : memref<30x576xf32, #tpu.memory_space<vmem>>, vector<10x64xf32>
    tpu.vector_store %arg19[%c0_141, %c448], %126 {strides = array<i32>} : memref<30x576xf32, #tpu.memory_space<vmem>>, vector<10x64xf32>,
    %c44_142 = arith.constant 44 : index
    %c0_143 = arith.constant 0 : index
    %128 = vector.load %arg18[%c44_142, %c0_143] : memref<70x64xf32, #tpu.memory_space<vmem>>, vector<10x64xf32>
    %c10_144 = arith.constant 10 : index
    %c448_145 = arith.constant 448 : index
    %129 = vector.load %arg19[%c10_144, %c448_145] : memref<30x576xf32, #tpu.memory_space<vmem>>, vector<10x64xf32>
    tpu.vector_store %arg19[%c10_144, %c448_145], %128 {strides = array<i32>} : memref<30x576xf32, #tpu.memory_space<vmem>>, vector<10x64xf32>,
    %c58 = arith.constant 58 : index
    %c0_146 = arith.constant 0 : index
    %130 = vector.load %arg18[%c58, %c0_146] : memref<70x64xf32, #tpu.memory_space<vmem>>, vector<10x64xf32>
    %c20_147 = arith.constant 20 : index
    %c448_148 = arith.constant 448 : index
    %131 = vector.load %arg19[%c20_147, %c448_148] : memref<30x576xf32, #tpu.memory_space<vmem>>, vector<10x64xf32>
    tpu.vector_store %arg19[%c20_147, %c448_148], %130 {strides = array<i32>} : memref<30x576xf32, #tpu.memory_space<vmem>>, vector<10x64xf32>,
    %c32_149 = arith.constant 32 : index
    %c0_150 = arith.constant 0 : index
    %132 = vector.load %arg18[%c32_149, %c0_150] : memref<70x64xf32, #tpu.memory_space<vmem>>, vector<10x64xf32>
    %c0_151 = arith.constant 0 : index
    %c512 = arith.constant 512 : index
    %133 = vector.load %arg19[%c0_151, %c512] : memref<30x576xf32, #tpu.memory_space<vmem>>, vector<10x64xf32>
    tpu.vector_store %arg19[%c0_151, %c512], %132 {strides = array<i32>} : memref<30x576xf32, #tpu.memory_space<vmem>>, vector<10x64xf32>,
    %c46_152 = arith.constant 46 : index
    %c0_153 = arith.constant 0 : index
    %134 = vector.load %arg18[%c46_152, %c0_153] : memref<70x64xf32, #tpu.memory_space<vmem>>, vector<10x64xf32>
    %c10_154 = arith.constant 10 : index
    %c512_155 = arith.constant 512 : index
    %135 = vector.load %arg19[%c10_154, %c512_155] : memref<30x576xf32, #tpu.memory_space<vmem>>, vector<10x64xf32>
    tpu.vector_store %arg19[%c10_154, %c512_155], %134 {strides = array<i32>} : memref<30x576xf32, #tpu.memory_space<vmem>>, vector<10x64xf32>,
    %c60 = arith.constant 60 : index
    %c0_156 = arith.constant 0 : index
    %136 = vector.load %arg18[%c60, %c0_156] : memref<70x64xf32, #tpu.memory_space<vmem>>, vector<10x64xf32>
    %c20_157 = arith.constant 20 : index
    %c512_158 = arith.constant 512 : index
    %137 = vector.load %arg19[%c20_157, %c512_158] : memref<30x576xf32, #tpu.memory_space<vmem>>, vector<10x64xf32>
    tpu.vector_store %arg19[%c20_157, %c512_158], %136 {strides = array<i32>} : memref<30x576xf32, #tpu.memory_space<vmem>>, vector<10x64xf32>,
    %c0_159 = arith.constant 0 : index
    %c0_160 = arith.constant 0 : index
    %138 = vector.load %arg19[%c0_159, %c0_160] : memref<30x576xf32, #tpu.memory_space<vmem>>, vector<30x576xf32>
    %139 = arith.truncf %138 : vector<30x576xf32> to vector<30x576xbf16>
    %c0_161 = arith.constant 0 : index
    %c0_162 = arith.constant 0 : index
    %140 = vector.load %arg6[%c0_161, %c0_162] : memref<576x64xbf16, #tpu.memory_space<vmem>>, vector<576x64xbf16>
    %cst_163 = arith.constant dense<0.000000e+00> : vector<30x64xf32>
    %141 = tpu.matmul %139, %140, %cst_163 {dimension_numbers = #tpu.dot_dimension_numbers<[1], [0], [0], [1], [0, 0, 1, 1], [], []>} : vector<30x576xbf16>, vector<576x64xbf16>, vector<30x64xf32> -> vector<30x64xf32>
    %c0_164 = arith.constant 0 : index
    %c0_165 = arith.constant 0 : index
    %142 = vector.load %arg7[%c0_164, %c0_165] : memref<1x64xf32, #tpu.memory_space<vmem>>, vector<1x64xf32>
    %143 = vector.broadcast %142 : vector<1x64xf32> to vector<30x64xf32>
    %144 = arith.addf %141, %143 : vector<30x64xf32>
    %cst_166 = arith.constant 0.000000e+00 : f32
    %145 = vector.broadcast %cst_166 : f32 to vector<30x64xf32>
    %146 = arith.maximumf %144, %145 : vector<30x64xf32>
    %c0_167 = arith.constant 0 : index
    %c0_168 = arith.constant 0 : index
    %147 = vector.load %arg20[%c0_167, %c0_168] : memref<30x64xf32, #tpu.memory_space<vmem>>, vector<30x64xf32>
    tpu.vector_store %arg20[%c0_167, %c0_168], %146 {strides = array<i32>} : memref<30x64xf32, #tpu.memory_space<vmem>>, vector<30x64xf32>,
    %c0_169 = arith.constant 0 : index
    %c0_170 = arith.constant 0 : index
    %148 = vector.load %arg20[%c0_169, %c0_170] : memref<30x64xf32, #tpu.memory_space<vmem>>, vector<2x64xf32>
    %c0_171 = arith.constant 0 : index
    %c0_172 = arith.constant 0 : index
    %149 = vector.load %arg21[%c0_171, %c0_172] : memref<2x960xf32, #tpu.memory_space<vmem>>, vector<2x64xf32>
    tpu.vector_store %arg21[%c0_171, %c0_172], %148 {strides = array<i32>} : memref<2x960xf32, #tpu.memory_space<vmem>>, vector<2x64xf32>,
    %c2_173 = arith.constant 2 : index
    %c0_174 = arith.constant 0 : index
    %150 = vector.load %arg20[%c2_173, %c0_174] : memref<30x64xf32, #tpu.memory_space<vmem>>, vector<2x64xf32>
    %c0_175 = arith.constant 0 : index
    %c64_176 = arith.constant 64 : index
    %151 = vector.load %arg21[%c0_175, %c64_176] : memref<2x960xf32, #tpu.memory_space<vmem>>, vector<2x64xf32>
    tpu.vector_store %arg21[%c0_175, %c64_176], %150 {strides = array<i32>} : memref<2x960xf32, #tpu.memory_space<vmem>>, vector<2x64xf32>,
    %c4_177 = arith.constant 4 : index
    %c0_178 = arith.constant 0 : index
    %152 = vector.load %arg20[%c4_177, %c0_178] : memref<30x64xf32, #tpu.memory_space<vmem>>, vector<2x64xf32>
    %c0_179 = arith.constant 0 : index
    %c128_180 = arith.constant 128 : index
    %153 = vector.load %arg21[%c0_179, %c128_180] : memref<2x960xf32, #tpu.memory_space<vmem>>, vector<2x64xf32>
    tpu.vector_store %arg21[%c0_179, %c128_180], %152 {strides = array<i32>} : memref<2x960xf32, #tpu.memory_space<vmem>>, vector<2x64xf32>,
    %c6_181 = arith.constant 6 : index
    %c0_182 = arith.constant 0 : index
    %154 = vector.load %arg20[%c6_181, %c0_182] : memref<30x64xf32, #tpu.memory_space<vmem>>, vector<2x64xf32>
    %c0_183 = arith.constant 0 : index
    %c192_184 = arith.constant 192 : index
    %155 = vector.load %arg21[%c0_183, %c192_184] : memref<2x960xf32, #tpu.memory_space<vmem>>, vector<2x64xf32>
    tpu.vector_store %arg21[%c0_183, %c192_184], %154 {strides = array<i32>} : memref<2x960xf32, #tpu.memory_space<vmem>>, vector<2x64xf32>,
    %c8_185 = arith.constant 8 : index
    %c0_186 = arith.constant 0 : index
    %156 = vector.load %arg20[%c8_185, %c0_186] : memref<30x64xf32, #tpu.memory_space<vmem>>, vector<2x64xf32>
    %c0_187 = arith.constant 0 : index
    %c256_188 = arith.constant 256 : index
    %157 = vector.load %arg21[%c0_187, %c256_188] : memref<2x960xf32, #tpu.memory_space<vmem>>, vector<2x64xf32>
    tpu.vector_store %arg21[%c0_187, %c256_188], %156 {strides = array<i32>} : memref<2x960xf32, #tpu.memory_space<vmem>>, vector<2x64xf32>,
    %c10_189 = arith.constant 10 : index
    %c0_190 = arith.constant 0 : index
    %158 = vector.load %arg20[%c10_189, %c0_190] : memref<30x64xf32, #tpu.memory_space<vmem>>, vector<2x64xf32>
    %c0_191 = arith.constant 0 : index
    %c320_192 = arith.constant 320 : index
    %159 = vector.load %arg21[%c0_191, %c320_192] : memref<2x960xf32, #tpu.memory_space<vmem>>, vector<2x64xf32>
    tpu.vector_store %arg21[%c0_191, %c320_192], %158 {strides = array<i32>} : memref<2x960xf32, #tpu.memory_space<vmem>>, vector<2x64xf32>,
    %c12 = arith.constant 12 : index
    %c0_193 = arith.constant 0 : index
    %160 = vector.load %arg20[%c12, %c0_193] : memref<30x64xf32, #tpu.memory_space<vmem>>, vector<2x64xf32>
    %c0_194 = arith.constant 0 : index
    %c384_195 = arith.constant 384 : index
    %161 = vector.load %arg21[%c0_194, %c384_195] : memref<2x960xf32, #tpu.memory_space<vmem>>, vector<2x64xf32>
    tpu.vector_store %arg21[%c0_194, %c384_195], %160 {strides = array<i32>} : memref<2x960xf32, #tpu.memory_space<vmem>>, vector<2x64xf32>,
    %c14_196 = arith.constant 14 : index
    %c0_197 = arith.constant 0 : index
    %162 = vector.load %arg20[%c14_196, %c0_197] : memref<30x64xf32, #tpu.memory_space<vmem>>, vector<2x64xf32>
    %c0_198 = arith.constant 0 : index
    %c448_199 = arith.constant 448 : index
    %163 = vector.load %arg21[%c0_198, %c448_199] : memref<2x960xf32, #tpu.memory_space<vmem>>, vector<2x64xf32>
    tpu.vector_store %arg21[%c0_198, %c448_199], %162 {strides = array<i32>} : memref<2x960xf32, #tpu.memory_space<vmem>>, vector<2x64xf32>,
    %c16_200 = arith.constant 16 : index
    %c0_201 = arith.constant 0 : index
    %164 = vector.load %arg20[%c16_200, %c0_201] : memref<30x64xf32, #tpu.memory_space<vmem>>, vector<2x64xf32>
    %c0_202 = arith.constant 0 : index
    %c512_203 = arith.constant 512 : index
    %165 = vector.load %arg21[%c0_202, %c512_203] : memref<2x960xf32, #tpu.memory_space<vmem>>, vector<2x64xf32>
    tpu.vector_store %arg21[%c0_202, %c512_203], %164 {strides = array<i32>} : memref<2x960xf32, #tpu.memory_space<vmem>>, vector<2x64xf32>,
    %c18_204 = arith.constant 18 : index
    %c0_205 = arith.constant 0 : index
    %166 = vector.load %arg20[%c18_204, %c0_205] : memref<30x64xf32, #tpu.memory_space<vmem>>, vector<2x64xf32>
    %c0_206 = arith.constant 0 : index
    %c576 = arith.constant 576 : index
    %167 = vector.load %arg21[%c0_206, %c576] : memref<2x960xf32, #tpu.memory_space<vmem>>, vector<2x64xf32>
    tpu.vector_store %arg21[%c0_206, %c576], %166 {strides = array<i32>} : memref<2x960xf32, #tpu.memory_space<vmem>>, vector<2x64xf32>,
    %c20_207 = arith.constant 20 : index
    %c0_208 = arith.constant 0 : index
    %168 = vector.load %arg20[%c20_207, %c0_208] : memref<30x64xf32, #tpu.memory_space<vmem>>, vector<2x64xf32>
    %c0_209 = arith.constant 0 : index
    %c640 = arith.constant 640 : index
    %169 = vector.load %arg21[%c0_209, %c640] : memref<2x960xf32, #tpu.memory_space<vmem>>, vector<2x64xf32>
    tpu.vector_store %arg21[%c0_209, %c640], %168 {strides = array<i32>} : memref<2x960xf32, #tpu.memory_space<vmem>>, vector<2x64xf32>,
    %c22 = arith.constant 22 : index
    %c0_210 = arith.constant 0 : index
    %170 = vector.load %arg20[%c22, %c0_210] : memref<30x64xf32, #tpu.memory_space<vmem>>, vector<2x64xf32>
    %c0_211 = arith.constant 0 : index
    %c704 = arith.constant 704 : index
    %171 = vector.load %arg21[%c0_211, %c704] : memref<2x960xf32, #tpu.memory_space<vmem>>, vector<2x64xf32>
    tpu.vector_store %arg21[%c0_211, %c704], %170 {strides = array<i32>} : memref<2x960xf32, #tpu.memory_space<vmem>>, vector<2x64xf32>,
    %c24 = arith.constant 24 : index
    %c0_212 = arith.constant 0 : index
    %172 = vector.load %arg20[%c24, %c0_212] : memref<30x64xf32, #tpu.memory_space<vmem>>, vector<2x64xf32>
    %c0_213 = arith.constant 0 : index
    %c768 = arith.constant 768 : index
    %173 = vector.load %arg21[%c0_213, %c768] : memref<2x960xf32, #tpu.memory_space<vmem>>, vector<2x64xf32>
    tpu.vector_store %arg21[%c0_213, %c768], %172 {strides = array<i32>} : memref<2x960xf32, #tpu.memory_space<vmem>>, vector<2x64xf32>,
    %c26 = arith.constant 26 : index
    %c0_214 = arith.constant 0 : index
    %174 = vector.load %arg20[%c26, %c0_214] : memref<30x64xf32, #tpu.memory_space<vmem>>, vector<2x64xf32>
    %c0_215 = arith.constant 0 : index
    %c832 = arith.constant 832 : index
    %175 = vector.load %arg21[%c0_215, %c832] : memref<2x960xf32, #tpu.memory_space<vmem>>, vector<2x64xf32>
    tpu.vector_store %arg21[%c0_215, %c832], %174 {strides = array<i32>} : memref<2x960xf32, #tpu.memory_space<vmem>>, vector<2x64xf32>,
    %c28_216 = arith.constant 28 : index
    %c0_217 = arith.constant 0 : index
    %176 = vector.load %arg20[%c28_216, %c0_217] : memref<30x64xf32, #tpu.memory_space<vmem>>, vector<2x64xf32>
    %c0_218 = arith.constant 0 : index
    %c896 = arith.constant 896 : index
    %177 = vector.load %arg21[%c0_218, %c896] : memref<2x960xf32, #tpu.memory_space<vmem>>, vector<2x64xf32>
    tpu.vector_store %arg21[%c0_218, %c896], %176 {strides = array<i32>} : memref<2x960xf32, #tpu.memory_space<vmem>>, vector<2x64xf32>,
    %c0_219 = arith.constant 0 : index
    %c0_220 = arith.constant 0 : index
    %178 = vector.load %arg21[%c0_219, %c0_220] : memref<2x960xf32, #tpu.memory_space<vmem>>, vector<2x960xf32>
    %179 = arith.truncf %178 : vector<2x960xf32> to vector<2x960xbf16>
    %c0_221 = arith.constant 0 : index
    %c0_222 = arith.constant 0 : index
    %180 = vector.load %arg8[%c0_221, %c0_222] : memref<960x512xbf16, #tpu.memory_space<vmem>>, vector<960x512xbf16>
    %cst_223 = arith.constant dense<0.000000e+00> : vector<2x512xf32>
    %181 = tpu.matmul %179, %180, %cst_223 {dimension_numbers = #tpu.dot_dimension_numbers<[1], [0], [0], [1], [0, 0, 1, 1], [], []>} : vector<2x960xbf16>, vector<960x512xbf16>, vector<2x512xf32> -> vector<2x512xf32>
    %c0_224 = arith.constant 0 : index
    %c0_225 = arith.constant 0 : index
    %182 = vector.load %arg9[%c0_224, %c0_225] : memref<1x512xf32, #tpu.memory_space<vmem>>, vector<1x512xf32>
    %183 = vector.broadcast %182 : vector<1x512xf32> to vector<2x512xf32>
    %184 = arith.addf %181, %183 : vector<2x512xf32>
    %cst_226 = arith.constant 0.000000e+00 : f32
    %185 = vector.broadcast %cst_226 : f32 to vector<2x512xf32>
    %186 = arith.maximumf %184, %185 : vector<2x512xf32>
    %187 = arith.truncf %186 : vector<2x512xf32> to vector<2x512xbf16>
    %c0_227 = arith.constant 0 : index
    %c0_228 = arith.constant 0 : index
    %188 = vector.load %arg10[%c0_227, %c0_228] : memref<512x512xbf16, #tpu.memory_space<vmem>>, vector<512x512xbf16>
    %cst_229 = arith.constant dense<0.000000e+00> : vector<2x512xf32>
    %189 = tpu.matmul %187, %188, %cst_229 {dimension_numbers = #tpu.dot_dimension_numbers<[1], [0], [0], [1], [0, 0, 1, 1], [], []>} : vector<2x512xbf16>, vector<512x512xbf16>, vector<2x512xf32> -> vector<2x512xf32>
    %c0_230 = arith.constant 0 : index
    %c0_231 = arith.constant 0 : index
    %190 = vector.load %arg11[%c0_230, %c0_231] : memref<1x512xf32, #tpu.memory_space<vmem>>, vector<1x512xf32>
    %191 = vector.broadcast %190 : vector<1x512xf32> to vector<2x512xf32>
    %192 = arith.addf %189, %191 : vector<2x512xf32>
    %cst_232 = arith.constant 0.000000e+00 : f32
    %193 = vector.broadcast %cst_232 : f32 to vector<2x512xf32>
    %194 = arith.maximumf %192, %193 : vector<2x512xf32>
    %195 = arith.truncf %194 : vector<2x512xf32> to vector<2x512xbf16>
    %c0_233 = arith.constant 0 : index
    %c0_234 = arith.constant 0 : index
    %196 = vector.load %arg12[%c0_233, %c0_234] : memref<512x768xbf16, #tpu.memory_space<vmem>>, vector<512x768xbf16>
    %cst_235 = arith.constant dense<0.000000e+00> : vector<2x768xf32>
    %197 = tpu.matmul %195, %196, %cst_235 {dimension_numbers = #tpu.dot_dimension_numbers<[1], [0], [0], [1], [0, 0, 1, 1], [], []>} : vector<2x512xbf16>, vector<512x768xbf16>, vector<2x768xf32> -> vector<2x768xf32>
    %c0_236 = arith.constant 0 : index
    %c0_237 = arith.constant 0 : index
    %198 = vector.load %arg13[%c0_236, %c0_237] : memref<1x768xf32, #tpu.memory_space<vmem>>, vector<1x768xf32>
    %199 = vector.broadcast %198 : vector<1x768xf32> to vector<2x768xf32>
    %200 = arith.addf %197, %199 : vector<2x768xf32>
    %cst_238 = arith.constant 0.000000e+00 : f32
    %201 = vector.broadcast %cst_238 : f32 to vector<2x768xf32>
    %202 = arith.maximumf %200, %201 : vector<2x768xf32>
    %203 = arith.truncf %202 : vector<2x768xf32> to vector<2x768xbf16>
    %c0_239 = arith.constant 0 : index
    %c0_240 = arith.constant 0 : index
    %204 = vector.load %arg14[%c0_239, %c0_240] : memref<768x3xbf16, #tpu.memory_space<vmem>>, vector<768x3xbf16>
    %cst_241 = arith.constant dense<0.000000e+00> : vector<2x3xf32>
    %205 = tpu.matmul %203, %204, %cst_241 {dimension_numbers = #tpu.dot_dimension_numbers<[1], [0], [0], [1], [0, 0, 1, 1], [], []>} : vector<2x768xbf16>, vector<768x3xbf16>, vector<2x3xf32> -> vector<2x3xf32>
    %c0_242 = arith.constant 0 : index
    %c0_243 = arith.constant 0 : index
    %206 = vector.load %arg15[%c0_242, %c0_243] : memref<1x3xf32, #tpu.memory_space<vmem>>, vector<1x3xf32>
    %207 = vector.broadcast %206 : vector<1x3xf32> to vector<2x3xf32>
    %208 = arith.addf %205, %207 : vector<2x3xf32>
    %c0_244 = arith.constant 0 : index
    %c0_245 = arith.constant 0 : index
    %c0_246 = arith.constant 0 : index
    %209 = vector.load %arg16[%c0_244, %c0_245, %c0_246] : memref<1x2x3xf32, #tpu.memory_space<vmem>>, vector<1x2x3xf32>
    %210 = vector.shape_cast %209 : vector<1x2x3xf32> to vector<2x3xf32>
    %211 = vector.shape_cast %208 : vector<2x3xf32> to vector<1x2x3xf32>
    tpu.vector_store %arg16[%c0_244, %c0_245, %c0_246], %211 {strides = array<i32>} : memref<1x2x3xf32, #tpu.memory_space<vmem>>, vector<1x2x3xf32>,
    return
  }
  func.func @transform_0(%arg0: i32) -> (i32, i32, i32, i32) {
    %c0_i32 = arith.constant 0 : i32
    %c0_i32_0 = arith.constant 0 : i32
    %c0_i32_1 = arith.constant 0 : i32
    %c0_i32_2 = arith.constant 0 : i32
    return %arg0, %c0_i32, %c0_i32_0, %c0_i32_1 : i32, i32, i32, i32
  }
  func.func @transform_1(%arg0: i32) -> (i32, i32) {
    %c0_i32 = arith.constant 0 : i32
    %c0_i32_0 = arith.constant 0 : i32
    %c0_i32_1 = arith.constant 0 : i32
    return %c0_i32, %c0_i32_0 : i32, i32
  }
  func.func @transform_2(%arg0: i32) -> (i32, i32) {
    %c0_i32 = arith.constant 0 : i32
    %c0_i32_0 = arith.constant 0 : i32
    %c0_i32_1 = arith.constant 0 : i32
    return %c0_i32, %c0_i32_0 : i32, i32
  }
  func.func @transform_3(%arg0: i32) -> (i32, i32) {
    %c0_i32 = arith.constant 0 : i32
    %c0_i32_0 = arith.constant 0 : i32
    %c0_i32_1 = arith.constant 0 : i32
    return %c0_i32, %c0_i32_0 : i32, i32
  }
  func.func @transform_4(%arg0: i32) -> (i32, i32) {
    %c0_i32 = arith.constant 0 : i32
    %c0_i32_0 = arith.constant 0 : i32
    %c0_i32_1 = arith.constant 0 : i32
    return %c0_i32, %c0_i32_0 : i32, i32
  }
  func.func @transform_5(%arg0: i32) -> (i32, i32) {
    %c0_i32 = arith.constant 0 : i32
    %c0_i32_0 = arith.constant 0 : i32
    %c0_i32_1 = arith.constant 0 : i32
    return %c0_i32, %c0_i32_0 : i32, i32
  }
  func.func @transform_6(%arg0: i32) -> (i32, i32) {
    %c0_i32 = arith.constant 0 : i32
    %c0_i32_0 = arith.constant 0 : i32
    %c0_i32_1 = arith.constant 0 : i32
    return %c0_i32, %c0_i32_0 : i32, i32
  }
  func.func @transform_7(%arg0: i32) -> (i32, i32) {
    %c0_i32 = arith.constant 0 : i32
    %c0_i32_0 = arith.constant 0 : i32
    %c0_i32_1 = arith.constant 0 : i32
    return %c0_i32, %c0_i32_0 : i32, i32
  }
  func.func @transform_8(%arg0: i32) -> (i32, i32) {
    %c0_i32 = arith.constant 0 : i32
    %c0_i32_0 = arith.constant 0 : i32
    %c0_i32_1 = arith.constant 0 : i32
    return %c0_i32, %c0_i32_0 : i32, i32
  }
  func.func @transform_9(%arg0: i32) -> (i32, i32) {
    %c0_i32 = arith.constant 0 : i32
    %c0_i32_0 = arith.constant 0 : i32
    %c0_i32_1 = arith.constant 0 : i32
    return %c0_i32, %c0_i32_0 : i32, i32
  }
  func.func @transform_10(%arg0: i32) -> (i32, i32) {
    %c0_i32 = arith.constant 0 : i32
    %c0_i32_0 = arith.constant 0 : i32
    %c0_i32_1 = arith.constant 0 : i32
    return %c0_i32, %c0_i32_0 : i32, i32
  }
  func.func @transform_11(%arg0: i32) -> (i32, i32) {
    %c0_i32 = arith.constant 0 : i32
    %c0_i32_0 = arith.constant 0 : i32
    %c0_i32_1 = arith.constant 0 : i32
    return %c0_i32, %c0_i32_0 : i32, i32
  }
  func.func @transform_12(%arg0: i32) -> (i32, i32) {
    %c0_i32 = arith.constant 0 : i32
    %c0_i32_0 = arith.constant 0 : i32
    %c0_i32_1 = arith.constant 0 : i32
    return %c0_i32, %c0_i32_0 : i32, i32
  }
  func.func @transform_13(%arg0: i32) -> (i32, i32) {
    %c0_i32 = arith.constant 0 : i32
    %c0_i32_0 = arith.constant 0 : i32
    %c0_i32_1 = arith.constant 0 : i32
    return %c0_i32, %c0_i32_0 : i32, i32
  }
  func.func @transform_14(%arg0: i32) -> (i32, i32) {
    %c0_i32 = arith.constant 0 : i32
    %c0_i32_0 = arith.constant 0 : i32
    %c0_i32_1 = arith.constant 0 : i32
    return %c0_i32, %c0_i32_0 : i32, i32
  }
  func.func @transform_15(%arg0: i32) -> (i32, i32, i32) {
    %c0_i32 = arith.constant 0 : i32
    %c0_i32_0 = arith.constant 0 : i32
    %c0_i32_1 = arith.constant 0 : i32
    return %arg0, %c0_i32, %c0_i32_0 : i32, i32, i32
  }
}

</mosaic_0001>

<bundles_post_ra>
// kernel: net_forward.1
= control target key start
LH: loop header
LB: loop body
LE: loop exit
PB: predicated region body
PF: predicated region fallthrough
CT: control target
= control target key end

     0   :  { %v10105_v0 = vmov 0   ;;  %vm205_vm0 = vcmask 523264   ;;  %vm302_vm1 = vcmask 261120   ;;  %vm311_vm2 = vcmask 259072   ;;  %s10107_s20 = smov 64   ;;  %s10108_s21 = smov 96   ;;  %s13305_s1 = inlined_call_operand.vmem [shape: bf16[192,32], index: 1, kind: input, shape index: {}]   ;;  %s13306_s0 = inlined_call_operand.vmem [shape: bf16[1,9,70,192], index: 0, kind: input, shape index: {}]   ;;  %s13307_s2 = inlined_call_operand.vmem [shape: f32[1,32], index: 2, kind: input, shape index: {}]   ;;  %s13308_s3 = inlined_call_operand.vmem [shape: bf16[288,64], index: 3, kind: input, shape index: {}]   ;;  %s13309_s5 = inlined_call_operand.vmem [shape: bf16[576,64], index: 5, kind: input, shape index: {}]   ;;  %s13310_s4 = inlined_call_operand.vmem [shape: f32[1,64], index: 4, kind: input, shape index: {}]   ;;  %s13311_s7 = inlined_call_operand.vmem [shape: bf16[960,512], index: 7, kind: input, shape index: {}]   ;;  %s13312_s6 = inlined_call_operand.vmem [shape: f32[1,64], index: 6, kind: input, shape index: {}]   ;;  %s13313_s9 = inlined_call_operand.vmem [shape: bf16[512,512], index: 9, kind: input, shape index: {}]   ;;  %s13314_s11 = inlined_call_operand.vmem [shape: bf16[512,768], index: 11, kind: input, shape index: {}]   ;;  %s13315_s8 = inlined_call_operand.vmem [shape: f32[1,512], index: 8, kind: input, shape index: {}]   ;;  %s13316_s10 = inlined_call_operand.vmem [shape: f32[1,512], index: 10, kind: input, shape index: {}]   ;;  %s13317_s13 = inlined_call_operand.vmem [shape: bf16[768,3], index: 13, kind: input, shape index: {}]   ;;  %s13318_s12 = inlined_call_operand.vmem [shape: f32[1,768], index: 12, kind: input, shape index: {}]   ;;  %s13319_s14 = inlined_call_operand.vmem [shape: f32[1,3], index: 14, kind: input, shape index: {}]   ;;  %s13320_s15 = inlined_call_operand.vmem [shape: f32[1,2,3], index: 15, kind: output, shape index: {}]  }
   0x1   :  { %221 = vmatprep.subr.bf16.mxu0 %v10105_v0  ;;  %v10196_v1 = vld [vmem:[%s13305_s1] sm:$0xff]   ;;  %380 = vmatprep.subr.bf16.mxu1 %v10105_v0  ;;  %v10204_v2 = vld [vmem:[%s13305_s1 + $0x8] sm:$0xff]   ;;  %v10213_v3 = vld [vmem:[%s13305_s1 + $0x10] sm:$0xff]   ;;  %vm497_vm3 = vcmask 523520   ;;  %vm692_vm4 = vcmask 785920   ;;  %vm887_vm5 = vcmask 1048320  }
   0x2   :  { %222 = vmatpush1.bf16.msra.mxu0 %v10196_v1  ;;  %381 = vmatpush1.bf16.msra.mxu1 %v10196_v1  ;;  %v10222_v4 = vld [vmem:[%s13305_s1 + $0x18] sm:$0xff]   ;;  %v9038_v5 = vld [vmem:[%s13306_s0 + $0x4] ss:$8 sps:$4 sm:$0xff]   ;;  %v10257_v9 = vld [vmem:[%s13305_s1 + $0x30] sm:$0xff]   ;;  %vm506_vm6 = vcmask 521472   ;;  %vm701_vm7 = vcmask 783872  }
   0x3   :  { %223 = vmatprep.subr.bf16.mxu0 %v10105_v0  ;;  %382 = vmatprep.subr.bf16.mxu1 %v10105_v0  ;;  %v10234_v6 = vld [vmem:[%s13305_s1 + $0x20] sm:$0xff]   ;;  %v9041_v7 = vld [vmem:[%s13306_s0 + $0x4c] ss:$8 sps:$4 sm:$0xff]   ;;  %v10266_v10 = vld [vmem:[%s13305_s1 + $0x38] sm:$0xff]   ;;  %vm896_vm8 = vcmask 1046272   ;;  %vm10110_vm9 = vmmov 0  }
   0x4   :  { %7864 = vmatprep.mubr.msk.bf16.mxu0 %vm205_vm0, %v9038_v5  ;;  %7888 = vmatprep.mubr.msk.bf16.mxu1 %vm205_vm0, %v9041_v7  ;;  %v10248_v8 = vld [vmem:[%s13305_s1 + $0x28] sm:$0xff]   ;;  %v10275_v11 = vld [vmem:[%s13305_s1 + $0x40] sm:$0xff]   ;;  %v10293_v13 = vld [vmem:[%s13305_s1 + $0x50] sm:$0xff]   ;;  %vm2165_vm10 = vcmask 517120   ;;  %vm2177_vm11 = vcmask 523266   ;;  %vm2171_vm12 = vcmask 1041408  }
   0x5   :  { %v10284_v12 = vld [vmem:[%s13305_s1 + $0x48] sm:$0xff]   ;;  %v10302_v14 = vld [vmem:[%s13305_s1 + $0x58] sm:$0xff]   ;;  %v84_v29 = vld [vmem:[%s13306_s0 + $0x40] sm:$0x77]  ;;  %vm2179_vm13 = vcmask 519168   ;;  %vm2160_vm14 = vcmask 521216  }
   0x6   :  { %224 = vmatpush1.bf16.msra.mxu0 %v10204_v2  ;;  %383 = vmatpush1.bf16.msra.mxu1 %v10204_v2  ;;  %v9036_v15 = vld [vmem:[%s13306_s0] ss:$8 sps:$4 sm:$0xff]   ;;  %v9042_v17 = vld [vmem:[%s13306_s0 + $0x14] ss:$8 sps:$4 sm:$0xff]   ;;  %v9044_v19 = vld [vmem:[%s13306_s0 + $0x10] ss:$8 sps:$4 sm:$0xff]   ;;  %v7851_v31 = vcombine.high %v84_v29, %v84_v29  ;;  %v7850_v33 = vcombine.low %v84_v29, %v84_v29 }
   0x7   :  { %225 = vmatprep.subr.bf16.mxu0 %v10105_v0  ;;  %384 = vmatprep.subr.bf16.mxu1 %v10105_v0  ;;  %v9039_v16 = vld [vmem:[%s13306_s0 + $0x48] ss:$8 sps:$4 sm:$0xff]   ;;  %v9045_v18 = vld [vmem:[%s13306_s0 + $0x5c] ss:$8 sps:$4 sm:$0xff]   ;;  %v9047_v20 = vld [vmem:[%s13306_s0 + $0x58] ss:$8 sps:$4 sm:$0xff]  }
   0x8   :  { %v9048_v21 = vld [vmem:[%s13306_s0 + $0x24] ss:$8 sps:$4 sm:$0xff]   ;;  %v9050_v23 = vld [vmem:[%s13306_s0 + $0x20] ss:$8 sps:$4 sm:$0xff]   ;;  %v9054_v25 = vld [vmem:[%s13306_s0 + $0x34] ss:$8 sps:$4 sm:$0xff]  }
   0x9   :  { %v9051_v22 = vld [vmem:[%s13306_s0 + $0x6c] ss:$8 sps:$4 sm:$0xff]   ;;  %v9053_v24 = vld [vmem:[%s13306_s0 + $0x68] ss:$8 sps:$4 sm:$0xff]   ;;  %v9057_v26 = vld [vmem:[%s13306_s0 + $0x7c] ss:$8 sps:$4 sm:$0xff]  }
   0xa   :  { %226 = vmatpush1.bf16.msra.mxu0 %v10213_v3  ;;  %385 = vmatpush1.bf16.msra.mxu1 %v10213_v3  ;;  %v9056_v27 = vld [vmem:[%s13306_s0 + $0x30] ss:$8 sps:$4 sm:$0xff]   ;;  %v7877_v30 = vld [vmem:[%s13306_s0 + $0x88] sm:$0x77]  ;;  %v9066_v35 = vld [vmem:[%s13306_s0 + $0x94] ss:$8 sps:$4 sm:$0xff]  }
   0xb   :  { %227 = vmatprep.subr.bf16.mxu0 %v10105_v0  ;;  %386 = vmatprep.subr.bf16.mxu1 %v10105_v0  ;;  %v9059_v28 = vld [vmem:[%s13306_s0 + $0x78] ss:$8 sps:$4 sm:$0xff]   ;;  %v7887_v32 = vcombine.high %v7877_v30, %v7877_v30  ;;  %v7886_v34 = vcombine.low %v7877_v30, %v7877_v30  ;;  %v9069_v36 = vld [vmem:[%s13306_s0 + $0xdc] ss:$8 sps:$4 sm:$0xff]   ;;  %v9073_v40 = vld [vmem:[%s13306_s0 + $0xec] ss:$8 sps:$4 sm:$0xff]  }
   0xc   :  { %v9064_v37 = vld [vmem:[%s13306_s0 + $0x90] ss:$8 sps:$4 sm:$0xff]   ;;  %v9070_v39 = vld [vmem:[%s13306_s0 + $0xa4] ss:$8 sps:$4 sm:$0xff]   ;;  %v9072_v41 = vld [vmem:[%s13306_s0 + $0xa0] ss:$8 sps:$4 sm:$0xff]  }
   0xd   :  { %v9067_v38 = vld [vmem:[%s13306_s0 + $0xd8] ss:$8 sps:$4 sm:$0xff]   ;;  %v9075_v42 = vld [vmem:[%s13306_s0 + $0xe8] ss:$8 sps:$4 sm:$0xff]   ;;  %v9076_v43 = vld [vmem:[%s13306_s0 + $0xb4] ss:$8 sps:$4 sm:$0xff]  }
   0xe   :  { %228 = vmatpush1.bf16.msra.mxu0 %v10222_v4  ;;  %387 = vmatpush1.bf16.msra.mxu1 %v10222_v4  ;;  %v9079_v44 = vld [vmem:[%s13306_s0 + $0xfc] ss:$8 sps:$4 sm:$0xff]   ;;  %v9078_v45 = vld [vmem:[%s13306_s0 + $0xb0] ss:$8 sps:$4 sm:$0xff]   ;;  %v9085_v48 = vld [vmem:[%s13306_s0 + $0x10c] ss:$8 sps:$4 sm:$0xff]  }
   0xf   :  { %229 = vmatprep.subr.bf16.mxu0 %v10105_v0  ;;  %388 = vmatprep.subr.bf16.mxu1 %v10105_v0  ;;  %v9081_v46 = vld [vmem:[%s13306_s0 + $0xf8] ss:$8 sps:$4 sm:$0xff]   ;;  %v9082_v47 = vld [vmem:[%s13306_s0 + $0xc4] ss:$8 sps:$4 sm:$0xff]   ;;  %v9087_v50 = vld [vmem:[%s13306_s0 + $0x108] ss:$8 sps:$4 sm:$0xff]  }
  0x10   :  { %v9084_v49 = vld [vmem:[%s13306_s0 + $0xc0] ss:$8 sps:$4 sm:$0xff]   ;;  %v7901_v51 = vld [vmem:[%s13306_s0 + $0xd0] sm:$0x77]  ;;  %v7925_v52 = vld [vmem:[%s13306_s0 + $0x118] sm:$0x77] }
  0x11   :  { %v7911_v53 = vcombine.high %v7901_v51, %v7901_v51  ;;  %v7935_v54 = vcombine.high %v7925_v52, %v7925_v52  ;;  %v7910_v55 = vcombine.low %v7901_v51, %v7901_v51  ;;  %v7934_v56 = vcombine.low %v7925_v52, %v7925_v52  ;;  %v9094_v57 = vld [vmem:[%s13306_s0 + $0x124] ss:$8 sps:$4 sm:$0xff]   ;;  %v9092_v59 = vld [vmem:[%s13306_s0 + $0x120] ss:$8 sps:$4 sm:$0xff]   ;;  %v9098_v61 = vld [vmem:[%s13306_s0 + $0x134] ss:$8 sps:$4 sm:$0xff]  }
  0x12   :  { %230 = vmatpush1.bf16.msra.mxu0 %v10234_v6  ;;  %389 = vmatpush1.bf16.msra.mxu1 %v10234_v6  ;;  %v9097_v58 = vld [vmem:[%s13306_s0 + $0x16c] ss:$8 sps:$4 sm:$0xff]   ;;  %v9095_v60 = vld [vmem:[%s13306_s0 + $0x168] ss:$8 sps:$4 sm:$0xff]   ;;  %v9101_v62 = vld [vmem:[%s13306_s0 + $0x17c] ss:$8 sps:$4 sm:$0xff]  }
  0x13   :  { %231 = vmatprep.subr.bf16.mxu0 %v10105_v0  ;;  %390 = vmatprep.subr.bf16.mxu1 %v10105_v0  ;;  %v9100_v63 = vld [vmem:[%s13306_s0 + $0x130] ss:$8 sps:$4 sm:$0xff]   ;;  %v9104_v7 = vld [vmem:[%s13306_s0 + $0x144] ss:$8 sps:$4 sm:$0xff]   ;;  %vm2185_vm15 = vcmask 1043456  }
  0x14   :  { %v9103_v5 = vld [vmem:[%s13306_s0 + $0x178] ss:$8 sps:$4 sm:$0xff]   ;;  %v9125_v29 = vld [vmem:[%s13306_s0 + $0x1fc] ss:$8 sps:$4 sm:$0xff]  }
  0x15   :  { %v9120_v30 = vld [vmem:[%s13306_s0 + $0x1b0] ss:$8 sps:$4 sm:$0xff]  }
  0x16   :  { %232 = vmatpush1.bf16.msra.mxu0 %v10248_v8  ;;  %391 = vmatpush1.bf16.msra.mxu1 %v10248_v8 }
  0x17   :  { %233 = vmatprep.subr.bf16.mxu0 %v10105_v0  ;;  %392 = vmatprep.subr.bf16.mxu1 %v10105_v0 }
  0x1a   :  { %234 = vmatpush1.bf16.msra.mxu0 %v10257_v9  ;;  %393 = vmatpush1.bf16.msra.mxu1 %v10257_v9 }
  0x1b   :  { %235 = vmatprep.subr.bf16.mxu0 %v10105_v0  ;;  %394 = vmatprep.subr.bf16.mxu1 %v10105_v0 }
  0x1e   :  { %236 = vmatpush1.bf16.msra.mxu0 %v10266_v10  ;;  %395 = vmatpush1.bf16.msra.mxu1 %v10266_v10 }
  0x1f   :  { %237 = vmatprep.subr.bf16.mxu0 %v10105_v0  ;;  %396 = vmatprep.subr.bf16.mxu1 %v10105_v0 }
  0x22   :  { %238 = vmatpush1.bf16.msra.mxu0 %v10275_v11  ;;  %397 = vmatpush1.bf16.msra.mxu1 %v10275_v11 }
  0x23   :  { %239 = vmatprep.subr.bf16.mxu0 %v10105_v0  ;;  %398 = vmatprep.subr.bf16.mxu1 %v10105_v0 }
  0x26   :  { %240 = vmatpush1.bf16.msra.mxu0 %v10284_v12  ;;  %399 = vmatpush1.bf16.msra.mxu1 %v10284_v12 }
  0x27   :  { %241 = vmatprep.subr.bf16.mxu0 %v10105_v0  ;;  %400 = vmatprep.subr.bf16.mxu1 %v10105_v0 }
  0x2a   :  { %242 = vmatpush1.bf16.msra.mxu0 %v10293_v13  ;;  %401 = vmatpush1.bf16.msra.mxu1 %v10293_v13 }
  0x2b   :  { %243 = vmatprep.subr.bf16.mxu0 %v10105_v0  ;;  %402 = vmatprep.subr.bf16.mxu1 %v10105_v0 }
  0x2e   :  { %244 = vmatpush1.bf16.msra.mxu0 %v10302_v14  ;;  %403 = vmatpush1.bf16.msra.mxu1 %v10302_v14 }
  0x2f   :  { %575 = vmatprep.subr.bf16.mxu0 %v10105_v0  ;;  %770 = vmatprep.subr.bf16.mxu1 %v10105_v0 }
  0x31   :  { %254 = vmatmul.mubr.bf16.vlgmr.msra.gmra.mrb[0].mxu0 %v9036_v15  ;;  %413 = vmatmul.mubr.bf16.vlgmr.msra.gmra.mrb[0].mxu1 %v9039_v16  ;;  %v9107_v15 = vld [vmem:[%s13306_s0 + $0x18c] ss:$8 sps:$4 sm:$0xff]   ;;  %v9106_v16 = vld [vmem:[%s13306_s0 + $0x140] ss:$8 sps:$4 sm:$0xff]  }
  0x32   :  { %576 = vmatpush1.bf16.msra.mxu0 %v10196_v1  ;;  %771 = vmatpush1.bf16.msra.mxu1 %v10196_v1 }
  0x33   :  { %577 = vmatprep.subr.bf16.mxu0 %v10105_v0  ;;  %772 = vmatprep.subr.bf16.mxu1 %v10105_v0 }
  0x34   :  { %7865 = vmatprep.mubr.msk.bf16.mxu0 %vm205_vm0, %v9042_v17  ;;  %7889 = vmatprep.mubr.msk.bf16.mxu1 %vm205_vm0, %v9045_v18  ;;  %v9109_v17 = vld [vmem:[%s13306_s0 + $0x188] ss:$8 sps:$4 sm:$0xff]   ;;  %v9110_v18 = vld [vmem:[%s13306_s0 + $0x154] ss:$8 sps:$4 sm:$0xff]  }
  0x36   :  { %578 = vmatpush1.bf16.msra.mxu0 %v10204_v2  ;;  %773 = vmatpush1.bf16.msra.mxu1 %v10204_v2 }
  0x37   :  { %579 = vmatprep.subr.bf16.mxu0 %v10105_v0  ;;  %774 = vmatprep.subr.bf16.mxu1 %v10105_v0 }
  0x39   :  { %262 = vmatmul.mubr.bf16.gmra.mrb[4].mxu0 %v9044_v19  ;;  %421 = vmatmul.mubr.bf16.gmra.mrb[4].mxu1 %v9047_v20  ;;  %v9113_v19 = vld [vmem:[%s13306_s0 + $0x19c] ss:$8 sps:$4 sm:$0xff]   ;;  %v9112_v20 = vld [vmem:[%s13306_s0 + $0x150] ss:$8 sps:$4 sm:$0xff]  }
  0x3a   :  { %580 = vmatpush1.bf16.msra.mxu0 %v10213_v3  ;;  %775 = vmatpush1.bf16.msra.mxu1 %v10213_v3 }
  0x3b   :  { %581 = vmatprep.subr.bf16.mxu0 %v10105_v0  ;;  %776 = vmatprep.subr.bf16.mxu1 %v10105_v0 }
  0x3c   :  { %7866 = vmatprep.mubr.msk.bf16.mxu0 %vm205_vm0, %v9048_v21  ;;  %7890 = vmatprep.mubr.msk.bf16.mxu1 %vm205_vm0, %v9051_v22  ;;  %v9115_v21 = vld [vmem:[%s13306_s0 + $0x198] ss:$8 sps:$4 sm:$0xff]  }
  0x3d   :  { %v7949_v22 = vld [vmem:[%s13306_s0 + $0x160] sm:$0x77] }
  0x3e   :  { %582 = vmatpush1.bf16.msra.mxu0 %v10222_v4  ;;  %777 = vmatpush1.bf16.msra.mxu1 %v10222_v4 }
  0x3f   :  { %583 = vmatprep.subr.bf16.mxu0 %v10105_v0  ;;  %778 = vmatprep.subr.bf16.mxu1 %v10105_v0 }
  0x41   :  { %270 = vmatmul.mubr.bf16.gmra.mrb[8].mxu0 %v9050_v23  ;;  %429 = vmatmul.mubr.bf16.gmra.mrb[8].mxu1 %v9053_v24  ;;  %v7973_v23 = vld [vmem:[%s13306_s0 + $0x1a8] sm:$0x77]  ;;  %v7959_v24 = vcombine.high %v7949_v22, %v7949_v22 }
  0x42   :  { %584 = vmatpush1.bf16.msra.mxu0 %v10234_v6  ;;  %779 = vmatpush1.bf16.msra.mxu1 %v10234_v6 }
  0x43   :  { %585 = vmatprep.subr.bf16.mxu0 %v10105_v0  ;;  %780 = vmatprep.subr.bf16.mxu1 %v10105_v0 }
  0x44   :  { %7867 = vmatprep.mubr.msk.bf16.mxu0 %vm205_vm0, %v9054_v25  ;;  %7891 = vmatprep.mubr.msk.bf16.mxu1 %vm205_vm0, %v9057_v26  ;;  %v7983_v25 = vcombine.high %v7973_v23, %v7973_v23  ;;  %v7958_v26 = vcombine.low %v7949_v22, %v7949_v22 }
  0x46   :  { %586 = vmatpush1.bf16.msra.mxu0 %v10248_v8  ;;  %781 = vmatpush1.bf16.msra.mxu1 %v10248_v8 }
  0x47   :  { %587 = vmatprep.subr.bf16.mxu0 %v10105_v0  ;;  %782 = vmatprep.subr.bf16.mxu1 %v10105_v0 }
  0x49   :  { %278 = vmatmul.mubr.bf16.gmra.mrb[12].mxu0 %v9056_v27  ;;  %437 = vmatmul.mubr.bf16.gmra.mrb[12].mxu1 %v9059_v28  ;;  %v7982_v27 = vcombine.low %v7973_v23, %v7973_v23  ;;  %v9122_v28 = vld [vmem:[%s13306_s0 + $0x1b4] ss:$8 sps:$4 sm:$0xff]  }
  0x4a   :  { %588 = vmatpush1.bf16.msra.mxu0 %v10257_v9  ;;  %783 = vmatpush1.bf16.msra.mxu1 %v10257_v9 }
  0x4b   :  { %589 = vmatprep.subr.bf16.mxu0 %v10105_v0  ;;  %784 = vmatprep.subr.bf16.mxu1 %v10105_v0 }
  0x4c   :  { %7868 = vmatprep.mubr.msk.bf16.mxu0 %vm205_vm0, %v7851_v31  ;;  %7892 = vmatprep.mubr.msk.bf16.mxu1 %vm205_vm0, %v7887_v32  ;;  %v9123_v31 = vld [vmem:[%s13306_s0 + $0x1f8] ss:$8 sps:$4 sm:$0xff]   ;;  %v9126_v32 = vld [vmem:[%s13306_s0 + $0x1c4] ss:$8 sps:$4 sm:$0xff]  }
  0x4e   :  { %590 = vmatpush1.bf16.msra.mxu0 %v10266_v10  ;;  %785 = vmatpush1.bf16.msra.mxu1 %v10266_v10 }
  0x4f   :  { %591 = vmatprep.subr.bf16.mxu0 %v10105_v0  ;;  %786 = vmatprep.subr.bf16.mxu1 %v10105_v0 }
  0x51   :  { %286 = vmatmul.mubr.bf16.gmra.mrb[16].mxu0 %v7850_v33  ;;  %445 = vmatmul.mubr.bf16.gmra.mrb[16].mxu1 %v7886_v34  ;;  %v9129_v33 = vld [vmem:[%s13306_s0 + $0x20c] ss:$8 sps:$4 sm:$0xff]   ;;  %v9128_v34 = vld [vmem:[%s13306_s0 + $0x1c0] ss:$8 sps:$4 sm:$0xff]  }
  0x52   :  { %592 = vmatpush1.bf16.msra.mxu0 %v10275_v11  ;;  %787 = vmatpush1.bf16.msra.mxu1 %v10275_v11 }
  0x53   :  { %593 = vmatprep.subr.bf16.mxu0 %v10105_v0  ;;  %788 = vmatprep.subr.bf16.mxu1 %v10105_v0 }
  0x54   :  { %7912 = vmatprep.mubr.msk.bf16.mxu0 %vm205_vm0, %v9066_v35  ;;  %7936 = vmatprep.mubr.msk.bf16.mxu1 %vm205_vm0, %v9069_v36  ;;  %v9131_v35 = vld [vmem:[%s13306_s0 + $0x208] ss:$8 sps:$4 sm:$0xff]   ;;  %v9132_v36 = vld [vmem:[%s13306_s0 + $0x1d4] ss:$8 sps:$4 sm:$0xff]  }
  0x56   :  { %594 = vmatpush1.bf16.msra.mxu0 %v10284_v12  ;;  %789 = vmatpush1.bf16.msra.mxu1 %v10284_v12 }
  0x57   :  { %595 = vmatprep.subr.bf16.mxu0 %v10105_v0  ;;  %790 = vmatprep.subr.bf16.mxu1 %v10105_v0 }
  0x5a   :  { %596 = vmatpush1.bf16.msra.mxu0 %v10293_v13  ;;  %791 = vmatpush1.bf16.msra.mxu1 %v10293_v13 }
  0x5b   :  { %597 = vmatprep.subr.bf16.mxu0 %v10105_v0  ;;  %792 = vmatprep.subr.bf16.mxu1 %v10105_v0 }
  0x5e   :  { %598 = vmatpush1.bf16.msra.mxu0 %v10302_v14  ;;  %793 = vmatpush1.bf16.msra.mxu1 %v10302_v14 }
  0x5f   :  { %965 = vmatprep.subr.bf16.mxu0 %v10105_v0  ;;  %1122 = vmatprep.subr.bf16.mxu1 %v10105_v0 }
  0x61   :  { %608 = vmatmul.mubr.bf16.vlgmr.msra.gmra.mrb[20].mxu0 %v9064_v37  ;;  %803 = vmatmul.mubr.bf16.vlgmr.msra.gmra.mrb[20].mxu1 %v9067_v38  ;;  %v9135_v37 = vld [vmem:[%s13306_s0 + $0x21c] ss:$8 sps:$4 sm:$0xff]  }
  0x62   :  { %966 = vmatpush1.bf16.msra.mxu0 %v10196_v1  ;;  %1123 = vmatpush1.bf16.msra.mxu1 %v10196_v1  ;;  %v9138_v38 = vld [vmem:[%s13306_s0 + $0x1e4] ss:$8 sps:$4 sm:$0xff]  }
  0x63   :  { %967 = vmatprep.subr.bf16.mxu0 %v10105_v0  ;;  %1124 = vmatprep.subr.bf16.mxu1 %v10105_v0 }
  0x64   :  { %7913 = vmatprep.mubr.msk.bf16.mxu0 %vm205_vm0, %v9070_v39  ;;  %7937 = vmatprep.mubr.msk.bf16.mxu1 %vm205_vm0, %v9073_v40  ;;  %v9141_v39 = vld [vmem:[%s13306_s0 + $0x22c] ss:$8 sps:$4 sm:$0xff]   ;;  %v8021_v40 = vld [vmem:[%s13306_s0 + $0x238] sm:$0x77] }
  0x66   :  { %968 = vmatpush1.bf16.msra.mxu0 %v10204_v2  ;;  %1125 = vmatpush1.bf16.msra.mxu1 %v10204_v2 }
  0x67   :  { %969 = vmatprep.subr.bf16.mxu0 %v10105_v0  ;;  %1126 = vmatprep.subr.bf16.mxu1 %v10105_v0 }
  0x69   :  { %616 = vmatmul.mubr.bf16.gmra.mrb[24].mxu0 %v9072_v41  ;;  %811 = vmatmul.mubr.bf16.gmra.mrb[24].mxu1 %v9075_v42  ;;  %v9143_v41 = vld [vmem:[%s13306_s0 + $0x228] ss:$8 sps:$4 sm:$0xff]  }
  0x6a   :  { %970 = vmatpush1.bf16.msra.mxu0 %v10213_v3  ;;  %1127 = vmatpush1.bf16.msra.mxu1 %v10213_v3 }
  0x6b   :  { %971 = vmatprep.subr.bf16.mxu0 %v10105_v0  ;;  %1128 = vmatprep.subr.bf16.mxu1 %v10105_v0 }
  0x6c   :  { %7914 = vmatprep.mubr.msk.bf16.mxu0 %vm205_vm0, %v9076_v43  ;;  %7938 = vmatprep.mubr.msk.bf16.mxu1 %vm205_vm0, %v9079_v44  ;;  %v8031_v43 = vcombine.high %v8021_v40, %v8021_v40  ;;  %v8030_v44 = vcombine.low %v8021_v40, %v8021_v40 }
  0x6e   :  { %972 = vmatpush1.bf16.msra.mxu0 %v10222_v4  ;;  %1129 = vmatpush1.bf16.msra.mxu1 %v10222_v4 }
  0x6f   :  { %973 = vmatprep.subr.bf16.mxu0 %v10105_v0  ;;  %1130 = vmatprep.subr.bf16.mxu1 %v10105_v0 }
  0x71   :  { %624 = vmatmul.mubr.bf16.gmra.mrb[28].mxu0 %v9078_v45  ;;  %819 = vmatmul.mubr.bf16.gmra.mrb[28].mxu1 %v9081_v46  ;;  %v9150_v45 = vld [vmem:[%s13306_s0 + $0x244] ss:$8 sps:$4 sm:$0xff]   ;;  %v10754_v46 = vld [vmem:[%s13307_s2] ss:$0 sm:$0xff] }
  0x72   :  { %974 = vmatpush1.bf16.msra.mxu0 %v10234_v6  ;;  %1131 = vmatpush1.bf16.msra.mxu1 %v10234_v6 }
  0x73   :  { %975 = vmatprep.subr.bf16.mxu0 %v10105_v0  ;;  %1132 = vmatprep.subr.bf16.mxu1 %v10105_v0 }
  0x74   :  { %7915 = vmatprep.mubr.msk.bf16.mxu0 %vm205_vm0, %v9082_v47  ;;  %7939 = vmatprep.mubr.msk.bf16.mxu1 %vm205_vm0, %v9085_v48  ;;  %v8043_v47 = vld [vmem:[%s13306_s0 + $0x270] sm:$0xff]  ;;  %v8044_v48 = vld [vmem:[%s13306_s0 + $0x278] sm:$0xff] }
  0x76   :  { %976 = vmatpush1.bf16.msra.mxu0 %v10248_v8  ;;  %1133 = vmatpush1.bf16.msra.mxu1 %v10248_v8 }
  0x77   :  { %977 = vmatprep.subr.bf16.mxu0 %v10105_v0  ;;  %1134 = vmatprep.subr.bf16.mxu1 %v10105_v0 }
  0x79   :  { %632 = vmatmul.mubr.bf16.gmra.mrb[32].mxu0 %v9084_v49  ;;  %827 = vmatmul.mubr.bf16.gmra.mrb[32].mxu1 %v9087_v50  ;;  %v8045_v49 = vld [vmem:[%s13306_s0 + $0x280] sm:$0x77] }
  0x7a   :  { %978 = vmatpush1.bf16.msra.mxu0 %v10257_v9  ;;  %1135 = vmatpush1.bf16.msra.mxu1 %v10257_v9 }
  0x7b   :  { %979 = vmatprep.subr.bf16.mxu0 %v10105_v0  ;;  %1136 = vmatprep.subr.bf16.mxu1 %v10105_v0 }
  0x7c   :  { %7916 = vmatprep.mubr.msk.bf16.mxu0 %vm205_vm0, %v7911_v53  ;;  %7940 = vmatprep.mubr.msk.bf16.mxu1 %vm205_vm0, %v7935_v54 }
  0x7e   :  { %980 = vmatpush1.bf16.msra.mxu0 %v10266_v10  ;;  %1137 = vmatpush1.bf16.msra.mxu1 %v10266_v10 }
  0x7f   :  { %981 = vmatprep.subr.bf16.mxu0 %v10105_v0  ;;  %1138 = vmatprep.subr.bf16.mxu1 %v10105_v0 }
  0x81   :  { %640 = vmatmul.mubr.bf16.gmra.mrb[36].mxu0 %v7910_v55  ;;  %835 = vmatmul.mubr.bf16.gmra.mrb[36].mxu1 %v7934_v56 }
  0x82   :  { %982 = vmatpush1.bf16.msra.mxu0 %v10275_v11  ;;  %1139 = vmatpush1.bf16.msra.mxu1 %v10275_v11 }
  0x83   :  { %983 = vmatprep.subr.bf16.mxu0 %v10105_v0  ;;  %1140 = vmatprep.subr.bf16.mxu1 %v10105_v0 }
  0x84   :  { %7960 = vmatprep.mubr.msk.bf16.mxu0 %vm205_vm0, %v9094_v57  ;;  %7984 = vmatprep.mubr.msk.bf16.mxu1 %vm205_vm0, %v9097_v58  ;;  %v8052_v58 = vcombine.low %v8043_v47, %v8044_v48 }
  0x86   :  { %984 = vmatpush1.bf16.msra.mxu0 %v10284_v12  ;;  %1141 = vmatpush1.bf16.msra.mxu1 %v10284_v12 }
  0x87   :  { %985 = vmatprep.subr.bf16.mxu0 %v10105_v0  ;;  %1142 = vmatprep.subr.bf16.mxu1 %v10105_v0 }
  0x8a   :  { %986 = vmatpush1.bf16.msra.mxu0 %v10293_v13  ;;  %1143 = vmatpush1.bf16.msra.mxu1 %v10293_v13 }
  0x8b   :  { %987 = vmatprep.subr.bf16.mxu0 %v10105_v0  ;;  %1144 = vmatprep.subr.bf16.mxu1 %v10105_v0 }
  0x8e   :  { %988 = vmatpush1.bf16.msra.mxu0 %v10302_v14  ;;  %1145 = vmatpush1.bf16.msra.mxu1 %v10302_v14 }
  0x8f   :  { %1315 = vmatprep.subr.bf16.mxu0 %v10105_v0  ;;  %1508 = vmatprep.subr.bf16.mxu1 %v10105_v0 }
  0x91   :  { %998 = vmatmul.mubr.bf16.vlgmr.msra.gmra.mrb[40].mxu0 %v9092_v59  ;;  %1155 = vmatmul.mubr.bf16.vlgmr.msra.gmra.mrb[40].mxu1 %v9095_v60  ;;  %v8055_v59 = vcombine.high %v8045_v49, %v8045_v49 }
  0x92   :  { %1316 = vmatpush1.bf16.msra.mxu0 %v10196_v1  ;;  %1509 = vmatpush1.bf16.msra.mxu1 %v10196_v1 }
  0x93   :  { %1317 = vmatprep.subr.bf16.mxu0 %v10105_v0  ;;  %1510 = vmatprep.subr.bf16.mxu1 %v10105_v0 }
  0x94   :  { %7961 = vmatprep.mubr.msk.bf16.mxu0 %vm205_vm0, %v9098_v61  ;;  %7985 = vmatprep.mubr.msk.bf16.mxu1 %vm205_vm0, %v9101_v62 }
  0x96   :  { %1318 = vmatpush1.bf16.msra.mxu0 %v10204_v2  ;;  %1511 = vmatpush1.bf16.msra.mxu1 %v10204_v2 }
  0x97   :  { %1319 = vmatprep.subr.bf16.mxu0 %v10105_v0  ;;  %1512 = vmatprep.subr.bf16.mxu1 %v10105_v0 }
  0x99   :  { %1006 = vmatmul.mubr.bf16.gmra.mrb[44].mxu0 %v9100_v63  ;;  %1163 = vmatmul.mubr.bf16.gmra.mrb[44].mxu1 %v9103_v5 }
  0x9a   :  { %1320 = vmatpush1.bf16.msra.mxu0 %v10213_v3  ;;  %1513 = vmatpush1.bf16.msra.mxu1 %v10213_v3 }
  0x9b   :  { %1321 = vmatprep.subr.bf16.mxu0 %v10105_v0  ;;  %1514 = vmatprep.subr.bf16.mxu1 %v10105_v0 }
  0x9c   :  { %7962 = vmatprep.mubr.msk.bf16.mxu0 %vm205_vm0, %v9104_v7  ;;  %7986 = vmatprep.mubr.msk.bf16.mxu1 %vm205_vm0, %v9107_v15 }
  0x9e   :  { %1322 = vmatpush1.bf16.msra.mxu0 %v10222_v4  ;;  %1515 = vmatpush1.bf16.msra.mxu1 %v10222_v4 }
  0x9f   :  { %1323 = vmatprep.subr.bf16.mxu0 %v10105_v0  ;;  %1516 = vmatprep.subr.bf16.mxu1 %v10105_v0 }
  0xa1   :  { %1014 = vmatmul.mubr.bf16.gmra.mrb[48].mxu0 %v9106_v16  ;;  %1171 = vmatmul.mubr.bf16.gmra.mrb[48].mxu1 %v9109_v17 }
  0xa2   :  { %1324 = vmatpush1.bf16.msra.mxu0 %v10234_v6  ;;  %1517 = vmatpush1.bf16.msra.mxu1 %v10234_v6 }
  0xa3   :  { %1325 = vmatprep.subr.bf16.mxu0 %v10105_v0  ;;  %1518 = vmatprep.subr.bf16.mxu1 %v10105_v0 }
  0xa4   :  { %7963 = vmatprep.mubr.msk.bf16.mxu0 %vm205_vm0, %v9110_v18  ;;  %7987 = vmatprep.mubr.msk.bf16.mxu1 %vm205_vm0, %v9113_v19 }
  0xa6   :  { %1326 = vmatpush1.bf16.msra.mxu0 %v10248_v8  ;;  %1519 = vmatpush1.bf16.msra.mxu1 %v10248_v8 }
  0xa7   :  { %1327 = vmatprep.subr.bf16.mxu0 %v10105_v0  ;;  %1520 = vmatprep.subr.bf16.mxu1 %v10105_v0 }
  0xa9   :  { %1022 = vmatmul.mubr.bf16.gmra.mrb[52].mxu0 %v9112_v20  ;;  %1179 = vmatmul.mubr.bf16.gmra.mrb[52].mxu1 %v9115_v21 }
  0xaa   :  { %1328 = vmatpush1.bf16.msra.mxu0 %v10257_v9  ;;  %1521 = vmatpush1.bf16.msra.mxu1 %v10257_v9 }
  0xab   :  { %1329 = vmatprep.subr.bf16.mxu0 %v10105_v0  ;;  %1522 = vmatprep.subr.bf16.mxu1 %v10105_v0 }
  0xac   :  { %7964 = vmatprep.mubr.msk.bf16.mxu0 %vm205_vm0, %v7959_v24  ;;  %7988 = vmatprep.mubr.msk.bf16.mxu1 %vm205_vm0, %v7983_v25  ;;  %v8054_v25 = vcombine.low %v8045_v49, %v8045_v49 }
  0xae   :  { %1330 = vmatpush1.bf16.msra.mxu0 %v10266_v10  ;;  %1523 = vmatpush1.bf16.msra.mxu1 %v10266_v10 }
  0xaf   :  { %1331 = vmatprep.subr.bf16.mxu0 %v10105_v0  ;;  %1524 = vmatprep.subr.bf16.mxu1 %v10105_v0 }
  0xb1   :  { %1030 = vmatmul.mubr.bf16.gmra.mrb[56].mxu0 %v7958_v26  ;;  %1187 = vmatmul.mubr.bf16.gmra.mrb[56].mxu1 %v7982_v27 }
  0xb2   :  { %1332 = vmatpush1.bf16.msra.mxu0 %v10275_v11  ;;  %1525 = vmatpush1.bf16.msra.mxu1 %v10275_v11 }
  0xb3   :  { %1333 = vmatprep.subr.bf16.mxu0 %v10105_v0  ;;  %1526 = vmatprep.subr.bf16.mxu1 %v10105_v0 }
  0xb4   :  { %8008 = vmatprep.mubr.msk.bf16.mxu0 %vm205_vm0, %v9122_v28  ;;  %8032 = vmatprep.mubr.msk.bf16.mxu1 %vm205_vm0, %v9125_v29 }
  0xb6   :  { %1334 = vmatpush1.bf16.msra.mxu0 %v10284_v12  ;;  %1527 = vmatpush1.bf16.msra.mxu1 %v10284_v12 }
  0xb7   :  { %1335 = vmatprep.subr.bf16.mxu0 %v10105_v0  ;;  %1528 = vmatprep.subr.bf16.mxu1 %v10105_v0 }
  0xba   :  { %1336 = vmatpush1.bf16.msra.mxu0 %v10293_v13  ;;  %1529 = vmatpush1.bf16.msra.mxu1 %v10293_v13 }
  0xbb   :  { %1337 = vmatprep.subr.bf16.mxu0 %v10105_v0  ;;  %1530 = vmatprep.subr.bf16.mxu1 %v10105_v0 }
  0xbe   :  { %1338 = vmatpush1.bf16.msra.mxu0 %v10302_v14  ;;  %1531 = vmatpush1.bf16.msra.mxu1 %v10302_v14 }
  0xbf   :  { %1701 = vmatprep.subr.bf16.mxu0 %v10105_v0 }
  0xc1   :  { %1348 = vmatmul.mubr.bf16.vlgmr.msra.gmra.mrb[60].mxu0 %v9120_v30  ;;  %1541 = vmatmul.mubr.bf16.vlgmr.msra.gmra.mrb[60].mxu1 %v9123_v31 }
  0xc2   :  { %8009 = vmatprep.mubr.msk.bf16.mxu0 %vm205_vm0, %v9126_v32  ;;  %8033 = vmatprep.mubr.msk.bf16.mxu1 %vm205_vm0, %v9129_v33 }
  0xc3   :  { %1702 = vmatpush1.bf16.msra.mxu0 %v10196_v1  ;;  %v9134_v1 = vld [vmem:[%s13306_s0 + $0x1d0] ss:$8 sps:$4 sm:$0xff]  }
  0xc4   :  { %1703 = vmatprep.subr.bf16.mxu0 %v10105_v0 }
  0xc7   :  { %1704 = vmatpush1.bf16.msra.mxu0 %v10204_v2  ;;  %v9137_v2 = vld [vmem:[%s13306_s0 + $0x218] ss:$8 sps:$4 sm:$0xff]  }
  0xc8   :  { %1705 = vmatprep.subr.bf16.mxu0 %v10105_v0 }
  0xc9   :  { %1356 = vmatmul.mubr.bf16.gmra.mrb[64].mxu0 %v9128_v34  ;;  %1549 = vmatmul.mubr.bf16.gmra.mrb[64].mxu1 %v9131_v35 }
  0xca   :  { %8010 = vmatprep.mubr.msk.bf16.mxu0 %vm205_vm0, %v9132_v36  ;;  %8034 = vmatprep.mubr.msk.bf16.mxu1 %vm205_vm0, %v9135_v37 }
  0xcb   :  { %1706 = vmatpush1.bf16.msra.mxu0 %v10213_v3  ;;  %v7997_v3 = vld [vmem:[%s13306_s0 + $0x1f0] sm:$0x77] }
  0xcc   :  { %1707 = vmatprep.subr.bf16.mxu0 %v10105_v0  ;;  %v8007_v42 = vcombine.high %v7997_v3, %v7997_v3 }
  0xcf   :  { %1708 = vmatpush1.bf16.msra.mxu0 %v10222_v4  ;;  %v9140_v4 = vld [vmem:[%s13306_s0 + $0x1e0] ss:$8 sps:$4 sm:$0xff]  }
  0xd0   :  { %1709 = vmatprep.subr.bf16.mxu0 %v10105_v0 }
  0xd1   :  { %1364 = vmatmul.mubr.bf16.gmra.mrb[68].mxu0 %v9134_v1  ;;  %1557 = vmatmul.mubr.bf16.gmra.mrb[68].mxu1 %v9137_v2 }
  0xd2   :  { %8011 = vmatprep.mubr.msk.bf16.mxu0 %vm205_vm0, %v9138_v38  ;;  %8035 = vmatprep.mubr.msk.bf16.mxu1 %vm205_vm0, %v9141_v39 }
  0xd3   :  { %1710 = vmatpush1.bf16.msra.mxu0 %v10234_v6  ;;  %v8006_v6 = vcombine.low %v7997_v3, %v7997_v3 }
  0xd4   :  { %1711 = vmatprep.subr.bf16.mxu0 %v10105_v0 }
  0xd7   :  { %1712 = vmatpush1.bf16.msra.mxu0 %v10248_v8  ;;  %v9148_v8 = vld [vmem:[%s13306_s0 + $0x240] ss:$8 sps:$4 sm:$0xff]  }
  0xd8   :  { %1713 = vmatprep.subr.bf16.mxu0 %v10105_v0 }
  0xd9   :  { %1372 = vmatmul.mubr.bf16.gmra.mrb[72].mxu0 %v9140_v4  ;;  %1565 = vmatmul.mubr.bf16.gmra.mrb[72].mxu1 %v9143_v41 }
  0xda   :  { %8012 = vmatprep.mubr.msk.bf16.mxu0 %vm205_vm0, %v8007_v42  ;;  %8036 = vmatprep.mubr.msk.bf16.mxu1 %vm205_vm0, %v8031_v43 }
  0xdb   :  { %1714 = vmatpush1.bf16.msra.mxu0 %v10257_v9  ;;  %v9151_v9 = vld [vmem:[%s13306_s0 + $0x254] ss:$8 sps:$4 sm:$0xff]  }
  0xdc   :  { %1715 = vmatprep.subr.bf16.mxu0 %v10105_v0 }
  0xdf   :  { %1716 = vmatpush1.bf16.msra.mxu0 %v10266_v10  ;;  %v9153_v10 = vld [vmem:[%s13306_s0 + $0x250] ss:$8 sps:$4 sm:$0xff]  }
  0xe0   :  { %1717 = vmatprep.subr.bf16.mxu0 %v10105_v0 }
  0xe1   :  { %1380 = vmatmul.mubr.bf16.gmra.mrb[76].mxu0 %v8006_v6  ;;  %1573 = vmatmul.mubr.bf16.gmra.mrb[76].mxu1 %v8030_v44 }
  0xe2   :  { %8056 = vmatprep.mubr.msk.bf16.mxu0 %vm205_vm0, %v9150_v45 }
  0xe3   :  { %1718 = vmatpush1.bf16.msra.mxu0 %v10275_v11  ;;  %v8041_v11 = vld [vmem:[%s13306_s0 + $0x260] sm:$0xff] }
  0xe4   :  { %1719 = vmatprep.subr.bf16.mxu0 %v10105_v0 }
  0xe7   :  { %1720 = vmatpush1.bf16.msra.mxu0 %v10284_v12  ;;  %v8042_v12 = vld [vmem:[%s13306_s0 + $0x268] sm:$0xff] }
  0xe8   :  { %1721 = vmatprep.subr.bf16.mxu0 %v10105_v0 }
  0xeb   :  { %1722 = vmatpush1.bf16.msra.mxu0 %v10293_v13  ;;  %v8050_v13 = vcombine.low %v8041_v11, %v8042_v12 }
  0xec   :  { %1723 = vmatprep.subr.bf16.mxu0 %v10105_v0  ;;  %v9154_v0 = vld [vmem:[%s13306_s0 + $0x264] ss:$8 sps:$4 sm:$0xff]  }
  0xef   :  { %1724 = vmatpush1.bf16.msra.mxu0 %v10302_v14  ;;  %v9156_v14 = vld [vmem:[%s13306_s0 + $0x274] ss:$8 sps:$4 sm:$0xff]   ;;  %s10106_s0 = smov 32  }
  0xf2   :  { %1734 = vmatmul.mubr.bf16.vlgmr.msra.gmra.mrb[80].mxu0 %v9148_v8 }
  0xf3   :  { %8057 = vmatprep.mubr.msk.bf16.mxu0 %vm205_vm0, %v9151_v9 }
  0xfa   :  { %1742 = vmatmul.mubr.bf16.gmra.mrb[84].mxu0 %v9153_v10 }
  0xfb   :  { %8058 = vmatprep.mubr.msk.bf16.mxu0 %vm205_vm0, %v9154_v0 }
 0x102   :  { %1750 = vmatmul.mubr.bf16.gmra.mrb[88].mxu0 %v8050_v13 }
 0x103   :  { %8059 = vmatprep.mubr.msk.bf16.mxu0 %vm205_vm0, %v9156_v14 }
 0x104   :  { %v255_v50 = vpop.f32.mrb[0].mxu0  ;;  %v414_v51 = vpop.f32.mrb[0].mxu1 }
 0x105   :  { %v256_v52 = vadd.f32 %v10754_v46, %v255_v50  ;;  %v257_v53 = vpop.f32.mrb[1].mxu0  ;;  %v415_v54 = vadd.f32 %v10754_v46, %v414_v51  ;;  %v416_v55 = vpop.f32.mrb[1].mxu1 }
 0x106   :  { %v258_v56 = vpop.f32.mrb[2].mxu0  ;;  %v417_v57 = vpop.f32.mrb[2].mxu1 }
 0x107   :  { %v293_v60 = vmax.f32 %v256_v52, 0.0  ;;  %v452_v61 = vmax.f32 %v415_v54, 0.0  ;;  %v259_v62 = vadd.f32 %v10754_v46, %v258_v56  ;;  %v260_v63 = vpop.f32.mrb[3].mxu0  ;;  %v418_v5 = vadd.f32 %v10754_v46, %v417_v57  ;;  %v419_v7 = vpop.f32.mrb[3].mxu1 }
 0x109   :  { %303 = vst.msk [vmem:[#allocation2] sm:$0xff] %vm302_vm1, %v293_v60  ;;  %v294_v15 = vmax.f32 %v259_v62, 0.0  ;;  %v453_v16 = vmax.f32 %v418_v5, 0.0  ;;  %470 = vrot.lane.b32.xlu1 %v452_v61, %s10106_s0 }
 0x10a   :  { %1758 = vmatmul.mubr.bf16.gmra.mrb[92].mxu0 %v8052_v58 }
 0x10b   :  { %304 = vst.msk [vmem:[#allocation2 + $0x18] sm:$0xff] %vm302_vm1, %v294_v15  ;;  %8060 = vmatprep.mubr.msk.bf16.mxu0 %vm205_vm0, %v8055_v59 }
 0x10c   :  { %v263_v17 = vpop.f32.mrb[4].mxu0  ;;  %v422_v18 = vpop.f32.mrb[4].mxu1 }
 0x10d   :  { %472 = vrot.lane.b32.xlu1 %v453_v16, %s10106_s0  ;;  %v264_v19 = vadd.f32 %v10754_v46, %v263_v17  ;;  %v265_v20 = vpop.f32.mrb[5].mxu0  ;;  %v423_v21 = vadd.f32 %v10754_v46, %v422_v18  ;;  %v424_v22 = vpop.f32.mrb[5].mxu1 }
 0x10e   :  { %v266_v23 = vpop.f32.mrb[6].mxu0  ;;  %v425_v24 = vpop.f32.mrb[6].mxu1 }
 0x10f   :  { %v295_v26 = vmax.f32 %v264_v19, 0.0  ;;  %v267_v27 = vadd.f32 %v10754_v46, %v266_v23  ;;  %v268_v28 = vpop.f32.mrb[7].mxu0  ;;  %v454_v29 = vmax.f32 %v423_v21, 0.0  ;;  %v426_v30 = vadd.f32 %v10754_v46, %v425_v24  ;;  %v427_v31 = vpop.f32.mrb[7].mxu1 }
 0x111   :  { %305 = vst.msk [vmem:[#allocation2 + $0x30] sm:$0xff] %vm302_vm1, %v295_v26  ;;  %v296_v32 = vmax.f32 %v267_v27, 0.0  ;;  %v455_v33 = vmax.f32 %v426_v30, 0.0  ;;  %474 = vrot.lane.b32.xlu0 %v454_v29, %s10106_s0 }
 0x112   :  { %1766 = vmatmul.mubr.bf16.gmra.mrb[96].mxu0 %v8054_v25 }
 0x113   :  { %306 = vst.msk [vmem:[#allocation2 + $0x48] sm:$0xff] %vm302_vm1, %v296_v32  ;;  %476 = vrot.lane.b32.xlu1 %v455_v33, %s10106_s0 }
 0x114   :  { %v271_v34 = vpop.f32.mrb[8].mxu0  ;;  %v430_v35 = vpop.f32.mrb[8].mxu1 }
 0x115   :  { %v272_v36 = vadd.f32 %v10754_v46, %v271_v34  ;;  %v273_v37 = vpop.f32.mrb[9].mxu0  ;;  %v431_v1 = vadd.f32 %v10754_v46, %v430_v35  ;;  %v432_v2 = vpop.f32.mrb[9].mxu1 }
 0x116   :  { %v274_v38 = vpop.f32.mrb[10].mxu0  ;;  %v433_v39 = vpop.f32.mrb[10].mxu1 }
 0x117   :  { %v297_v3 = vmax.f32 %v272_v36, 0.0  ;;  %v275_v40 = vadd.f32 %v10754_v46, %v274_v38  ;;  %v276_v4 = vpop.f32.mrb[11].mxu0  ;;  %v456_v41 = vmax.f32 %v431_v1, 0.0  ;;  %v434_v42 = vadd.f32 %v10754_v46, %v433_v39  ;;  %v435_v43 = vpop.f32.mrb[11].mxu1 }
 0x119   :  { %307 = vst.msk [vmem:[#allocation2 + $0x60] sm:$0xff] %vm302_vm1, %v297_v3  ;;  %v298_v6 = vmax.f32 %v275_v40, 0.0  ;;  %v457_v44 = vmax.f32 %v434_v42, 0.0  ;;  %478 = vrot.lane.b32.xlu0 %v456_v41, %s10106_s0 }
 0x11b   :  { %308 = vst.msk [vmem:[#allocation2 + $0x78] sm:$0xff] %vm302_vm1, %v298_v6  ;;  %480 = vrot.lane.b32.xlu1 %v457_v44, %s10106_s0 }
 0x11c   :  { %v279_v45 = vpop.f32.mrb[12].mxu0  ;;  %v438_v8 = vpop.f32.mrb[12].mxu1 }
 0x11d   :  { %v280_v9 = vadd.f32 %v10754_v46, %v279_v45  ;;  %v281_v10 = vpop.f32.mrb[13].mxu0  ;;  %v439_v0 = vadd.f32 %v10754_v46, %v438_v8  ;;  %v440_v11 = vpop.f32.mrb[13].mxu1 }
 0x11e   :  { %v282_v12 = vpop.f32.mrb[14].mxu0  ;;  %v441_v13 = vpop.f32.mrb[14].mxu1 }
 0x11f   :  { %v299_v14 = vmax.f32 %v280_v9, 0.0  ;;  %v283_v47 = vadd.f32 %v10754_v46, %v282_v12  ;;  %v284_v48 = vpop.f32.mrb[15].mxu0  ;;  %v458_v49 = vmax.f32 %v439_v0, 0.0  ;;  %v442_v50 = vadd.f32 %v10754_v46, %v441_v13  ;;  %v443_v51 = vpop.f32.mrb[15].mxu1 }
 0x121   :  { %309 = vst.msk [vmem:[#allocation2 + $0x90] sm:$0xff] %vm302_vm1, %v299_v14  ;;  %v300_v52 = vmax.f32 %v283_v47, 0.0  ;;  %v459_v53 = vmax.f32 %v442_v50, 0.0  ;;  %482 = vrot.lane.b32.xlu0 %v458_v49, %s10106_s0 }
 0x123   :  { %310 = vst.msk [vmem:[#allocation2 + $0xa8] sm:$0xff] %vm302_vm1, %v300_v52  ;;  %484 = vrot.lane.b32.xlu1 %v459_v53, %s10106_s0 }
 0x124   :  { %v287_v54 = vpop.f32.mrb[16].mxu0  ;;  %v10799_v55 = vpop.f32.mrb[16].mxu1 }
 0x125   :  { %v288_v56 = vadd.f32 %v10754_v46, %v287_v54  ;;  %v289_v57 = vpop.f32.mrb[17].mxu0  ;;  %v448_v58 = vpop.f32.mrb[17].mxu1 }
 0x126   :  { %v290_v59 = vpop.f32.mrb[18].mxu0  ;;  %v449_v60 = vpop.f32.mrb[18].mxu1 }
 0x127   :  { %v301_v61 = vmax.f32 %v288_v56, 0.0  ;;  %v291_v62 = vpop.f32.mrb[19].mxu0  ;;  %v450_v63 = vpop.f32.mrb[19].mxu1 }
 0x129   :  { %312 = vst.msk [vmem:[#allocation2 + $0xc0] sm:$0x3f] %vm311_vm2, %v301_v61 }
 0x134   :  { %v609_v5 = vpop.f32.mrb[20].mxu0  ;;  %v804_v7 = vpop.f32.mrb[20].mxu1 }
 0x135   :  { %v610_v15 = vadd.f32 %v10754_v46, %v609_v5  ;;  %v611_v16 = vpop.f32.mrb[21].mxu0  ;;  %v805_v17 = vadd.f32 %v10754_v46, %v804_v7  ;;  %v806_v18 = vpop.f32.mrb[21].mxu1 }
 0x136   :  { %v612_v19 = vpop.f32.mrb[22].mxu0  ;;  %v807_v20 = vpop.f32.mrb[22].mxu1 }
 0x137   :  { %v647_v21 = vmax.f32 %v610_v15, 0.0  ;;  %v613_v22 = vadd.f32 %v10754_v46, %v612_v19  ;;  %v614_v23 = vpop.f32.mrb[23].mxu0  ;;  %v808_v24 = vadd.f32 %v10754_v46, %v807_v20  ;;  %v809_v25 = vpop.f32.mrb[23].mxu1  ;;  %v842_v27 = vmax.f32 %v805_v17, 0.0 }
 0x139   :  { %v648_v26 = vmax.f32 %v613_v22, 0.0  ;;  %665 = vrot.lane.b32.xlu0 %v647_v21, %s10107_s20  ;;  %v843_v28 = vmax.f32 %v808_v24, 0.0 }
 0x13b   :  { %667 = vrot.lane.b32.xlu1 %v648_v26, %s10107_s20 }
 0x13c   :  { %v617_v29 = vpop.f32.mrb[24].mxu0  ;;  %v812_v30 = vpop.f32.mrb[24].mxu1 }
 0x13d   :  { %860 = vrot.lane.b32.xlu0 %v842_v27, %s10108_s21  ;;  %v618_v31 = vadd.f32 %v10754_v46, %v617_v29  ;;  %v619_v32 = vpop.f32.mrb[25].mxu0  ;;  %v813_v33 = vadd.f32 %v10754_v46, %v812_v30  ;;  %v814_v34 = vpop.f32.mrb[25].mxu1 }
 0x13e   :  { %v620_v35 = vpop.f32.mrb[26].mxu0  ;;  %v815_v36 = vpop.f32.mrb[26].mxu1 }
 0x13f   :  { %862 = vrot.lane.b32.xlu1 %v843_v28, %s10108_s21  ;;  %v649_v37 = vmax.f32 %v618_v31, 0.0  ;;  %v621_v1 = vadd.f32 %v10754_v46, %v620_v35  ;;  %v622_v2 = vpop.f32.mrb[27].mxu0  ;;  %v816_v38 = vadd.f32 %v10754_v46, %v815_v36  ;;  %v817_v39 = vpop.f32.mrb[27].mxu1  ;;  %v844_v40 = vmax.f32 %v813_v33, 0.0 }
 0x141   :  { %v650_v3 = vmax.f32 %v621_v1, 0.0  ;;  %669 = vrot.lane.b32.xlu0 %v649_v37, %s10107_s20  ;;  %v845_v4 = vmax.f32 %v816_v38, 0.0  ;;  %v9160_v37 = vld [vmem:[%s13308_s3 + $0x40] sm:$0xff]  }
 0x142   :  { %8742 = vmatprep.subr.bf16.mxu1 %v9160_v37 }
 0x143   :  { %671 = vrot.lane.b32.xlu1 %v650_v3, %s10107_s20 }
 0x144   :  { %v625_v41 = vpop.f32.mrb[28].mxu0  ;;  %v820_v42 = vpop.f32.mrb[28].mxu1 }
 0x145   :  { %v626_v43 = vadd.f32 %v10754_v46, %v625_v41  ;;  %v627_v6 = vpop.f32.mrb[29].mxu0  ;;  %v821_v44 = vadd.f32 %v10754_v46, %v820_v42  ;;  %864 = vrot.lane.b32.xlu0 %v844_v40, %s10108_s21  ;;  %v822_v45 = vpop.f32.mrb[29].mxu1 }
 0x146   :  { %v628_v8 = vpop.f32.mrb[30].mxu0  ;;  %v823_v9 = vpop.f32.mrb[30].mxu1  ;;  %v9161_v6 = vld [vmem:[%s13308_s3] sm:$0xff]   ;;  %v9163_v45 = vld [vmem:[%s13308_s3 + $0x8] sm:$0xff]  }
 0x147   :  { %v651_v10 = vmax.f32 %v626_v43, 0.0  ;;  %v629_v0 = vadd.f32 %v10754_v46, %v628_v8  ;;  %v630_v11 = vpop.f32.mrb[31].mxu0  ;;  %866 = vrot.lane.b32.xlu1 %v845_v4, %s10108_s21  ;;  %v824_v12 = vadd.f32 %v10754_v46, %v823_v9  ;;  %v825_v13 = vpop.f32.mrb[31].mxu1  ;;  %v846_v47 = vmax.f32 %v821_v44, 0.0  ;;  %v9162_v44 = vld [vmem:[%s13308_s3 + $0x48] sm:$0xff]   ;;  %8743 = vmatpush3.bf16.msra.mxu1 %v9161_v6 }
 0x148   :  { %8744 = vmatprep.subr.bf16.mxu1 %v9162_v44 }
 0x149   :  { %v652_v14 = vmax.f32 %v629_v0, 0.0  ;;  %673 = vrot.lane.b32.xlu0 %v651_v10, %s10107_s20  ;;  %v847_v48 = vmax.f32 %v824_v12, 0.0 }
 0x14b   :  { %675 = vrot.lane.b32.xlu1 %v652_v14, %s10107_s20  ;;  %8745 = vmatpush3.bf16.msra.mxu1 %v9163_v45 }
 0x14c   :  { %v633_v49 = vpop.f32.mrb[32].mxu0  ;;  %v828_v50 = vpop.f32.mrb[32].mxu1 }
 0x14d   :  { %v634_v51 = vadd.f32 %v10754_v46, %v633_v49  ;;  %v635_v52 = vpop.f32.mrb[33].mxu0  ;;  %v829_v53 = vadd.f32 %v10754_v46, %v828_v50  ;;  %868 = vrot.lane.b32.xlu0 %v846_v47, %s10108_s21  ;;  %v830_v54 = vpop.f32.mrb[33].mxu1 }
 0x14e   :  { %v636_v56 = vpop.f32.mrb[34].mxu0  ;;  %v831_v57 = vpop.f32.mrb[34].mxu1 }
 0x14f   :  { %v653_v58 = vmax.f32 %v634_v51, 0.0  ;;  %v637_v59 = vadd.f32 %v10754_v46, %v636_v56  ;;  %v638_v60 = vpop.f32.mrb[35].mxu0  ;;  %870 = vrot.lane.b32.xlu1 %v847_v48, %s10108_s21  ;;  %v832_v61 = vadd.f32 %v10754_v46, %v831_v57  ;;  %v833_v62 = vpop.f32.mrb[35].mxu1  ;;  %v848_v5 = vmax.f32 %v829_v53, 0.0  ;;  %v9164_v56 = vld [vmem:[%s13308_s3 + $0x50] sm:$0xff]  }
 0x150   :  { %v9165_v57 = vld [vmem:[%s13308_s3 + $0x10] sm:$0xff]   ;;  %8746 = vmatprep.subr.bf16.mxu1 %v9164_v56 }
 0x151   :  { %v654_v63 = vmax.f32 %v637_v59, 0.0  ;;  %677 = vrot.lane.b32.xlu0 %v653_v58, %s10107_s20  ;;  %v849_v7 = vmax.f32 %v832_v61, 0.0  ;;  %v9166_v58 = vld [vmem:[%s13308_s3 + $0x58] sm:$0xff]   ;;  %8747 = vmatpush3.bf16.msra.mxu1 %v9165_v57 }
 0x152   :  { %8748 = vmatprep.subr.bf16.mxu1 %v9166_v58 }
 0x153   :  { %679 = vrot.lane.b32.xlu1 %v654_v63, %s10107_s20 }
 0x154   :  { %v10833_v15 = vpop.f32.mrb[36].mxu0  ;;  %v10835_v16 = vpop.f32.mrb[36].mxu1 }
 0x155   :  { %v643_v17 = vpop.f32.mrb[37].mxu0  ;;  %872 = vrot.lane.b32.xlu0 %v848_v5, %s10108_s21  ;;  %v838_v18 = vpop.f32.mrb[37].mxu1 }
 0x156   :  { %v644_v19 = vpop.f32.mrb[38].mxu0  ;;  %v839_v20 = vpop.f32.mrb[38].mxu1 }
 0x157   :  { %v645_v21 = vpop.f32.mrb[39].mxu0  ;;  %874 = vrot.lane.b32.xlu1 %v849_v7, %s10108_s21  ;;  %v840_v22 = vpop.f32.mrb[39].mxu1  ;;  %v9167_v7 = vld [vmem:[%s13308_s3 + $0x18] sm:$0xff]  }
 0x158   :  { %v9168_v22 = vld [vmem:[%s13308_s3 + $0x60] sm:$0xff]   ;;  %8749 = vmatpush3.bf16.msra.mxu1 %v9167_v7 }
 0x159   :  { %8750 = vmatprep.subr.bf16.mxu1 %v9168_v22 }
 0x164   :  { %v999_v23 = vpop.f32.mrb[40].mxu0  ;;  %v1156_v24 = vpop.f32.mrb[40].mxu1 }
 0x165   :  { %v1000_v25 = vadd.f32 %v10754_v46, %v999_v23  ;;  %v1001_v26 = vpop.f32.mrb[41].mxu0  ;;  %v1157_v27 = vadd.f32 %v10754_v46, %v1156_v24  ;;  %v1158_v28 = vpop.f32.mrb[41].mxu1 }
 0x166   :  { %v1002_v29 = vpop.f32.mrb[42].mxu0  ;;  %v1159_v30 = vpop.f32.mrb[42].mxu1 }
 0x167   :  { %v1037_v31 = vmax.f32 %v1000_v25, 0.0  ;;  %v1194_v32 = vmax.f32 %v1157_v27, 0.0  ;;  %v1003_v33 = vadd.f32 %v10754_v46, %v1002_v29  ;;  %v1004_v34 = vpop.f32.mrb[43].mxu0  ;;  %v1160_v35 = vadd.f32 %v10754_v46, %v1159_v30  ;;  %v1161_v36 = vpop.f32.mrb[43].mxu1 }
 0x169   :  { %1046 = vst.msk [vmem:[#allocation2 + $0x8] sm:$0xff] %vm302_vm1, %v1037_v31  ;;  %v1038_v1 = vmax.f32 %v1003_v33, 0.0  ;;  %v1195_v2 = vmax.f32 %v1160_v35, 0.0  ;;  %1212 = vrot.lane.b32.xlu0 %v1194_v32, %s10106_s0 }
 0x16b   :  { %1047 = vst.msk [vmem:[#allocation2 + $0x20] sm:$0xff] %vm302_vm1, %v1038_v1 }
 0x16c   :  { %v1007_v38 = vpop.f32.mrb[44].mxu0  ;;  %v1164_v39 = vpop.f32.mrb[44].mxu1 }
 0x16d   :  { %1214 = vrot.lane.b32.xlu0 %v1195_v2, %s10106_s0  ;;  %v1008_v3 = vadd.f32 %v10754_v46, %v1007_v38  ;;  %v1009_v40 = vpop.f32.mrb[45].mxu0  ;;  %v1165_v4 = vadd.f32 %v10754_v46, %v1164_v39  ;;  %v1166_v41 = vpop.f32.mrb[45].mxu1 }
 0x16e   :  { %v1010_v42 = vpop.f32.mrb[46].mxu0  ;;  %v1167_v43 = vpop.f32.mrb[46].mxu1 }
 0x16f   :  { %v1039_v8 = vmax.f32 %v1008_v3, 0.0  ;;  %v1011_v9 = vadd.f32 %v10754_v46, %v1010_v42  ;;  %v1012_v10 = vpop.f32.mrb[47].mxu0  ;;  %v1196_v0 = vmax.f32 %v1165_v4, 0.0  ;;  %v1168_v11 = vadd.f32 %v10754_v46, %v1167_v43  ;;  %v1169_v12 = vpop.f32.mrb[47].mxu1 }
 0x170   :  { %v9169_v10 = vld [vmem:[%s13308_s3 + $0x20] sm:$0xff]   ;;  %v9171_v12 = vld [vmem:[%s13308_s3 + $0x28] sm:$0xff]  }
 0x171   :  { %1048 = vst.msk [vmem:[#allocation2 + $0x38] sm:$0xff] %vm302_vm1, %v1039_v8  ;;  %v1040_v13 = vmax.f32 %v1011_v9, 0.0  ;;  %v1197_v14 = vmax.f32 %v1168_v11, 0.0  ;;  %1216 = vrot.lane.b32.xlu0 %v1196_v0, %s10106_s0  ;;  %8751 = vmatpush3.bf16.msra.mxu1 %v9169_v10  ;;  %v9170_v11 = vld [vmem:[%s13308_s3 + $0x68] sm:$0xff]  }
 0x172   :  { %8752 = vmatprep.subr.bf16.mxu1 %v9170_v11 }
 0x173   :  { %1049 = vst.msk [vmem:[#allocation2 + $0x50] sm:$0xff] %vm302_vm1, %v1040_v13  ;;  %1218 = vrot.lane.b32.xlu1 %v1197_v14, %s10106_s0  ;;  %v9172_v14 = vld [vmem:[%s13308_s3 + $0x70] sm:$0xff]  }
 0x174   :  { %v1015_v47 = vpop.f32.mrb[48].mxu0  ;;  %v1172_v48 = vpop.f32.mrb[48].mxu1 }
 0x175   :  { %v1016_v49 = vadd.f32 %v10754_v46, %v1015_v47  ;;  %v1017_v50 = vpop.f32.mrb[49].mxu0  ;;  %v1173_v51 = vadd.f32 %v10754_v46, %v1172_v48  ;;  %v1174_v52 = vpop.f32.mrb[49].mxu1  ;;  %8753 = vmatpush3.bf16.msra.mxu1 %v9171_v12 }
 0x176   :  { %v1018_v53 = vpop.f32.mrb[50].mxu0  ;;  %v1175_v54 = vpop.f32.mrb[50].mxu1  ;;  %8754 = vmatprep.subr.bf16.mxu1 %v9172_v14 }
 0x177   :  { %v1041_v59 = vmax.f32 %v1016_v49, 0.0  ;;  %v1019_v60 = vadd.f32 %v10754_v46, %v1018_v53  ;;  %v1020_v61 = vpop.f32.mrb[51].mxu0  ;;  %v1198_v62 = vmax.f32 %v1173_v51, 0.0  ;;  %v1176_v63 = vadd.f32 %v10754_v46, %v1175_v54  ;;  %v1177_v5 = vpop.f32.mrb[51].mxu1  ;;  %v9173_v49 = vld [vmem:[%s13308_s3 + $0x30] sm:$0xff]  }
 0x178   :  { %v9174_v61 = vld [vmem:[%s13308_s3 + $0x78] sm:$0xff]  }
 0x179   :  { %1050 = vst.msk [vmem:[#allocation2 + $0x68] sm:$0xff] %vm302_vm1, %v1041_v59  ;;  %v1042_v17 = vmax.f32 %v1019_v60, 0.0  ;;  %v1199_v18 = vmax.f32 %v1176_v63, 0.0  ;;  %1220 = vrot.lane.b32.xlu0 %v1198_v62, %s10106_s0  ;;  %8755 = vmatpush3.bf16.msra.mxu1 %v9173_v49  ;;  %v9175_v63 = vld [vmem:[%s13308_s3 + $0x38] sm:$0xff]  }
 0x17a   :  { %8756 = vmatprep.subr.bf16.mxu1 %v9174_v61 }
 0x17b   :  { %1051 = vst.msk [vmem:[#allocation2 + $0x80] sm:$0xff] %vm302_vm1, %v1042_v17  ;;  %v471_v19 = vpop.permute.xlu1 %470  ;;  %1222 = vrot.lane.b32.xlu1 %v1199_v18, %s10106_s0 }
 0x17c   :  { %498 = vst.msk [vmem:[#allocation2] sm:$0xff] %vm497_vm3, %v471_v19  ;;  %v1023_v20 = vpop.f32.mrb[52].mxu0  ;;  %v1180_v21 = vpop.f32.mrb[52].mxu1 }
 0x17d   :  { %v1024_v23 = vadd.f32 %v10754_v46, %v1023_v20  ;;  %v1025_v24 = vpop.f32.mrb[53].mxu0  ;;  %v1181_v25 = vadd.f32 %v10754_v46, %v1180_v21  ;;  %v1182_v26 = vpop.f32.mrb[53].mxu1  ;;  %8757 = vmatpush3.bf16.msra.mxu1 %v9175_v63 }
 0x17e   :  { %v1026_v27 = vpop.f32.mrb[54].mxu0  ;;  %v1183_v28 = vpop.f32.mrb[54].mxu1 }
 0x17f   :  { %v473_v29 = vpop.permute.xlu1 %472  ;;  %v1043_v30 = vmax.f32 %v1024_v23, 0.0  ;;  %v1027_v31 = vadd.f32 %v10754_v46, %v1026_v27  ;;  %v1028_v32 = vpop.f32.mrb[55].mxu0  ;;  %v1200_v33 = vmax.f32 %v1181_v25, 0.0  ;;  %v1184_v34 = vadd.f32 %v10754_v46, %v1183_v28 }
 0x180   :  { %499 = vst.msk [vmem:[#allocation2 + $0x18] sm:$0xff] %vm497_vm3, %v473_v29  ;;  %v1185_v35 = vpop.f32.mrb[55].mxu1 }
 0x181   :  { %1052 = vst.msk [vmem:[#allocation2 + $0x98] sm:$0xff] %vm302_vm1, %v1043_v30  ;;  %v1044_v36 = vmax.f32 %v1027_v31, 0.0  ;;  %v1201_v37 = vmax.f32 %v1184_v34, 0.0  ;;  %1224 = vrot.lane.b32.xlu0 %v1200_v33, %s10106_s0  ;;  %v10109_v31 = vmov 0.0  }
 0x182   :  { %8923 = vmatprep.subr.bf16.mxu1 %v10109_v31 }
 0x183   :  { %1053 = vst.msk [vmem:[#allocation2 + $0xb0] sm:$0xff] %vm302_vm1, %v1044_v36  ;;  %1226 = vrot.lane.b32.xlu1 %v1201_v37, %s10106_s0  ;;  %v475_v1 = vpop.permute.xlu0 %474 }
 0x184   :  { %v1031_v2 = vpop.f32.mrb[56].mxu0  ;;  %v1188_v38 = vpop.f32.mrb[56].mxu1  ;;  %500 = vst.msk [vmem:[#allocation2 + $0x30] sm:$0xff] %vm497_vm3, %v475_v1 }
 0x185   :  { %v1032_v39 = vadd.f32 %v10754_v46, %v1031_v2  ;;  %v1033_v3 = vpop.f32.mrb[57].mxu0  ;;  %v1189_v40 = vadd.f32 %v10754_v46, %v1188_v38  ;;  %v1190_v4 = vpop.f32.mrb[57].mxu1 }
 0x186   :  { %v1034_v41 = vpop.f32.mrb[58].mxu0  ;;  %v1191_v42 = vpop.f32.mrb[58].mxu1 }
 0x187   :  { %v1045_v43 = vmax.f32 %v1032_v39, 0.0  ;;  %v1035_v6 = vpop.f32.mrb[59].mxu0  ;;  %v1202_v44 = vmax.f32 %v1189_v40, 0.0  ;;  %v1192_v45 = vpop.f32.mrb[59].mxu1 }
 0x188   :  { %v477_v8 = vpop.permute.xlu1 %476 }
 0x189   :  { %1054 = vst.msk [vmem:[#allocation2 + $0xc8] sm:$0x3f] %vm311_vm2, %v1045_v43  ;;  %1228 = vrot.lane.b32.xlu0 %v1202_v44, %s10106_s0 }
 0x18a   :  { %501 = vst.msk [vmem:[#allocation2 + $0x48] sm:$0xff] %vm497_vm3, %v477_v8 }
 0x18b   :  { %v479_v9 = vpop.permute.xlu0 %478 }
 0x18c   :  { %502 = vst.msk [vmem:[#allocation2 + $0x60] sm:$0xff] %vm497_vm3, %v479_v9 }
 0x18d   :  { %v481_v0 = vpop.permute.xlu1 %480 }
 0x18e   :  { %503 = vst.msk [vmem:[#allocation2 + $0x78] sm:$0xff] %vm497_vm3, %v481_v0 }
 0x193   :  { %v483_v13 = vpop.permute.xlu0 %482 }
 0x194   :  { %v1349_v47 = vpop.f32.mrb[60].mxu0  ;;  %v1542_v48 = vpop.f32.mrb[60].mxu1  ;;  %504 = vst.msk [vmem:[#allocation2 + $0x90] sm:$0xff] %vm497_vm3, %v483_v13 }
 0x195   :  { %v1350_v50 = vadd.f32 %v10754_v46, %v1349_v47  ;;  %v1351_v51 = vpop.f32.mrb[61].mxu0  ;;  %v1543_v52 = vadd.f32 %v10754_v46, %v1542_v48  ;;  %v1544_v53 = vpop.f32.mrb[61].mxu1 }
 0x196   :  { %v1352_v54 = vpop.f32.mrb[62].mxu0  ;;  %v1545_v56 = vpop.f32.mrb[62].mxu1 }
 0x197   :  { %v1387_v57 = vmax.f32 %v1350_v50, 0.0  ;;  %v1353_v58 = vadd.f32 %v10754_v46, %v1352_v54  ;;  %v1354_v59 = vpop.f32.mrb[63].mxu0  ;;  %v1547_v60 = vpop.f32.mrb[63].mxu1  ;;  %v1580_v5 = vmax.f32 %v1543_v52, 0.0  ;;  %v1546_v17 = vadd.f32 %v10754_v46, %v1545_v56 }
 0x198   :  { %v485_v62 = vpop.permute.xlu1 %484 }
 0x199   :  { %v1388_v7 = vmax.f32 %v1353_v58, 0.0  ;;  %1405 = vrot.lane.b32.xlu0 %v1387_v57, %s10107_s20  ;;  %505 = vst.msk [vmem:[#allocation2 + $0xa8] sm:$0xff] %vm497_vm3, %v485_v62  ;;  %v1581_v20 = vmax.f32 %v1546_v17, 0.0  ;;  %v447_v62 = vadd.f32 %v10754_v46, %v10799_v55 }
 0x19b   :  { %1407 = vrot.lane.b32.xlu1 %v1388_v7, %s10107_s20 }
 0x19c   :  { %v1357_v18 = vpop.f32.mrb[64].mxu0  ;;  %v1550_v19 = vpop.f32.mrb[64].mxu1 }
 0x19d   :  { %v1358_v21 = vadd.f32 %v10754_v46, %v1357_v18  ;;  %v1359_v22 = vpop.f32.mrb[65].mxu0  ;;  %v1551_v23 = vadd.f32 %v10754_v46, %v1550_v19  ;;  %1598 = vrot.lane.b32.xlu0 %v1580_v5, %s10108_s21  ;;  %v1552_v24 = vpop.f32.mrb[65].mxu1 }
 0x19e   :  { %v1360_v25 = vpop.f32.mrb[66].mxu0  ;;  %v1553_v26 = vpop.f32.mrb[66].mxu1 }
 0x19f   :  { %v1389_v27 = vmax.f32 %v1358_v21, 0.0  ;;  %v1361_v28 = vadd.f32 %v10754_v46, %v1360_v25  ;;  %v1362_v29 = vpop.f32.mrb[67].mxu0  ;;  %1600 = vrot.lane.b32.xlu1 %v1581_v20, %s10108_s21  ;;  %v1555_v30 = vpop.f32.mrb[67].mxu1  ;;  %v1582_v32 = vmax.f32 %v1551_v23, 0.0  ;;  %v1554_v34 = vadd.f32 %v10754_v46, %v1553_v26 }
 0x1a0   :  { %v460_v25 = vmax.f32 %v447_v62, 0.0  ;;  %v642_v26 = vadd.f32 %v10754_v46, %v10833_v15 }
 0x1a1   :  { %v1390_v33 = vmax.f32 %v1361_v28, 0.0  ;;  %1409 = vrot.lane.b32.xlu0 %v1389_v27, %s10107_s20  ;;  %v1583_v37 = vmax.f32 %v1554_v34, 0.0 }
 0x1a2   :  { %v655_v30 = vmax.f32 %v642_v26, 0.0 }
 0x1a3   :  { %1411 = vrot.lane.b32.xlu1 %v1390_v33, %s10107_s20 }
 0x1a4   :  { %v1365_v35 = vpop.f32.mrb[68].mxu0  ;;  %v1558_v36 = vpop.f32.mrb[68].mxu1 }
 0x1a5   :  { %v1366_v1 = vadd.f32 %v10754_v46, %v1365_v35  ;;  %v1367_v2 = vpop.f32.mrb[69].mxu0  ;;  %v1559_v38 = vadd.f32 %v10754_v46, %v1558_v36  ;;  %1602 = vrot.lane.b32.xlu0 %v1582_v32, %s10108_s21  ;;  %v1560_v39 = vpop.f32.mrb[69].mxu1  ;;  %v837_v32 = vadd.f32 %v10754_v46, %v10835_v16 }
 0x1a6   :  { %v1368_v3 = vpop.f32.mrb[70].mxu0  ;;  %v1561_v40 = vpop.f32.mrb[70].mxu1 }
 0x1a7   :  { %v1391_v4 = vmax.f32 %v1366_v1, 0.0  ;;  %v1369_v41 = vadd.f32 %v10754_v46, %v1368_v3  ;;  %v1370_v42 = vpop.f32.mrb[71].mxu0  ;;  %1604 = vrot.lane.b32.xlu1 %v1583_v37, %s10108_s21  ;;  %v1563_v43 = vpop.f32.mrb[71].mxu1  ;;  %v1584_v6 = vmax.f32 %v1559_v38, 0.0  ;;  %v1562_v45 = vadd.f32 %v10754_v46, %v1561_v40  ;;  %v10104_v40 = vld [vmem:[%s13307_s2] ss:$0 sm:$0xff] }
 0x1a8   :  { %v850_v34 = vmax.f32 %v837_v32, 0.0 }
 0x1a9   :  { %v1392_v44 = vmax.f32 %v1369_v41, 0.0  ;;  %1413 = vrot.lane.b32.xlu0 %v1391_v4, %s10107_s20  ;;  %v1585_v0 = vmax.f32 %v1562_v45, 0.0 }
 0x1ab   :  { %1415 = vrot.lane.b32.xlu1 %v1392_v44, %s10107_s20  ;;  %v666_v8 = vpop.permute.xlu0 %665 }
 0x1ac   :  { %v1373_v9 = vpop.f32.mrb[72].mxu0  ;;  %693 = vst.msk [vmem:[#allocation2] sm:$0xff] %vm692_vm4, %v666_v8  ;;  %v1566_v10 = vpop.f32.mrb[72].mxu1 }
 0x1ad   :  { %v1374_v11 = vadd.f32 %v10754_v46, %v1373_v9  ;;  %v1375_v12 = vpop.f32.mrb[73].mxu0  ;;  %v1567_v13 = vadd.f32 %v10754_v46, %v1566_v10  ;;  %v668_v14 = vpop.permute.xlu1 %667  ;;  %1606 = vrot.lane.b32.xlu0 %v1584_v6, %s10108_s21 }
 0x1ae   :  { %694 = vst.msk [vmem:[#allocation2 + $0x18] sm:$0xff] %vm692_vm4, %v668_v14  ;;  %v1376_v47 = vpop.f32.mrb[74].mxu0  ;;  %v1568_v48 = vpop.f32.mrb[73].mxu1 }
 0x1af   :  { %v1393_v49 = vmax.f32 %v1374_v11, 0.0  ;;  %v1377_v50 = vadd.f32 %v10754_v46, %v1376_v47  ;;  %v1378_v51 = vpop.f32.mrb[75].mxu0  ;;  %v1569_v52 = vpop.f32.mrb[74].mxu1  ;;  %1608 = vrot.lane.b32.xlu1 %v1585_v0, %s10108_s21  ;;  %v1586_v56 = vmax.f32 %v1567_v13, 0.0 }
 0x1b0   :  { %v1571_v53 = vpop.f32.mrb[75].mxu1  ;;  %v861_v54 = vpop.permute.xlu0 %860  ;;  %v1570_v58 = vadd.f32 %v10754_v46, %v1569_v52 }
 0x1b1   :  { %v1394_v57 = vmax.f32 %v1377_v50, 0.0  ;;  %888 = vst.msk [vmem:[#allocation2] sm:$0xff] %vm887_vm5, %v861_v54  ;;  %v863_v59 = vpop.permute.xlu1 %862  ;;  %1417 = vrot.lane.b32.xlu0 %v1393_v49, %s10107_s20 }
 0x1b2   :  { %889 = vst.msk [vmem:[#allocation2 + $0x18] sm:$0xff] %vm887_vm5, %v863_v59  ;;  %v1587_v63 = vmax.f32 %v1570_v58, 0.0 }
 0x1b3   :  { %1419 = vrot.lane.b32.xlu1 %v1394_v57, %s10107_s20 }
 0x1b4   :  { %v1381_v60 = vpop.f32.mrb[76].mxu0  ;;  %v1574_v61 = vpop.f32.mrb[76].mxu1 }
 0x1b5   :  { %1610 = vrot.lane.b32.xlu0 %v1586_v56, %s10108_s21  ;;  %v1382_v5 = vadd.f32 %v10754_v46, %v1381_v60  ;;  %v1383_v7 = vpop.f32.mrb[77].mxu0  ;;  %v1575_v17 = vadd.f32 %v10754_v46, %v1574_v61  ;;  %v1576_v18 = vpop.f32.mrb[77].mxu1 }
 0x1b6   :  { %v1384_v19 = vpop.f32.mrb[78].mxu0  ;;  %v1577_v20 = vpop.f32.mrb[78].mxu1 }
 0x1b7   :  { %v1395_v21 = vmax.f32 %v1382_v5, 0.0  ;;  %1612 = vrot.lane.b32.xlu1 %v1587_v63, %s10108_s21  ;;  %v1385_v22 = vpop.f32.mrb[79].mxu0  ;;  %v672_v23 = vpop.permute.xlu1 %671  ;;  %v1588_v27 = vmax.f32 %v1575_v17, 0.0 }
 0x1b8   :  { %696 = vst.msk [vmem:[#allocation2 + $0x48] sm:$0xff] %vm692_vm4, %v672_v23  ;;  %v670_v24 = vpop.permute.xlu0 %669  ;;  %v1578_v55 = vpop.f32.mrb[79].mxu1 }
 0x1b9   :  { %695 = vst.msk [vmem:[#allocation2 + $0x30] sm:$0xff] %vm692_vm4, %v670_v24  ;;  %1421 = vrot.lane.b32.xlu0 %v1395_v21, %s10107_s20 }
 0x1bb   :  { %486 = vrot.lane.b32.xlu1 %v460_v25, %s10106_s0  ;;  %v867_v28 = vpop.permute.xlu1 %866 }
 0x1bc   :  { %891 = vst.msk [vmem:[#allocation2 + $0x48] sm:$0xff] %vm887_vm5, %v867_v28  ;;  %v865_v29 = vpop.permute.xlu0 %864 }
 0x1bd   :  { %890 = vst.msk [vmem:[#allocation2 + $0x30] sm:$0xff] %vm887_vm5, %v865_v29  ;;  %1614 = vrot.lane.b32.xlu0 %v1588_v27, %s10108_s21 }
 0x1bf   :  { %681 = vrot.lane.b32.xlu1 %v655_v30, %s10107_s20  ;;  %v676_v15 = vpop.permute.xlu1 %675 }
 0x1c0   :  { %698 = vst.msk [vmem:[#allocation2 + $0x78] sm:$0xff] %vm692_vm4, %v676_v15  ;;  %v674_v33 = vpop.permute.xlu0 %673 }
 0x1c1   :  { %697 = vst.msk [vmem:[#allocation2 + $0x60] sm:$0xff] %vm692_vm4, %v674_v33  ;;  %v1791_v33 = vld [vmem:[#allocation2] sm:$0xff] }
 0x1c3   :  { %876 = vrot.lane.b32.xlu1 %v850_v34, %s10108_s21  ;;  %v871_v35 = vpop.permute.xlu1 %870  ;;  %v1794_v34 = vld [vmem:[#allocation2 + $0x18] sm:$0xff] }
 0x1c4   :  { %893 = vst.msk [vmem:[#allocation2 + $0x78] sm:$0xff] %vm887_vm5, %v871_v35  ;;  %v869_v36 = vpop.permute.xlu0 %868 }
 0x1c5   :  { %892 = vst.msk [vmem:[#allocation2 + $0x60] sm:$0xff] %vm887_vm5, %v869_v36  ;;  %v1735_v16 = vpop.f32.mrb[80].mxu0 }
 0x1c6   :  { %v1736_v37 = vadd.f32 %v10754_v46, %v1735_v16  ;;  %v1737_v1 = vpop.f32.mrb[81].mxu0 }
 0x1c7   :  { %v680_v2 = vpop.permute.xlu1 %679  ;;  %v1738_v38 = vpop.f32.mrb[82].mxu0  ;;  %v9176_v1 = vld [vmem:[%s13308_s3 + $0x80] sm:$0xff]  }
 0x1c8   :  { %700 = vst.msk [vmem:[#allocation2 + $0xa8] sm:$0xff] %vm692_vm4, %v680_v2  ;;  %v678_v39 = vpop.permute.xlu0 %677  ;;  %v1773_v3 = vmax.f32 %v1736_v37, 0.0  ;;  %v1739_v4 = vadd.f32 %v10104_v40, %v1738_v38  ;;  %v1740_v41 = vpop.f32.mrb[83].mxu0  ;;  %v1818_v38 = vpack.c.bf16 %v1794_v34, %v1791_v33 }
 0x1c9   :  { %699 = vst.msk [vmem:[#allocation2 + $0x90] sm:$0xff] %vm692_vm4, %v678_v39  ;;  %v1800_v41 = vld [vmem:[#allocation2 + $0x48] sm:$0xff] }
 0x1ca   :  { %1782 = vst.msk [vmem:[#allocation2 + $0x10] sm:$0xff] %vm302_vm1, %v1773_v3  ;;  %v1774_v42 = vmax.f32 %v1739_v4, 0.0  ;;  %v9177_v3 = vld [vmem:[%s13308_s3 + $0x88] sm:$0xff]   ;;  %v1797_v4 = vld [vmem:[#allocation2 + $0x30] sm:$0xff] }
 0x1cb   :  { %v875_v43 = vpop.permute.xlu1 %874 }
 0x1cc   :  { %895 = vst.msk [vmem:[#allocation2 + $0xa8] sm:$0xff] %vm887_vm5, %v875_v43  ;;  %v873_v46 = vpop.permute.xlu0 %872 }
 0x1cd   :  { %1783 = vst.msk [vmem:[#allocation2 + $0x28] sm:$0xff] %vm302_vm1, %v1774_v42  ;;  %v1743_v6 = vpop.f32.mrb[84].mxu0 }
 0x1ce   :  { %894 = vst.msk [vmem:[#allocation2 + $0x90] sm:$0xff] %vm887_vm5, %v873_v46  ;;  %v1744_v44 = vadd.f32 %v10104_v40, %v1743_v6  ;;  %v1745_v45 = vpop.f32.mrb[85].mxu0 }
 0x1cf   :  { %v1746_v8 = vpop.f32.mrb[86].mxu0  ;;  %v1821_v45 = vpack.c.bf16 %v1800_v41, %v1797_v4 }
 0x1d0   :  { %v1775_v9 = vmax.f32 %v1744_v44, 0.0  ;;  %v1747_v10 = vadd.f32 %v10104_v40, %v1746_v8  ;;  %v1748_v0 = vpop.f32.mrb[87].mxu0 }
 0x1d1   :  { %v1806_v0 = vld [vmem:[#allocation2 + $0x78] sm:$0xff] }
 0x1d2   :  { %1784 = vst.msk [vmem:[#allocation2 + $0x40] sm:$0xff] %vm302_vm1, %v1775_v9  ;;  %v1776_v11 = vmax.f32 %v1747_v10, 0.0  ;;  %v1803_v10 = vld [vmem:[#allocation2 + $0x60] sm:$0xff] }
 0x1d4   :  { %1785 = vst.msk [vmem:[#allocation2 + $0x58] sm:$0xff] %vm302_vm1, %v1776_v11 }
 0x1d5   :  { %v1751_v12 = vpop.f32.mrb[88].mxu0 }
 0x1d6   :  { %v1752_v13 = vadd.f32 %v10104_v40, %v1751_v12  ;;  %v1753_v14 = vpop.f32.mrb[89].mxu0 }
 0x1d7   :  { %v1754_v47 = vpop.f32.mrb[90].mxu0 }
 0x1d8   :  { %v1777_v48 = vmax.f32 %v1752_v13, 0.0  ;;  %v1755_v49 = vadd.f32 %v10104_v40, %v1754_v47  ;;  %v1756_v50 = vpop.f32.mrb[91].mxu0  ;;  %v1824_v47 = vpack.c.bf16 %v1806_v0, %v1803_v10 }
 0x1da   :  { %1786 = vst.msk [vmem:[#allocation2 + $0x70] sm:$0xff] %vm302_vm1, %v1777_v48  ;;  %v1778_v51 = vmax.f32 %v1755_v49, 0.0 }
 0x1db   :  { %v1213_v52 = vpop.permute.xlu0 %1212 }
 0x1dc   :  { %1239 = vst.msk [vmem:[#allocation2 + $0x8] sm:$0xff] %vm497_vm3, %v1213_v52  ;;  %v1812_v52 = vld [vmem:[#allocation2 + $0xa8] sm:$0xff] }
 0x1dd   :  { %1787 = vst.msk [vmem:[#allocation2 + $0x88] sm:$0xff] %vm302_vm1, %v1778_v51  ;;  %v1759_v53 = vpop.f32.mrb[92].mxu0  ;;  %v1809_v51 = vld [vmem:[#allocation2 + $0x90] sm:$0xff] }
 0x1de   :  { %v1760_v54 = vadd.f32 %v10104_v40, %v1759_v53  ;;  %v1761_v56 = vpop.f32.mrb[93].mxu0 }
 0x1df   :  { %v1215_v57 = vpop.permute.xlu0 %1214  ;;  %v1762_v58 = vpop.f32.mrb[94].mxu0 }
 0x1e0   :  { %1240 = vst.msk [vmem:[#allocation2 + $0x20] sm:$0xff] %vm497_vm3, %v1215_v57  ;;  %v1779_v59 = vmax.f32 %v1760_v54, 0.0  ;;  %v1763_v60 = vadd.f32 %v10104_v40, %v1762_v58  ;;  %v1764_v61 = vpop.f32.mrb[95].mxu0  ;;  %v1827_v58 = vpack.c.bf16 %v1812_v52, %v1809_v51  ;;  %v9180_v51 = vld [vmem:[%s13309_s5 + $0x48] sm:$0xff]  }
 0x1e1   :  { %v9181_v52 = vld [vmem:[%s13309_s5 + $0x8] sm:$0xff]  }
 0x1e2   :  { %1788 = vst.msk [vmem:[#allocation2 + $0xa0] sm:$0xff] %vm302_vm1, %v1779_v59  ;;  %v1780_v62 = vmax.f32 %v1763_v60, 0.0 }
 0x1e3   :  { %v1217_v63 = vpop.permute.xlu0 %1216 }
 0x1e4   :  { %1241 = vst.msk [vmem:[#allocation2 + $0x38] sm:$0xff] %vm497_vm3, %v1217_v63 }
 0x1e5   :  { %1789 = vst.msk [vmem:[#allocation2 + $0xb8] sm:$0xff] %vm302_vm1, %v1780_v62  ;;  %v1219_v5 = vpop.permute.xlu1 %1218  ;;  %v1767_v7 = vpop.f32.mrb[96].mxu0 }
 0x1e6   :  { %1242 = vst.msk [vmem:[#allocation2 + $0x50] sm:$0xff] %vm497_vm3, %v1219_v5  ;;  %v1768_v17 = vadd.f32 %v10104_v40, %v1767_v7  ;;  %v1769_v18 = vpop.f32.mrb[97].mxu0  ;;  %v1793_v5 = vld [vmem:[#allocation2 + $0x10] sm:$0xff]  ;;  %v1796_v7 = vld [vmem:[#allocation2 + $0x28] sm:$0xff] }
 0x1e7   :  { %v1770_v19 = vpop.f32.mrb[98].mxu0  ;;  %v1799_v18 = vld [vmem:[#allocation2 + $0x40] sm:$0xff] }
 0x1e8   :  { %v1781_v20 = vmax.f32 %v1768_v17, 0.0  ;;  %v1771_v21 = vpop.f32.mrb[99].mxu0  ;;  %v1820_v17 = vpack.c.bf16 %v1796_v7, %v1793_v5  ;;  %v1802_v19 = vld [vmem:[#allocation2 + $0x58] sm:$0xff] }
 0x1e9   :  { %v1805_v21 = vld [vmem:[#allocation2 + $0x70] sm:$0xff] }
 0x1ea   :  { %1790 = vst.msk [vmem:[#allocation2 + $0xd0] sm:$0x3f] %vm311_vm2, %v1781_v20  ;;  %v1823_v20 = vpack.c.bf16 %v1802_v19, %v1799_v18  ;;  %v9186_v18 = vld [vmem:[%s13309_s5 + $0x58] sm:$0xff]   ;;  %vm2206_vm2 = vcmask 1041920  }
 0x1eb   :  { %v1221_v22 = vpop.permute.xlu0 %1220 }
 0x1ec   :  { %1243 = vst.msk [vmem:[#allocation2 + $0x68] sm:$0xff] %vm497_vm3, %v1221_v22  ;;  %v1808_v22 = vld [vmem:[#allocation2 + $0x88] sm:$0xff] }
 0x1ed   :  { %v1223_v23 = vpop.permute.xlu1 %1222 }
 0x1ee   :  { %1244 = vst.msk [vmem:[#allocation2 + $0x80] sm:$0xff] %vm497_vm3, %v1223_v23  ;;  %v1826_v23 = vpack.c.bf16 %v1808_v22, %v1805_v21 }
 0x1f3   :  { %v1225_v24 = vpop.permute.xlu0 %1224 }
 0x1f4   :  { %1245 = vst.msk [vmem:[#allocation2 + $0x98] sm:$0xff] %vm497_vm3, %v1225_v24  ;;  %v1811_v24 = vld [vmem:[#allocation2 + $0xa0] sm:$0xff] }
 0x1f5   :  { %v1227_v55 = vpop.permute.xlu1 %1226 }
 0x1f6   :  { %1246 = vst.msk [vmem:[#allocation2 + $0xb0] sm:$0xff] %vm497_vm3, %v1227_v55  ;;  %v1814_v55 = vld [vmem:[#allocation2 + $0xb8] sm:$0xff]  ;;  %vm2204_vm3 = vcmask 1048064  }
 0x1fb   :  { %v1229_v25 = vpop.permute.xlu0 %1228 }
 0x1fc   :  { %1247 = vst.msk [vmem:[#allocation2 + $0xc8] sm:$0x3f] %vm506_vm6, %v1229_v25  ;;  %v1829_v25 = vpack.c.bf16 %v1814_v55, %v1811_v24  ;;  %v9187_v24 = vld [vmem:[%s13309_s5 + $0x18] sm:$0xff]   ;;  %v9188_v55 = vld [vmem:[%s13309_s5 + $0xc8] sm:$0xff]  }
 0x20b   :  { %v1406_v26 = vpop.permute.xlu0 %1405 }
 0x20c   :  { %1432 = vst.msk [vmem:[#allocation2 + $0x8] sm:$0xff] %vm692_vm4, %v1406_v26  ;;  %v1817_v26 = vld [vmem:[#allocation2 + $0xd0] sm:$0x3f] }
 0x20d   :  { %v1408_v27 = vpop.permute.xlu1 %1407 }
 0x20e   :  { %1433 = vst.msk [vmem:[#allocation2 + $0x20] sm:$0xff] %vm692_vm4, %v1408_v27  ;;  %v1832_v27 = vpack.c.bf16 %v1817_v26, %v1817_v26  ;;  %v9189_v26 = vld [vmem:[%s13309_s5 + $0x60] sm:$0xff]  }
 0x20f   :  { %v1599_v28 = vpop.permute.xlu0 %1598 }
 0x210   :  { %1625 = vst.msk [vmem:[#allocation2 + $0x8] sm:$0xff] %vm887_vm5, %v1599_v28  ;;  %v9178_v28 = vld [vmem:[%s13309_s5 + $0x40] sm:$0xff]  }
 0x211   :  { %v1601_v29 = vpop.permute.xlu1 %1600 }
 0x212   :  { %1626 = vst.msk [vmem:[#allocation2 + $0x20] sm:$0xff] %vm887_vm5, %v1601_v29  ;;  %v9179_v29 = vld [vmem:[%s13309_s5] sm:$0xff]  }
 0x213   :  { %v1410_v30 = vpop.permute.xlu0 %1409 }
 0x214   :  { %1434 = vst.msk [vmem:[#allocation2 + $0x38] sm:$0xff] %vm692_vm4, %v1410_v30 }
 0x215   :  { %v1412_v32 = vpop.permute.xlu1 %1411 }
 0x216   :  { %1435 = vst.msk [vmem:[#allocation2 + $0x50] sm:$0xff] %vm692_vm4, %v1412_v32 }
 0x217   :  { %v1603_v15 = vpop.permute.xlu0 %1602  ;;  %v1792_v36 = vld [vmem:[#allocation2 + $0x8] sm:$0xff] }
 0x218   :  { %1627 = vst.msk [vmem:[#allocation2 + $0x38] sm:$0xff] %vm887_vm5, %v1603_v15 }
 0x219   :  { %v1605_v35 = vpop.permute.xlu1 %1604  ;;  %v1795_v16 = vld [vmem:[#allocation2 + $0x20] sm:$0xff] }
 0x21a   :  { %1628 = vst.msk [vmem:[#allocation2 + $0x50] sm:$0xff] %vm887_vm5, %v1605_v35  ;;  %v1819_v37 = vpack.c.bf16 %v1795_v16, %v1792_v36 }
 0x21b   :  { %v1414_v2 = vpop.permute.xlu0 %1413 }
 0x21c   :  { %1436 = vst.msk [vmem:[#allocation2 + $0x68] sm:$0xff] %vm692_vm4, %v1414_v2  ;;  %2031 = vmatprep.mubr.bf16.mxu1 %v1819_v37 }
 0x21d   :  { %v1416_v39 = vpop.permute.xlu1 %1415  ;;  %2032 = vmatmul.mubr.bf16.vlgmr.msra.gmra.mrb[80].mxu1 %v1818_v38 }
 0x21e   :  { %1437 = vst.msk [vmem:[#allocation2 + $0x80] sm:$0xff] %vm692_vm4, %v1416_v39  ;;  %8924 = vmatpush3.bf16.msra.mxu1 %v9176_v1 }
 0x21f   :  { %v1607_v40 = vpop.permute.xlu0 %1606  ;;  %8925 = vmatprep.subr.bf16.mxu1 %v10109_v31  ;;  %v1798_v43 = vld [vmem:[#allocation2 + $0x38] sm:$0xff] }
 0x220   :  { %1629 = vst.msk [vmem:[#allocation2 + $0x68] sm:$0xff] %vm887_vm5, %v1607_v40 }
 0x221   :  { %v1609_v42 = vpop.permute.xlu1 %1608  ;;  %v1801_v46 = vld [vmem:[#allocation2 + $0x50] sm:$0xff] }
 0x222   :  { %1630 = vst.msk [vmem:[#allocation2 + $0x80] sm:$0xff] %vm887_vm5, %v1609_v42  ;;  %v1822_v6 = vpack.c.bf16 %v1801_v46, %v1798_v43  ;;  %8926 = vmatpush3.bf16.msra.mxu1 %v9177_v3 }
 0x223   :  { %v1418_v44 = vpop.permute.xlu0 %1417  ;;  %8795 = vmatprep.subr.bf16.mxu1 %v9178_v28 }
 0x224   :  { %1438 = vst.msk [vmem:[#allocation2 + $0x98] sm:$0xff] %vm692_vm4, %v1418_v44  ;;  %2039 = vmatprep.mubr.bf16.mxu1 %v1822_v6 }
 0x225   :  { %v1420_v8 = vpop.permute.xlu1 %1419  ;;  %2040 = vmatmul.mubr.bf16.gmra.mrb[84].mxu1 %v1821_v45 }
 0x226   :  { %1439 = vst.msk [vmem:[#allocation2 + $0xb0] sm:$0xff] %vm692_vm4, %v1420_v8  ;;  %vm2221_vm4 = vcmask 1048066  }
 0x227   :  { %v1611_v9 = vpop.permute.xlu0 %1610  ;;  %v1804_v12 = vld [vmem:[#allocation2 + $0x68] sm:$0xff] }
 0x228   :  { %1631 = vst.msk [vmem:[#allocation2 + $0x98] sm:$0xff] %vm887_vm5, %v1611_v9 }
 0x229   :  { %v1613_v11 = vpop.permute.xlu1 %1612  ;;  %v1807_v13 = vld [vmem:[#allocation2 + $0x80] sm:$0xff] }
 0x22a   :  { %1632 = vst.msk [vmem:[#allocation2 + $0xb0] sm:$0xff] %vm887_vm5, %v1613_v11  ;;  %v1825_v14 = vpack.c.bf16 %v1807_v13, %v1804_v12  ;;  %v11075_v12 = vld [vmem:[%s13310_s4] ss:$0 sm:$0xff]  ;;  %vm2223_vm5 = vcmask 1043968  }
 0x22b   :  { %v1422_v48 = vpop.permute.xlu0 %1421 }
 0x22c   :  { %2047 = vmatprep.mubr.bf16.mxu1 %v1825_v14  ;;  %1440 = vst.msk [vmem:[#allocation2 + $0xc8] sm:$0x3f] %vm701_vm7, %v1422_v48 }
 0x22d   :  { %v487_v49 = vpop.permute.xlu1 %486  ;;  %2048 = vmatmul.mubr.bf16.gmra.mrb[88].mxu1 %v1824_v47 }
 0x22e   :  { %507 = vst.msk [vmem:[#allocation2 + $0xc0] sm:$0x3f] %vm506_vm6, %v487_v49  ;;  %vm2238_vm6 = vcmask 1048068  }
 0x22f   :  { %v1615_v50 = vpop.permute.xlu0 %1614  ;;  %v1810_v54 = vld [vmem:[#allocation2 + $0x98] sm:$0xff] }
 0x230   :  { %1633 = vst.msk [vmem:[#allocation2 + $0xc8] sm:$0x3f] %vm896_vm8, %v1615_v50 }
 0x231   :  { %v682_v53 = vpop.permute.xlu1 %681  ;;  %v1813_v56 = vld [vmem:[#allocation2 + $0xb0] sm:$0xff] }
 0x232   :  { %702 = vst.msk [vmem:[#allocation2 + $0xc0] sm:$0x3f] %vm701_vm7, %v682_v53  ;;  %v1828_v57 = vpack.c.bf16 %v1813_v56, %v1810_v54  ;;  %v9182_v53 = vld [vmem:[%s13309_s5 + $0x50] sm:$0xff]   ;;  %vm2240_vm7 = vcmask 1046016  }
 0x234   :  { %2055 = vmatprep.mubr.bf16.mxu1 %v1828_v57 }
 0x235   :  { %v877_v59 = vpop.permute.xlu1 %876  ;;  %2056 = vmatmul.mubr.bf16.gmra.mrb[92].mxu1 %v1827_v58 }
 0x236   :  { %897 = vst.msk [vmem:[#allocation2 + $0xc0] sm:$0x3f] %vm896_vm8, %v877_v59 }
 0x237   :  { %v1816_v60 = vld [vmem:[#allocation2 + $0xc8] sm:$0x3f] }
 0x238   :  { %v1831_v61 = vpack.c.bf16 %v1816_v60, %v1816_v60 }
 0x23a   :  { %2063 = vmatprep.mubr.bf16.mxu1 %v1831_v61  ;;  %v9183_v61 = vld [vmem:[%s13309_s5 + $0x10] sm:$0xff]  }
 0x23d   :  { %v1815_v62 = vld [vmem:[#allocation2 + $0xc0] sm:$0x3f] }
 0x23e   :  { %v1830_v63 = vpack.c.bf16 %v1815_v62, %v1815_v62  ;;  %v9184_v62 = vld [vmem:[%s13309_s5 + $0xc0] sm:$0xff]  }
 0x23f   :  { %8823 = vmatprep.subr.bf16.mxu0 %v9184_v62  ;;  %v9199_v62 = vld [vmem:[%s13309_s5 + $0x98] sm:$0xff]  }
 0x240   :  { %2064 = vmatmul.mubr.bf16.gmra.mrb[96].mxu1 %v1830_v63  ;;  %v9185_v63 = vld [vmem:[%s13309_s5 + $0x80] sm:$0xff]  }
 0x241   :  { %8927 = vmatprep.mubr.msk.bf16.mxu1 %vm10110_vm9, %v10109_v31  ;;  %8824 = vmatpush3.bf16.msra.mxu0 %v9185_v63 }
 0x242   :  { %8825 = vmatprep.subr.bf16.mxu0 %v9188_v55 }
 0x248   :  { %8928 = vmatmul.mubr.msk.bf16.vlgmr.msra.gmra.mrb[100].mxu1 %vm302_vm1, %v1820_v17 }
 0x249   :  { %8931 = vmatprep.mubr.msk.bf16.mxu1 %vm10110_vm9, %v10109_v31  ;;  %8796 = vmatpush3.bf16.msra.mxu1 %v9179_v29 }
 0x24a   :  { %8797 = vmatprep.subr.bf16.mxu1 %v9180_v51 }
 0x24d   :  { %8798 = vmatpush3.bf16.msra.mxu1 %v9181_v52 }
 0x24e   :  { %8799 = vmatprep.subr.bf16.mxu1 %v9182_v53  ;;  %v9198_v53 = vld [vmem:[%s13309_s5 + $0xd8] sm:$0xff]  }
 0x250   :  { %8932 = vmatmul.mubr.msk.bf16.gmra.mrb[104].mxu1 %vm302_vm1, %v1823_v20 }
 0x251   :  { %8935 = vmatprep.mubr.msk.bf16.mxu1 %vm10110_vm9, %v10109_v31  ;;  %8800 = vmatpush3.bf16.msra.mxu1 %v9183_v61 }
 0x252   :  { %8801 = vmatprep.subr.bf16.mxu1 %v9186_v18 }
 0x255   :  { %8802 = vmatpush3.bf16.msra.mxu1 %v9187_v24 }
 0x256   :  { %8803 = vmatprep.subr.bf16.mxu1 %v9189_v26 }
 0x258   :  { %8936 = vmatmul.mubr.msk.bf16.gmra.mrb[108].mxu1 %vm302_vm1, %v1826_v23 }
 0x259   :  { %8939 = vmatprep.mubr.msk.bf16.mxu1 %vm10110_vm9, %v10109_v31 }
 0x260   :  { %8940 = vmatmul.mubr.msk.bf16.gmra.mrb[112].mxu1 %vm302_vm1, %v1829_v25 }
 0x261   :  { %8943 = vmatprep.mubr.msk.bf16.mxu1 %vm10110_vm9, %v10109_v31 }
 0x268   :  { %8944 = vmatmul.mubr.msk.bf16.gmra.mrb[116].mxu1 %vm302_vm1, %v1832_v27  ;;  %v9190_v27 = vld [vmem:[%s13309_s5 + $0x88] sm:$0xff]   ;;  %vm2191_vm1 = vcmask 523268  }
 0x269   :  { %8826 = vmatpush3.bf16.msra.mxu0 %v9190_v27 }
 0x2f0   :  { %v8758_v30 = vpop.f32.mrb[80].mxu1 }
 0x2f1   :  { %v8759_v32 = vpop.f32.mrb[81].mxu1 }
 0x2f2   :  { %v8760_v15 = vadd.f32 %v8759_v32, %v8758_v30  ;;  %v8761_v33 = vpop.f32.mrb[82].mxu1 }
 0x2f3   :  { %v8762_v34 = vpop.f32.mrb[83].mxu1 }
 0x2f4   :  { %v8763_v31 = vadd.f32 %v8762_v34, %v8761_v33  ;;  %v2034_v13 = vadd.f32 %v8760_v15, %v11075_v12 }
 0x2f6   :  { %v2037_v49 = vadd.f32 %v8763_v31, %v11075_v12  ;;  %v9191_v31 = vld [vmem:[%s13309_s5 + $0x20] sm:$0xff]  }
 0x2f7   :  { %8804 = vmatpush3.bf16.msra.mxu1 %v9191_v31  ;;  %v9201_v31 = vld [vmem:[%s13309_s5 + $0x38] sm:$0xff]  }
 0x2f8   :  { %v8764_v35 = vpop.f32.mrb[84].mxu1 }
 0x2f9   :  { %v8765_v36 = vpop.f32.mrb[85].mxu1 }
 0x2fa   :  { %v8766_v16 = vadd.f32 %v8765_v36, %v8764_v35  ;;  %v8767_v37 = vpop.f32.mrb[86].mxu1  ;;  %v9192_v35 = vld [vmem:[%s13309_s5 + $0x68] sm:$0xff]   ;;  %v9193_v36 = vld [vmem:[%s13309_s5 + $0xd0] sm:$0xff]  }
 0x2fb   :  { %v8768_v1 = vpop.f32.mrb[87].mxu1  ;;  %8827 = vmatprep.subr.bf16.mxu0 %v9193_v36  ;;  %8805 = vmatprep.subr.bf16.mxu1 %v9192_v35  ;;  %v9202_v35 = vld [vmem:[%s13309_s5 + $0xe0] sm:$0xff]  }
 0x2fc   :  { %v8769_v2 = vadd.f32 %v8768_v1, %v8767_v37  ;;  %v2042_v59 = vadd.f32 %v8766_v16, %v11075_v12 }
 0x2fe   :  { %v2045_v17 = vadd.f32 %v8769_v2, %v11075_v12 }
 0x300   :  { %v8770_v38 = vpop.f32.mrb[88].mxu1 }
 0x301   :  { %v8771_v39 = vpop.f32.mrb[89].mxu1 }
 0x302   :  { %v11062_v3 = vadd.f32 %v8771_v39, %v8770_v38  ;;  %v8773_v40 = vpop.f32.mrb[90].mxu1 }
 0x303   :  { %v8774_v4 = vpop.f32.mrb[91].mxu1 }
 0x304   :  { %v11064_v41 = vadd.f32 %v8774_v4, %v8773_v40  ;;  %v2050_v32 = vadd.f32 %v11062_v3, %v11075_v12 }
 0x306   :  { %v2053_v1 = vadd.f32 %v11064_v41, %v11075_v12 }
 0x308   :  { %v8776_v42 = vpop.f32.mrb[92].mxu1 }
 0x309   :  { %v8777_v43 = vpop.f32.mrb[93].mxu1 }
 0x30a   :  { %v11066_v46 = vadd.f32 %v8777_v43, %v8776_v42  ;;  %v8779_v6 = vpop.f32.mrb[94].mxu1 }
 0x30b   :  { %v8780_v44 = vpop.f32.mrb[95].mxu1 }
 0x30c   :  { %v11068_v45 = vadd.f32 %v8780_v44, %v8779_v6  ;;  %v9194_v44 = vld [vmem:[%s13309_s5 + $0x28] sm:$0xff]  }
 0x30d   :  { %8806 = vmatpush3.bf16.msra.mxu1 %v9194_v44 }
 0x313   :  { %v8782_v8 = vpop.f32.mrb[96].mxu1 }
 0x314   :  { %v8783_v9 = vpop.f32.mrb[97].mxu1 }
 0x315   :  { %v11070_v10 = vadd.f32 %v8783_v9, %v8782_v8  ;;  %v8785_v0 = vpop.f32.mrb[98].mxu1 }
 0x316   :  { %v8786_v11 = vpop.f32.mrb[99].mxu1 }
 0x317   :  { %v2058_v11 = vadd.f32 %v11066_v46, %v11075_v12  ;;  %v9197_v46 = vld [vmem:[%s13309_s5 + $0x30] sm:$0xff]   ;;  %v2066_v55 = vadd.f32 %v11070_v10, %v11075_v12 }
 0x31b   :  { %v2105_v14 = vpop.f32.mrb[100].mxu1 }
 0x31c   :  { %v2106_v47 = vadd.f32 %v2105_v14, %v2034_v13  ;;  %v8929_v48 = vpop.f32.mrb[101].mxu1 }
 0x31d   :  { %v2108_v50 = vpop.f32.mrb[102].mxu1  ;;  %v9196_v48 = vld [vmem:[%s13309_s5 + $0x70] sm:$0xff]  }
 0x31e   :  { %v2143_v54 = vmax.f32 %v2106_v47, 0.0  ;;  %v2109_v56 = vadd.f32 %v2108_v50, %v2037_v49  ;;  %v8930_v57 = vpop.f32.mrb[103].mxu1  ;;  %v9195_v47 = vld [vmem:[%s13309_s5 + $0x90] sm:$0xff]   ;;  %8807 = vmatprep.subr.bf16.mxu1 %v9196_v48 }
 0x31f   :  { %8828 = vmatpush3.bf16.msra.mxu0 %v9195_v47  ;;  %8808 = vmatpush3.bf16.msra.mxu1 %v9197_v46 }
 0x320   :  { %2152 = vst.msk [vmem:[#allocation3] sm:$0xff] %vm205_vm0, %v2143_v54  ;;  %v2144_v58 = vmax.f32 %v2109_v56, 0.0  ;;  %8829 = vmatprep.subr.bf16.mxu0 %v9198_v53 }
 0x322   :  { %2153 = vst.msk [vmem:[#allocation3 + $0x8] sm:$0xff] %vm205_vm0, %v2144_v58  ;;  %v2061_v58 = vadd.f32 %v11068_v45, %v11075_v12 }
 0x323   :  { %v2113_v60 = vpop.f32.mrb[104].mxu1  ;;  %8830 = vmatpush3.bf16.msra.mxu0 %v9199_v62 }
 0x324   :  { %v2114_v5 = vadd.f32 %v2113_v60, %v2042_v59  ;;  %v8933_v7 = vpop.f32.mrb[105].mxu1  ;;  %v9200_v59 = vld [vmem:[%s13309_s5 + $0x78] sm:$0xff]   ;;  %8831 = vmatprep.subr.bf16.mxu0 %v9202_v35 }
 0x325   :  { %v2116_v19 = vpop.f32.mrb[106].mxu1  ;;  %8809 = vmatprep.subr.bf16.mxu1 %v9200_v59 }
 0x326   :  { %v2145_v20 = vmax.f32 %v2114_v5, 0.0  ;;  %v2117_v21 = vadd.f32 %v2116_v19, %v2045_v17  ;;  %v8934_v22 = vpop.f32.mrb[107].mxu1  ;;  %8810 = vmatpush3.bf16.msra.mxu1 %v9201_v31 }
 0x327   :  { %v2162_v23 = vld [vmem:[#allocation3] sm:$0xff] }
 0x328   :  { %2154 = vst.msk [vmem:[#allocation3 + $0x10] sm:$0xff] %vm205_vm0, %v2145_v20  ;;  %v2146_v25 = vmax.f32 %v2117_v21, 0.0  ;;  %2164 = vst.msk [vmem:[#allocation4] sm:$0xff] %vm205_vm0, %v2162_v23 }
 0x329   :  { %v2195_v28 = vld [vmem:[#allocation3 + $0xa] sm:$0x3]  ;;  %v2194_v29 = vld [vmem:[#allocation3 + $0x2] sm:$0xff]  ;;  %v2243_v33 = vld [vmem:[#allocation3 + $0xc] sm:$0x3] }
 0x32a   :  { %v2163_v30 = vld [vmem:[#allocation3 + $0x8] sm:$0x3]  ;;  %2155 = vst.msk [vmem:[#allocation3 + $0x18] sm:$0xff] %vm205_vm0, %v2146_v25  ;;  %2200 = vrot.lane.b32.xlu0 %v2195_v28, %s10107_s20  ;;  %2198 = vrot.lane.b32.xlu1 %v2194_v29, %s10107_s20 }
 0x32b   :  { %2166 = vst.msk [vmem:[#allocation4 + $0x28] sm:$0x3] %vm2165_vm10, %v2163_v30  ;;  %v2242_v15 = vld [vmem:[#allocation3 + $0x4] sm:$0xff]  ;;  %v2121_v34 = vpop.f32.mrb[108].mxu1  ;;  %2245 = vst.msk [vmem:[#allocation4 + $0x30] sm:$0x3] %vm2165_vm10, %v2243_v33 }
 0x32c   :  { %2244 = vst.msk [vmem:[#allocation4 + $0x8] sm:$0xff] %vm205_vm0, %v2242_v15  ;;  %v2122_v16 = vadd.f32 %v2121_v34, %v2050_v32  ;;  %v8937_v37 = vpop.f32.mrb[109].mxu1 }
 0x32d   :  { %v2124_v2 = vpop.f32.mrb[110].mxu1  ;;  %v9203_v37 = vld [vmem:[%s13309_s5 + $0xa0] sm:$0xff]  }
 0x32e   :  { %v2147_v38 = vmax.f32 %v2122_v16, 0.0  ;;  %v2125_v39 = vadd.f32 %v2124_v2, %v2053_v1  ;;  %v8938_v3 = vpop.f32.mrb[111].mxu1  ;;  %v9204_v2 = vld [vmem:[%s13309_s5 + $0xe8] sm:$0xff]   ;;  %8832 = vmatpush3.bf16.msra.mxu0 %v9203_v37 }
 0x32f   :  { %v2268_v40 = vld [vmem:[#allocation3 + $0xe] sm:$0xff]  ;;  %v2269_v4 = vld [vmem:[#allocation3 + $0x16] sm:$0x3]  ;;  %8833 = vmatprep.subr.bf16.mxu0 %v9204_v2 }
 0x330   :  { %v2208_v42 = vld [vmem:[#allocation3 + $0x10] sm:$0xff]  ;;  %2156 = vst.msk [vmem:[#allocation3 + $0x20] sm:$0xff] %vm205_vm0, %v2147_v38  ;;  %v2148_v43 = vmax.f32 %v2125_v39, 0.0  ;;  %2272 = vrot.lane.b32.xlu0 %v2268_v40, %s10107_s20  ;;  %2274 = vrot.lane.b32.xlu1 %v2269_v4, %s10107_s20  ;;  %v2172_v41 = vrot.slane %v2268_v40, 6 }
 0x331   :  { %v2168_v6 = vld [vmem:[#allocation3 + $0x16] sm:$0x3]  ;;  %2312 = vst.msk [vmem:[#allocation4 + $0x10] sm:$0xff] %vm205_vm0, %v2208_v42  ;;  %v2209_v8 = vld [vmem:[#allocation3 + $0x18] sm:$0x3]  ;;  %v2212_v13 = vrot.slane %v2208_v42, 6 }
 0x332   :  { %v11144_v9 = vld [vmem:[#allocation3 + $0x12] sm:$0xff]  ;;  %v2173_v0 = vrot.slane %v2168_v6, 6  ;;  %2157 = vst.msk [vmem:[#allocation3 + $0x28] sm:$0xff] %vm205_vm0, %v2148_v43  ;;  %v2247_v49 = vld [vmem:[#allocation3 + $0x1a] sm:$0x3]  ;;  %v2213_v51 = vrot.slane %v2209_v8, 6 }
 0x333   :  { %2178 = vst.msk [vmem:[#allocation4 + $0x28] sm:$0xfc] %vm2177_vm11, %v2172_v41  ;;  %v2250_v14 = vrot.slane %v11144_v9, 6  ;;  %v2129_v50 = vpop.f32.mrb[112].mxu1  ;;  %v2251_v54 = vrot.slane %v2247_v49, 6  ;;  %v11223_v42 = vld [vmem:[%s13309_s5 + $0x100] sm:$0xff]  }
 0x334   :  { %v2174_v52 = vsel %vm2171_vm12, %v2172_v41, %v2173_v0  ;;  %v2130_v56 = vadd.f32 %v2129_v50, %v2058_v11  ;;  %v8941_v57 = vpop.f32.mrb[113].mxu1  ;;  %2215 = vrot.lane.b32.xlu1 %v2212_v13, %s10107_s20  ;;  %v2311_v60 = vld [vmem:[#allocation3 + $0x18] sm:$0x3]  ;;  %v2214_v19 = vsel %vm2171_vm12, %v2212_v13, %v2213_v51  ;;  %v9205_v8 = vld [vmem:[%s13309_s5 + $0xa8] sm:$0xff]   ;;  %8947 = vmatprep.subr.bf16.mxu1 %v11223_v42 }
 0x335   :  { %2180 = vst.msk [vmem:[#allocation4 + $0x50] sm:$0xf] %vm2179_vm13, %v2174_v52  ;;  %v2132_v61 = vpop.f32.mrb[114].mxu1  ;;  %v2252_v63 = vsel %vm2171_vm12, %v2250_v14, %v2251_v54  ;;  %v9207_v52 = vld [vmem:[%s13309_s5 + $0xf0] sm:$0xff]   ;;  %8834 = vmatpush3.bf16.msra.mxu0 %v9205_v8 }
 0x336   :  { %2255 = vst.msk [vmem:[#allocation4 + $0x30] sm:$0xfc] %vm2177_vm11, %v2250_v14  ;;  %v2149_v45 = vmax.f32 %v2130_v56, 0.0  ;;  %v2133_v5 = vadd.f32 %v2132_v61, %v2061_v58  ;;  %v8942_v7 = vpop.f32.mrb[115].mxu1  ;;  %v9209_v57 = vld [vmem:[%s13309_s5 + $0xb0] sm:$0xff]   ;;  %8835 = vmatprep.subr.bf16.mxu0 %v9207_v52  ;;  %v9208_v52 = vld [vmem:[%s13309_s5 + $0x108] sm:$0xff]  }
 0x337   :  { %2313 = vst.msk [vmem:[#allocation4 + $0x38] sm:$0x3] %vm2165_vm10, %v2311_v60  ;;  %v11178_v17 = vld [vmem:[#allocation3 + $0x20] sm:$0xff] }
 0x338   :  { %2256 = vst.msk [vmem:[#allocation4 + $0x58] sm:$0xf] %vm2179_vm13, %v2252_v63  ;;  %v11180_v18 = vld [vmem:[#allocation3 + $0x1e] sm:$0xff]  ;;  %v2150_v21 = vmax.f32 %v2133_v5, 0.0  ;;  %2217 = vrot.lane.b32.xlu1 %v2214_v19, %s10107_s20  ;;  %v2405_v23 = vld [vmem:[#allocation3 + $0x26] sm:$0x3] }
 0x339   :  { %v11183_v20 = vld [vmem:[#allocation3 + $0x1c] sm:$0xff]  ;;  %2448 = vst.msk [vmem:[#allocation4 + $0x20] sm:$0xff] %vm205_vm0, %v11178_v17  ;;  %2158 = vst.msk [vmem:[#allocation3 + $0x30] sm:$0xff] %vm205_vm0, %v2149_v45  ;;  %2408 = vrot.lane.b32.xlu0 %v11180_v18, %s10107_s20  ;;  %v2447_v22 = vld [vmem:[#allocation3 + $0x28] sm:$0x3]  ;;  %v2229_v26 = vrot.slane %v11180_v18, 4  ;;  %8836 = vmatpush3.bf16.msra.mxu0 %v9209_v57 }
 0x33a   :  { %2380 = vst.msk [vmem:[#allocation4 + $0x18] sm:$0xff] %vm205_vm0, %v11183_v20  ;;  %v2226_v24 = vld [vmem:[#allocation3 + $0x26] sm:$0x3]  ;;  %2159 = vst.msk [vmem:[#allocation3 + $0x38] sm:$0xff] %vm205_vm0, %v2150_v21  ;;  %v2284_v25 = vrot.slane %v11183_v20, 6  ;;  %v2186_v32 = vrot.slane %v11183_v20, 4 }
 0x33b   :  { %2449 = vst.msk [vmem:[#allocation4 + $0x48] sm:$0x3] %vm2165_vm10, %v2447_v22  ;;  %v2281_v27 = vld [vmem:[#allocation3 + $0x24] sm:$0x3]  ;;  %v2137_v29 = vpop.f32.mrb[116].mxu1  ;;  %v2230_v30 = vrot.slane %v2226_v24, 4 }
 0x33c   :  { %v2379_v28 = vld [vmem:[#allocation3 + $0x24] sm:$0x3]  ;;  %v2261_v33 = vrot.slane %v11178_v17, 4  ;;  %v2138_v34 = vadd.f32 %v2137_v29, %v2066_v55  ;;  %2410 = vrot.lane.b32.xlu1 %v2405_v23, %s10107_s20  ;;  %v8945_v12 = vpop.f32.mrb[117].mxu1  ;;  %v2258_v36 = vld [vmem:[#allocation3 + $0x28] sm:$0x3] }
 0x33d   :  { %2381 = vst.msk [vmem:[#allocation4 + $0x40] sm:$0x3] %vm2165_vm10, %v2379_v28  ;;  %v2182_v15 = vld [vmem:[#allocation3 + $0x24] sm:$0x3]  ;;  %2287 = vrot.lane.b32.xlu0 %v2284_v25, %s10107_s20  ;;  %v2140_v16 = vpop.f32.mrb[118].mxu1  ;;  %v2262_v1 = vrot.slane %v2258_v36, 4  ;;  %v2231_v41 = vsel %vm2185_vm15, %v2229_v26, %v2230_v30 }
 0x33e   :  { %v2187_v10 = vrot.slane %v2182_v15, 4  ;;  %2192 = vst.msk [vmem:[#allocation4 + $0x50] sm:$0xf0] %vm2191_vm1, %v2186_v32  ;;  %2266 = vst.msk [vmem:[#allocation4 + $0x58] sm:$0xf0] %vm2191_vm1, %v2261_v33  ;;  %v2318_v38 = vrot.slane %v11180_v18, 6 }
 0x33f   :  { %v2151_v39 = vmax.f32 %v2138_v34, 0.0  ;;  %v2285_v3 = vrot.slane %v2281_v27, 6  ;;  %v8946_v4 = vpop.f32.mrb[119].mxu1  ;;  %v2315_v43 = vld [vmem:[#allocation3 + $0x26] sm:$0x3]  ;;  %v2263_v44 = vsel %vm2185_vm15, %v2261_v33, %v2262_v1  ;;  %v2352_v27 = vrot.slane %v11178_v17, 6 }
 0x340   :  { %v2188_v40 = vsel %vm2185_vm15, %v2186_v32, %v2187_v10  ;;  %v2295_v6 = vld [vmem:[#allocation3 + $0x2a] sm:$0xff]  ;;  %2323 = vst.msk [vmem:[#allocation4 + $0x38] sm:$0xfc] %vm2177_vm11, %v2318_v38  ;;  %v2319_v0 = vrot.slane %v2315_v43, 6  ;;  %2234 = vrot.lane.b32.xlu1 %v2231_v41, %s10107_s20  ;;  %v2296_v11 = vld [vmem:[#allocation3 + $0x32] sm:$0x3] }
 0x341   :  { %2193 = vst.msk [vmem:[#allocation4 + $0x78] sm:$0x3f] %vm2160_vm14, %v2188_v40  ;;  %2161 = vst.msk [vmem:[#allocation3 + $0x40] sm:$0x3f] %vm2160_vm14, %v2151_v39  ;;  %2232 = vrot.lane.b32.xlu0 %v2229_v26, %s10107_s20  ;;  %v11235_v13 = vld [vmem:[#allocation3 + $0x2c] sm:$0xff]  ;;  %v2386_v48 = vrot.slane %v2295_v6, 6  ;;  %v2286_v49 = vsel %vm2171_vm12, %v2284_v25, %v2285_v3 }
 0x342   :  { %v11237_v14 = vld [vmem:[#allocation3 + $0x2e] sm:$0xff]  ;;  %2267 = vst.msk [vmem:[#allocation4 + $0x80] sm:$0x3f] %vm2160_vm14, %v2263_v44  ;;  %v2299_v50 = vrot.slane %v2295_v6, 4  ;;  %v2451_v51 = vld [vmem:[#allocation3 + $0x36] sm:$0x3]  ;;  %v2320_v46 = vsel %vm2171_vm12, %v2318_v38, %v2319_v0 }
 0x343   :  { %v2454_v47 = vrot.slane %v11237_v14, 6  ;;  %v2383_v53 = vld [vmem:[#allocation3 + $0x32] sm:$0x3]  ;;  %v2300_v54 = vrot.slane %v2296_v11, 4  ;;  %v2455_v56 = vrot.slane %v2451_v51, 6  ;;  %v2393_v59 = vld [vmem:[#allocation3 + $0x38] sm:$0xff] }
 0x344   :  { %2391 = vst.msk [vmem:[#allocation4 + $0x40] sm:$0xfc] %vm2177_vm11, %v2386_v48  ;;  %v2387_v58 = vrot.slane %v2383_v53, 6  ;;  %v2329_v60 = vrot.slane %v11235_v13, 4  ;;  %2302 = vrot.lane.b32.xlu1 %v2299_v50, %s10107_s20  ;;  %v2397_v61 = vrot.slane %v2393_v59, 4  ;;  %v9211_v24 = vld [vmem:[%s13309_s5 + $0xf8] sm:$0xff]  }
 0x345   :  { %2459 = vst.msk [vmem:[#allocation4 + $0x48] sm:$0xfc] %vm2177_vm11, %v2454_v47  ;;  %2289 = vrot.lane.b32.xlu0 %v2286_v49, %s10107_s20  ;;  %v2326_v62 = vld [vmem:[#allocation3 + $0x34] sm:$0x3]  ;;  %v2456_v63 = vsel %vm2171_vm12, %v2454_v47, %v2455_v56  ;;  %v2301_v7 = vsel %vm2185_vm15, %v2299_v50, %v2300_v54  ;;  %v2349_v20 = vld [vmem:[#allocation3 + $0x28] sm:$0x3]  ;;  %8837 = vmatprep.subr.bf16.mxu0 %v9211_v24 }
 0x346   :  { %2324 = vst.msk [vmem:[#allocation4 + $0x60] sm:$0xf] %vm2179_vm13, %v2320_v46  ;;  %v2388_v45 = vsel %vm2171_vm12, %v2386_v48, %v2387_v58  ;;  %v2330_v5 = vrot.slane %v2326_v62, 4  ;;  %2460 = vst.msk [vmem:[#allocation4 + $0x70] sm:$0xf] %vm2179_vm13, %v2456_v63  ;;  %v9212_v55 = vld [vmem:[%s13309_s5 + $0xb8] sm:$0xff]  }
 0x347   :  { %2334 = vst.msk [vmem:[#allocation4 + $0x60] sm:$0xf0] %vm2191_vm1, %v2329_v60  ;;  %2402 = vst.msk [vmem:[#allocation4 + $0x68] sm:$0xf0] %vm2191_vm1, %v2397_v61  ;;  %v2420_v26 = vrot.slane %v11235_v13, 6  ;;  %v2353_v28 = vrot.slane %v2349_v20, 6  ;;  %8838 = vmatpush3.bf16.msra.mxu0 %v9212_v55 }
 0x348   :  { %2392 = vst.msk [vmem:[#allocation4 + $0x68] sm:$0xf] %vm2179_vm13, %v2388_v45  ;;  %v2461_v18 = vld [vmem:[#allocation3 + $0x3c] sm:$0xff]  ;;  %v2331_v19 = vsel %vm2185_vm15, %v2329_v60, %v2330_v5  ;;  %2340 = vrot.lane.b32.xlu1 %v11144_v9, %s10107_s20  ;;  %v2462_v21 = vld [vmem:[#allocation3 + $0x44] sm:$0x3]  ;;  %v2367_v16 = vrot.slane %v11237_v14, 4 }
 0x349   :  { %2304 = vrot.lane.b32.xlu0 %v2301_v7, %s10107_s20  ;;  %v2465_v22 = vrot.slane %v2461_v18, 4  ;;  %2335 = vst.msk [vmem:[#allocation4 + $0x88] sm:$0x3f] %vm2160_vm14, %v2331_v19  ;;  %v2466_v23 = vrot.slane %v2462_v21, 4  ;;  %v2394_v25 = vld [vmem:[#allocation3 + $0x40] sm:$0x3]  ;;  %v2354_v15 = vsel %vm2171_vm12, %v2352_v27, %v2353_v28 }
 0x34a   :  { %v2398_v9 = vrot.slane %v2394_v25, 4  ;;  %v2417_v30 = vld [vmem:[#allocation3 + $0x34] sm:$0x3]  ;;  %v2337_v17 = vld [vmem:[#allocation3 + $0x1a] sm:$0x3]  ;;  %v9213_v58 = vld [vmem:[%s13309_s5 + $0x118] sm:$0xff]  }
 0x34b   :  { %2470 = vst.msk [vmem:[#allocation4 + $0x70] sm:$0xf0] %vm2191_vm1, %v2465_v22  ;;  %v2467_v29 = vsel %vm2185_vm15, %v2465_v22, %v2466_v23  ;;  %v2421_v33 = vrot.slane %v2417_v30, 6  ;;  %v2431_v34 = vld [vmem:[#allocation3 + $0x3a] sm:$0xff]  ;;  %v2432_v10 = vld [vmem:[#allocation3 + $0x42] sm:$0x3] }
 0x34c   :  { %2355 = vrot.lane.b32.xlu1 %v2352_v27, %s10107_s20  ;;  %2471 = vst.msk [vmem:[#allocation4 + $0x98] sm:$0x3f] %vm2160_vm14, %v2467_v29  ;;  %v2399_v32 = vsel %vm2185_vm15, %v2397_v61, %v2398_v9  ;;  %v2364_v12 = vld [vmem:[#allocation3 + $0x36] sm:$0x3]  ;;  %v2435_v31 = vrot.slane %v2431_v34, 4  ;;  %v2436_v36 = vrot.slane %v2432_v10, 4 }
 0x34d   :  { %2423 = vrot.lane.b32.xlu0 %v2420_v26, %s10107_s20  ;;  %2403 = vst.msk [vmem:[#allocation4 + $0x90] sm:$0x3f] %vm2160_vm14, %v2399_v32  ;;  %v2422_v35 = vsel %vm2171_vm12, %v2420_v26, %v2421_v33  ;;  %v2368_v37 = vrot.slane %v2364_v12, 4  ;;  %v9210_v54 = vld [vmem:[%s13309_s5 + $0x110] sm:$0xff]   ;;  %v2481_v45 = vld [vmem:[#allocation4 + $0x48] sm:$0xff]  ;;  %v2476_v18 = vld [vmem:[#allocation4 + $0x20] sm:$0xff] }
 0x34e   :  { %v2437_v1 = vsel %vm2185_vm15, %v2435_v31, %v2436_v36  ;;  %v2496_v19 = vpack.c.bf16 %v2481_v45, %v2476_v18  ;;  %v9217_v36 = vld [vmem:[%s13311_s7 + $0x8] ss:$16 sps:$4 sm:$0xff]   ;;  %v9274_v18 = vld [vmem:[%s13311_s7 + $0x140] ss:$16 sps:$4 sm:$0xff]  }
 0x34f   :  { %v2369_v2 = vsel %vm2185_vm15, %v2367_v16, %v2368_v37  ;;  %v9220_v37 = vld [vmem:[%s13311_s7 + $0x20] ss:$16 sps:$4 sm:$0xff]   ;;  %v9271_v45 = vld [vmem:[%s13311_s7 + $0x128] ss:$16 sps:$4 sm:$0xff]  }
 0x350   :  { %2357 = vrot.lane.b32.xlu1 %v2354_v15, %s10107_s20 }
 0x351   :  { %2342 = vrot.lane.b32.xlu0 %v2337_v17, %s10107_s20 }
 0x352   :  { %v2486_v55 = vld [vmem:[#allocation4 + $0x70] sm:$0xff] }
 0x353   :  { %v2491_v25 = vld [vmem:[#allocation4 + $0x98] sm:$0x3f] }
 0x354   :  { %2438 = vrot.lane.b32.xlu1 %v2435_v31, %s10107_s20  ;;  %v2501_v30 = vpack.c.bf16 %v2491_v25, %v2486_v55  ;;  %v9214_v31 = vld [vmem:[%s13311_s7] ss:$16 sps:$4 sm:$0xff]  }
 0x355   :  { %2425 = vrot.lane.b32.xlu0 %v2422_v35, %s10107_s20  ;;  %v9216_v35 = vld [vmem:[%s13311_s7 + $0x4] ss:$16 sps:$4 sm:$0xff]  }
 0x356   :  { %4584 = vmatprep.subr.bf16.mxu0 %v9216_v35 }
 0x358   :  { %2372 = vrot.lane.b32.xlu1 %v2369_v2, %s10107_s20  ;;  %v9223_v2 = vld [vmem:[%s13311_s7 + $0x28] ss:$16 sps:$4 sm:$0xff]  }
 0x359   :  { %2440 = vrot.lane.b32.xlu0 %v2437_v1, %s10107_s20  ;;  %v9222_v1 = vld [vmem:[%s13311_s7 + $0x24] ss:$16 sps:$4 sm:$0xff]  }
 0x35d   :  { %2370 = vrot.lane.b32.xlu0 %v2367_v16, %s10107_s20  ;;  %v9219_v16 = vld [vmem:[%s13311_s7 + $0xc] ss:$16 sps:$4 sm:$0xff]  }
 0x39c   :  { %v2201_v38 = vpop.permute.xlu0 %2200  ;;  %v2199_v39 = vpop.permute.xlu1 %2198 }
 0x39d   :  { %2207 = vst.msk [vmem:[#allocation4 + $0x28] sm:$0x3] %vm2206_vm2, %v2201_v38  ;;  %v9225_v38 = vld [vmem:[%s13311_s7 + $0x2c] ss:$16 sps:$4 sm:$0xff]  }
 0x39e   :  { %2205 = vst.msk [vmem:[#allocation4] sm:$0xff] %vm2204_vm3, %v2199_v39  ;;  %v9228_v39 = vld [vmem:[%s13311_s7 + $0x44] ss:$16 sps:$4 sm:$0xff]  }
 0x3a2   :  { %v2273_v3 = vpop.permute.xlu0 %2272  ;;  %v2275_v40 = vpop.permute.xlu1 %2274 }
 0x3a3   :  { %2278 = vst.msk [vmem:[#allocation4 + $0x8] sm:$0xff] %vm2204_vm3, %v2273_v3  ;;  %v9226_v3 = vld [vmem:[%s13311_s7 + $0x40] ss:$16 sps:$4 sm:$0xff]  }
 0x3a4   :  { %2279 = vst.msk [vmem:[#allocation4 + $0x30] sm:$0x3] %vm2206_vm2, %v2275_v40  ;;  %v9231_v40 = vld [vmem:[%s13311_s7 + $0x4c] ss:$16 sps:$4 sm:$0xff]  }
 0x3a5   :  { %v2472_v50 = vld [vmem:[#allocation4] sm:$0xff] }
 0x3a6   :  { %v2216_v4 = vpop.permute.xlu1 %2215 }
 0x3a7   :  { %2222 = vst.msk [vmem:[#allocation4 + $0x28] sm:$0xfc] %vm2221_vm4, %v2216_v4  ;;  %v9229_v4 = vld [vmem:[%s13311_s7 + $0x48] ss:$16 sps:$4 sm:$0xff]  }
 0x3aa   :  { %v2218_v41 = vpop.permute.xlu1 %2217  ;;  %v2473_v47 = vld [vmem:[#allocation4 + $0x8] sm:$0xff] }
 0x3ab   :  { %v2409_v43 = vpop.permute.xlu0 %2408  ;;  %2224 = vst.msk [vmem:[#allocation4 + $0x50] sm:$0xf] %vm2223_vm5, %v2218_v41  ;;  %v9237_v41 = vld [vmem:[%s13311_s7 + $0x6c] ss:$16 sps:$4 sm:$0xff]  }
 0x3ac   :  { %2414 = vst.msk [vmem:[#allocation4 + $0x18] sm:$0xff] %vm2204_vm3, %v2409_v43  ;;  %v9234_v43 = vld [vmem:[%s13311_s7 + $0x64] ss:$16 sps:$4 sm:$0xff]  }
 0x3ae   :  { %v2411_v44 = vpop.permute.xlu1 %2410  ;;  %v2477_v11 = vld [vmem:[#allocation4 + $0x28] sm:$0xff] }
 0x3af   :  { %v2288_v6 = vpop.permute.xlu0 %2287  ;;  %2415 = vst.msk [vmem:[#allocation4 + $0x40] sm:$0x3] %vm2206_vm2, %v2411_v44  ;;  %v2492_v51 = vpack.c.bf16 %v2477_v11, %v2472_v50  ;;  %v9235_v44 = vld [vmem:[%s13311_s7 + $0x68] ss:$16 sps:$4 sm:$0xff]   ;;  %v9238_v11 = vld [vmem:[%s13311_s7 + $0x80] ss:$16 sps:$4 sm:$0xff]  }
 0x3b0   :  { %2293 = vst.msk [vmem:[#allocation4 + $0x30] sm:$0xfc] %vm2221_vm4, %v2288_v6  ;;  %v9232_v6 = vld [vmem:[%s13311_s7 + $0x60] ss:$16 sps:$4 sm:$0xff]   ;;  %v9252_v50 = vld [vmem:[%s13311_s7 + $0xc4] ss:$16 sps:$4 sm:$0xff]  }
 0x3b2   :  { %v2235_v0 = vpop.permute.xlu1 %2234 }
 0x3b3   :  { %v2233_v8 = vpop.permute.xlu0 %2232  ;;  %2241 = vst.msk [vmem:[#allocation4 + $0x78] sm:$0x3f] %vm2240_vm7, %v2235_v0  ;;  %v2475_v22 = vld [vmem:[#allocation4 + $0x18] sm:$0xff] }
 0x3b4   :  { %2239 = vst.msk [vmem:[#allocation4 + $0x50] sm:$0xf0] %vm2238_vm6, %v2233_v8  ;;  %v9240_v8 = vld [vmem:[%s13311_s7 + $0x84] ss:$16 sps:$4 sm:$0xff]   ;;  %v9243_v0 = vld [vmem:[%s13311_s7 + $0x8c] ss:$16 sps:$4 sm:$0xff]  }
 0x3b6   :  { %v2303_v14 = vpop.permute.xlu1 %2302 }
 0x3b7   :  { %v2290_v13 = vpop.permute.xlu0 %2289  ;;  %v2478_v48 = vld [vmem:[#allocation4 + $0x30] sm:$0xff]  ;;  %2308 = vst.msk [vmem:[#allocation4 + $0x58] sm:$0xf0] %vm2238_vm6, %v2303_v14 }
 0x3b8   :  { %2294 = vst.msk [vmem:[#allocation4 + $0x58] sm:$0xf] %vm2223_vm5, %v2290_v13  ;;  %v2493_v49 = vpack.c.bf16 %v2478_v48, %v2473_v47  ;;  %v9241_v13 = vld [vmem:[%s13311_s7 + $0x88] ss:$16 sps:$4 sm:$0xff]   ;;  %v9246_v14 = vld [vmem:[%s13311_s7 + $0xa4] ss:$16 sps:$4 sm:$0xff]  }
 0x3b9   :  { %v9249_v47 = vld [vmem:[%s13311_s7 + $0xac] ss:$16 sps:$4 sm:$0xff]   ;;  %v9244_v48 = vld [vmem:[%s13311_s7 + $0xa0] ss:$16 sps:$4 sm:$0xff]  }
 0x3ba   :  { %2835 = vmatprep.mubr.bf16.mxu1 %v2493_v49  ;;  %v2341_v53 = vpop.permute.xlu1 %2340  ;;  %v2487_v60 = vld [vmem:[#allocation4 + $0x78] sm:$0x3f] }
 0x3bb   :  { %v2305_v46 = vpop.permute.xlu0 %2304  ;;  %2836 = vmatmul.mubr.bf16.vlgmr.msra.gmra.mrb[120].mxu1 %v2492_v51  ;;  %2346 = vst.msk [vmem:[#allocation4 + $0x10] sm:$0xff] %vm2204_vm3, %v2341_v53  ;;  %v2482_v59 = vld [vmem:[#allocation4 + $0x50] sm:$0xff]  ;;  %v9247_v49 = vld [vmem:[%s13311_s7 + $0xa8] ss:$16 sps:$4 sm:$0xff]   ;;  %v9255_v51 = vld [vmem:[%s13311_s7 + $0xcc] ss:$16 sps:$4 sm:$0xff]  }
 0x3bc   :  { %2309 = vst.msk [vmem:[#allocation4 + $0x80] sm:$0x3f] %vm2240_vm7, %v2305_v46  ;;  %8948 = vmatpush3.bf16.msra.mxu1 %v11223_v42  ;;  %v2497_v7 = vpack.c.bf16 %v2487_v60, %v2482_v59  ;;  %v9253_v46 = vld [vmem:[%s13311_s7 + $0xc8] ss:$16 sps:$4 sm:$0xff]   ;;  %v9258_v53 = vld [vmem:[%s13311_s7 + $0xe4] ss:$16 sps:$4 sm:$0xff]  }
 0x3bd   :  { %8949 = vmatprep.subr.bf16.mxu1 %v9208_v52  ;;  %v9262_v59 = vld [vmem:[%s13311_s7 + $0x100] ss:$16 sps:$4 sm:$0xff]   ;;  %v9267_v60 = vld [vmem:[%s13311_s7 + $0x10c] ss:$16 sps:$4 sm:$0xff]  }
 0x3be   :  { %v2356_v57 = vpop.permute.xlu1 %2355 }
 0x3bf   :  { %v2424_v56 = vpop.permute.xlu0 %2423  ;;  %2361 = vst.msk [vmem:[#allocation4 + $0x38] sm:$0xfc] %vm2221_vm4, %v2356_v57  ;;  %v2483_v62 = vld [vmem:[#allocation4 + $0x58] sm:$0xff] }
 0x3c0   :  { %2429 = vst.msk [vmem:[#allocation4 + $0x40] sm:$0xfc] %vm2221_vm4, %v2424_v56  ;;  %8950 = vmatpush3.bf16.msra.mxu1 %v9208_v52  ;;  %v9250_v52 = vld [vmem:[%s13311_s7 + $0xc0] ss:$16 sps:$4 sm:$0xff]   ;;  %v9259_v57 = vld [vmem:[%s13311_s7 + $0xe8] ss:$16 sps:$4 sm:$0xff]  }
 0x3c1   :  { %8951 = vmatprep.subr.bf16.mxu1 %v9210_v54  ;;  %v9256_v56 = vld [vmem:[%s13311_s7 + $0xe0] ss:$16 sps:$4 sm:$0xff]  }
 0x3c2   :  { %v2358_v61 = vpop.permute.xlu1 %2357  ;;  %v2474_v9 = vld [vmem:[#allocation4 + $0x10] sm:$0xff] }
 0x3c3   :  { %v2343_v42 = vpop.permute.xlu0 %2342  ;;  %v2488_v63 = vld [vmem:[#allocation4 + $0x80] sm:$0x3f]  ;;  %2362 = vst.msk [vmem:[#allocation4 + $0x60] sm:$0xf] %vm2223_vm5, %v2358_v61 }
 0x3c4   :  { %2347 = vst.msk [vmem:[#allocation4 + $0x38] sm:$0x3] %vm2206_vm2, %v2343_v42  ;;  %v2498_v5 = vpack.c.bf16 %v2488_v63, %v2483_v62  ;;  %8952 = vmatpush3.bf16.msra.mxu1 %v9210_v54  ;;  %v9261_v54 = vld [vmem:[%s13311_s7 + $0xec] ss:$16 sps:$4 sm:$0xff]   ;;  %v9265_v42 = vld [vmem:[%s13311_s7 + $0x108] ss:$16 sps:$4 sm:$0xff]  }
 0x3c5   :  { %8953 = vmatprep.subr.bf16.mxu1 %v9213_v58  ;;  %v9270_v61 = vld [vmem:[%s13311_s7 + $0x124] ss:$16 sps:$4 sm:$0xff]   ;;  %v9273_v62 = vld [vmem:[%s13311_s7 + $0x12c] ss:$16 sps:$4 sm:$0xff]   ;;  %v9268_v63 = vld [vmem:[%s13311_s7 + $0x120] ss:$16 sps:$4 sm:$0xff]  }
 0x3c6   :  { %2843 = vmatprep.mubr.bf16.mxu1 %v2498_v5  ;;  %v2439_v21 = vpop.permute.xlu1 %2438  ;;  %v9276_v5 = vld [vmem:[%s13311_s7 + $0x144] ss:$16 sps:$4 sm:$0xff]  }
 0x3c7   :  { %v2426_v20 = vpop.permute.xlu0 %2425  ;;  %2844 = vmatmul.mubr.bf16.gmra.mrb[124].mxu1 %v2497_v7  ;;  %v2480_v23 = vld [vmem:[#allocation4 + $0x40] sm:$0xff]  ;;  %2444 = vst.msk [vmem:[#allocation4 + $0x68] sm:$0xf0] %vm2238_vm6, %v2439_v21  ;;  %v9279_v7 = vld [vmem:[%s13311_s7 + $0x14c] ss:$16 sps:$4 sm:$0xff]  }
 0x3c8   :  { %2430 = vst.msk [vmem:[#allocation4 + $0x68] sm:$0xf] %vm2223_vm5, %v2426_v20  ;;  %8955 = vmatprep.mubr.msk.bf16.mxu1 %vm205_vm0, %v2496_v19  ;;  %v2495_v24 = vpack.c.bf16 %v2480_v23, %v2475_v22  ;;  %8954 = vmatpush3.bf16.msra.mxu1 %v9213_v58  ;;  %v9264_v58 = vld [vmem:[%s13311_s7 + $0x104] ss:$16 sps:$4 sm:$0xff]   ;;  %v9277_v19 = vld [vmem:[%s13311_s7 + $0x148] ss:$16 sps:$4 sm:$0xff]  }
 0x3c9   :  { %4748 = vmatprep.subr.bf16.mxu1 %v9219_v16  ;;  %v9282_v20 = vld [vmem:[%s13311_s7 + $0x164] ss:$16 sps:$4 sm:$0xff]   ;;  %v9285_v21 = vld [vmem:[%s13311_s7 + $0x16c] ss:$16 sps:$4 sm:$0xff]   ;;  %v9280_v22 = vld [vmem:[%s13311_s7 + $0x160] ss:$16 sps:$4 sm:$0xff]  }
 0x3ca   :  { %2884 = vmatprep.mubr.bf16.mxu0 %v2495_v24  ;;  %v2373_v27 = vpop.permute.xlu1 %2372  ;;  %v9283_v23 = vld [vmem:[%s13311_s7 + $0x168] ss:$16 sps:$4 sm:$0xff]  }
 0x3cb   :  { %v2441_v26 = vpop.permute.xlu0 %2440  ;;  %v2479_v28 = vld [vmem:[#allocation4 + $0x38] sm:$0xff]  ;;  %2377 = vst.msk [vmem:[#allocation4 + $0x88] sm:$0x3f] %vm2240_vm7, %v2373_v27 }
 0x3cc   :  { %2445 = vst.msk [vmem:[#allocation4 + $0x90] sm:$0x3f] %vm2240_vm7, %v2441_v26  ;;  %v2494_v29 = vpack.c.bf16 %v2479_v28, %v2474_v9 }
 0x3ce   :  { %2885 = vmatmul.mubr.bf16.vlgmr.msra.gmra.mrb[100].mxu0 %v2494_v29 }
 0x3cf   :  { %v2371_v32 = vpop.permute.xlu0 %2370  ;;  %8956 = vmatmul.mubr.msk.bf16.vlgmr.msra.gmra.mrb[128].mxu1 %vm205_vm0, %v2501_v30  ;;  %v2485_v17 = vld [vmem:[#allocation4 + $0x68] sm:$0xff]  ;;  %4585 = vmatpush1.bf16.msra.mxu0 %v9214_v31 }
 0x3d0   :  { %2376 = vst.msk [vmem:[#allocation4 + $0x60] sm:$0xf0] %vm2238_vm6, %v2371_v32  ;;  %4749 = vmatpush1.bf16.msra.mxu1 %v9217_v36  ;;  %4586 = vmatprep.subr.bf16.mxu0 %v9222_v1 }
 0x3d1   :  { %4750 = vmatprep.subr.bf16.mxu1 %v9225_v38 }
 0x3d2   :  { %v2489_v10 = vld [vmem:[#allocation4 + $0x88] sm:$0x3f] }
 0x3d3   :  { %v2490_v15 = vld [vmem:[#allocation4 + $0x90] sm:$0x3f]  ;;  %4587 = vmatpush1.bf16.msra.mxu0 %v9220_v37 }
 0x3d4   :  { %v2500_v33 = vpack.c.bf16 %v2490_v15, %v2485_v17  ;;  %4751 = vmatpush1.bf16.msra.mxu1 %v9223_v2  ;;  %4588 = vmatprep.subr.bf16.mxu0 %v9228_v39  ;;  %v8085_v15 = vld [vmem:[%s13312_s6] ss:$0 sm:$0xff] }
 0x3d5   :  { %4752 = vmatprep.subr.bf16.mxu1 %v9231_v40 }
 0x3d6   :  { %2892 = vmatprep.mubr.bf16.mxu0 %v2500_v33 }
 0x3d7   :  { %v2484_v34 = vld [vmem:[#allocation4 + $0x60] sm:$0xff]  ;;  %4589 = vmatpush1.bf16.msra.mxu0 %v9226_v3 }
 0x3d8   :  { %v2499_v12 = vpack.c.bf16 %v2489_v10, %v2484_v34  ;;  %4753 = vmatpush1.bf16.msra.mxu1 %v9229_v4  ;;  %4590 = vmatprep.subr.bf16.mxu0 %v9234_v43  ;;  %v9286_v43 = vld [vmem:[%s13311_s7 + $0x180] ss:$16 sps:$4 sm:$0xff]  }
 0x3d9   :  { %4754 = vmatprep.subr.bf16.mxu1 %v9237_v41  ;;  %v9288_v41 = vld [vmem:[%s13311_s7 + $0x184] ss:$16 sps:$4 sm:$0xff]  }
 0x3da   :  { %2893 = vmatmul.mubr.bf16.gmra.mrb[104].mxu0 %v2499_v12 }
 0x3db   :  { %4591 = vmatpush1.bf16.msra.mxu0 %v9232_v6  ;;  %v9289_v6 = vld [vmem:[%s13311_s7 + $0x188] ss:$16 sps:$4 sm:$0xff]  }
 0x3dc   :  { %4755 = vmatpush1.bf16.msra.mxu1 %v9235_v44  ;;  %4592 = vmatprep.subr.bf16.mxu0 %v9240_v8  ;;  %v9291_v44 = vld [vmem:[%s13311_s7 + $0x18c] ss:$16 sps:$4 sm:$0xff]  }
 0x3dd   :  { %4756 = vmatprep.subr.bf16.mxu1 %v9243_v0 }
 0x3df   :  { %4593 = vmatpush1.bf16.msra.mxu0 %v9238_v11 }
 0x3e0   :  { %4757 = vmatpush1.bf16.msra.mxu1 %v9241_v13  ;;  %4594 = vmatprep.subr.bf16.mxu0 %v9246_v14  ;;  %v9292_v13 = vld [vmem:[%s13311_s7 + $0x1a0] ss:$16 sps:$4 sm:$0xff]   ;;  %v9294_v14 = vld [vmem:[%s13311_s7 + $0x1a4] ss:$16 sps:$4 sm:$0xff]  }
 0x3e1   :  { %4758 = vmatprep.subr.bf16.mxu1 %v9249_v47  ;;  %v9295_v47 = vld [vmem:[%s13311_s7 + $0x1a8] ss:$16 sps:$4 sm:$0xff]  }
 0x3e3   :  { %4595 = vmatpush1.bf16.msra.mxu0 %v9244_v48  ;;  %v9297_v48 = vld [vmem:[%s13311_s7 + $0x1ac] ss:$16 sps:$4 sm:$0xff]  }
 0x3e4   :  { %4759 = vmatpush1.bf16.msra.mxu1 %v9247_v49  ;;  %4596 = vmatprep.subr.bf16.mxu0 %v9252_v50  ;;  %v9300_v50 = vld [vmem:[%s13311_s7 + $0x1c4] ss:$16 sps:$4 sm:$0xff]  }
 0x3e5   :  { %4760 = vmatprep.subr.bf16.mxu1 %v9255_v51 }
 0x3e7   :  { %4597 = vmatpush1.bf16.msra.mxu0 %v9250_v52  ;;  %v9298_v52 = vld [vmem:[%s13311_s7 + $0x1c0] ss:$16 sps:$4 sm:$0xff]  }
 0x3e8   :  { %4761 = vmatpush1.bf16.msra.mxu1 %v9253_v46  ;;  %4598 = vmatprep.subr.bf16.mxu0 %v9258_v53  ;;  %v9303_v46 = vld [vmem:[%s13311_s7 + $0x1cc] ss:$16 sps:$4 sm:$0xff]  }
 0x3e9   :  { %4762 = vmatprep.subr.bf16.mxu1 %v9261_v54 }
 0x3eb   :  { %4599 = vmatpush1.bf16.msra.mxu0 %v9256_v56 }
 0x3ec   :  { %4763 = vmatpush1.bf16.msra.mxu1 %v9259_v57  ;;  %4600 = vmatprep.subr.bf16.mxu0 %v9264_v58  ;;  %v9301_v57 = vld [vmem:[%s13311_s7 + $0x1c8] ss:$16 sps:$4 sm:$0xff]  }
 0x3ed   :  { %4764 = vmatprep.subr.bf16.mxu1 %v9267_v60 }
 0x3ef   :  { %4601 = vmatpush1.bf16.msra.mxu0 %v9262_v59 }
 0x3f0   :  { %4765 = vmatpush1.bf16.msra.mxu1 %v9265_v42  ;;  %4602 = vmatprep.subr.bf16.mxu0 %v9270_v61 }
 0x3f1   :  { %4766 = vmatprep.subr.bf16.mxu1 %v9273_v62 }
 0x3f3   :  { %4603 = vmatpush1.bf16.msra.mxu0 %v9268_v63 }
 0x3f4   :  { %4767 = vmatpush1.bf16.msra.mxu1 %v9271_v45  ;;  %4604 = vmatprep.subr.bf16.mxu0 %v9276_v5 }
 0x3f5   :  { %4768 = vmatprep.subr.bf16.mxu1 %v9279_v7 }
 0x3f7   :  { %4605 = vmatpush1.bf16.msra.mxu0 %v9274_v18 }
 0x3f8   :  { %4769 = vmatpush1.bf16.msra.mxu1 %v9277_v19  ;;  %4606 = vmatprep.subr.bf16.mxu0 %v9282_v20 }
 0x3f9   :  { %4770 = vmatprep.subr.bf16.mxu1 %v9285_v21 }
 0x3fb   :  { %4607 = vmatpush1.bf16.msra.mxu0 %v9280_v22 }
 0x3fc   :  { %4771 = vmatpush1.bf16.msra.mxu1 %v9283_v23  ;;  %4608 = vmatprep.subr.bf16.mxu0 %v9288_v41 }
 0x3fd   :  { %4772 = vmatprep.subr.bf16.mxu1 %v9291_v44 }
 0x3ff   :  { %4609 = vmatpush1.bf16.msra.mxu0 %v9286_v43 }
 0x400   :  { %4773 = vmatpush1.bf16.msra.mxu1 %v9289_v6  ;;  %4610 = vmatprep.subr.bf16.mxu0 %v9294_v14 }
 0x401   :  { %4774 = vmatprep.subr.bf16.mxu1 %v9297_v48  ;;  %v9319_v48 = vld [vmem:[%s13311_s7 + $0x224] ss:$16 sps:$4 sm:$0xff]  }
 0x403   :  { %4611 = vmatpush1.bf16.msra.mxu0 %v9292_v13 }
 0x404   :  { %4775 = vmatpush1.bf16.msra.mxu1 %v9295_v47  ;;  %4612 = vmatprep.subr.bf16.mxu0 %v9300_v50  ;;  %v9317_v50 = vld [vmem:[%s13311_s7 + $0x220] ss:$16 sps:$4 sm:$0xff]  }
 0x405   :  { %4776 = vmatprep.subr.bf16.mxu1 %v9303_v46  ;;  %v9328_v46 = vld [vmem:[%s13311_s7 + $0x24c] ss:$16 sps:$4 sm:$0xff]  }
 0x407   :  { %4613 = vmatpush1.bf16.msra.mxu0 %v9298_v52  ;;  %v9325_v52 = vld [vmem:[%s13311_s7 + $0x244] ss:$16 sps:$4 sm:$0xff]  }
 0x408   :  { %4777 = vmatpush1.bf16.msra.mxu1 %v9301_v57  ;;  %v9334_v57 = vld [vmem:[%s13311_s7 + $0x26c] ss:$16 sps:$4 sm:$0xff]  }
 0x48e   :  { %v8811_v24 = vpop.f32.mrb[120].mxu1 }
 0x48f   :  { %v8812_v55 = vpop.f32.mrb[121].mxu1 }
 0x490   :  { %v8813_v25 = vadd.f32 %v8812_v55, %v8811_v24  ;;  %v8814_v26 = vpop.f32.mrb[122].mxu1  ;;  %v9304_v24 = vld [vmem:[%s13311_s7 + $0x1e0] ss:$16 sps:$4 sm:$0xff]   ;;  %v9306_v55 = vld [vmem:[%s13311_s7 + $0x1e4] ss:$16 sps:$4 sm:$0xff]  }
 0x491   :  { %v8815_v27 = vpop.f32.mrb[123].mxu1  ;;  %4614 = vmatprep.subr.bf16.mxu0 %v9306_v55  ;;  %v9356_v55 = vld [vmem:[%s13311_s7 + $0x2e8] ss:$16 sps:$4 sm:$0xff]  }
 0x492   :  { %v8816_v9 = vadd.f32 %v8815_v27, %v8814_v26  ;;  %v2838_v31 = vadd.f32 %v8813_v25, %v8085_v15  ;;  %v9307_v26 = vld [vmem:[%s13311_s7 + $0x1e8] ss:$16 sps:$4 sm:$0xff]   ;;  %v9309_v27 = vld [vmem:[%s13311_s7 + $0x1ec] ss:$16 sps:$4 sm:$0xff]   ;;  %4615 = vmatpush1.bf16.msra.mxu0 %v9304_v24  ;;  %v9353_v24 = vld [vmem:[%s13311_s7 + $0x2e0] ss:$16 sps:$4 sm:$0xff]  }
 0x493   :  { %4778 = vmatprep.subr.bf16.mxu1 %v9309_v27  ;;  %v9359_v27 = vld [vmem:[%s13311_s7 + $0x300] ss:$16 sps:$4 sm:$0xff]  }
 0x494   :  { %v2841_v2 = vadd.f32 %v8816_v9, %v8085_v15  ;;  %v9312_v9 = vld [vmem:[%s13311_s7 + $0x204] ss:$16 sps:$4 sm:$0xff]   ;;  %4779 = vmatpush1.bf16.msra.mxu1 %v9307_v26  ;;  %v9364_v26 = vld [vmem:[%s13311_s7 + $0x30c] ss:$16 sps:$4 sm:$0xff]  }
 0x495   :  { %4625 = vmatprep.subr.bf16.mxu0 %v9312_v9  ;;  %v9362_v9 = vld [vmem:[%s13311_s7 + $0x308] ss:$16 sps:$4 sm:$0xff]  }
 0x49a   :  { %v8817_v28 = vpop.f32.mrb[124].mxu1 }
 0x49b   :  { %v8818_v29 = vpop.f32.mrb[125].mxu1 }
 0x49c   :  { %v8819_v30 = vadd.f32 %v8818_v29, %v8817_v28  ;;  %v8820_v32 = vpop.f32.mrb[126].mxu1  ;;  %v9315_v28 = vld [vmem:[%s13311_s7 + $0x20c] ss:$16 sps:$4 sm:$0xff]  }
 0x49d   :  { %v8821_v17 = vpop.f32.mrb[127].mxu1  ;;  %4789 = vmatprep.subr.bf16.mxu1 %v9315_v28  ;;  %v9367_v28 = vld [vmem:[%s13311_s7 + $0x324] ss:$16 sps:$4 sm:$0xff]  }
 0x49e   :  { %v8822_v33 = vadd.f32 %v8821_v17, %v8820_v32  ;;  %v2846_v53 = vadd.f32 %v8819_v30, %v8085_v15 }
 0x4a0   :  { %v2849_v59 = vadd.f32 %v8822_v33, %v8085_v15 }
 0x4a1   :  { %v8839_v34 = vpop.f32.mrb[100].mxu0 }
 0x4a2   :  { %v8840_v10 = vpop.f32.mrb[101].mxu0  ;;  %v8957_v12 = vpop.f32.mrb[128].mxu1 }
 0x4a3   :  { %v8841_v35 = vadd.f32 %v8840_v10, %v8839_v34  ;;  %v8842_v36 = vpop.f32.mrb[102].mxu0  ;;  %v2935_v16 = vpop.f32.mrb[129].mxu1 }
 0x4a4   :  { %v8843_v37 = vpop.f32.mrb[103].mxu0  ;;  %v8958_v1 = vpop.f32.mrb[130].mxu1 }
 0x4a5   :  { %v2887_v38 = vadd.f32 %v8841_v35, %v2838_v31  ;;  %v8844_v39 = vadd.f32 %v8843_v37, %v8842_v36  ;;  %v2938_v3 = vpop.f32.mrb[131].mxu1  ;;  %v10111_v31 = vmov 1983009808   ;;  %v3073_v36 = vlaneseq }
 0x4a6   :  { %v3071_v35 = vunpack.c.l.s4 %v10111_v31  ;;  %v9377_v31 = vld [vmem:[%s13311_s7 + $0x360] ss:$16 sps:$4 sm:$0xff]  }
 0x4a7   :  { %v2936_v40 = vadd.f32 %v2935_v16, %v2887_v38  ;;  %v2890_v4 = vadd.f32 %v8844_v39, %v2841_v2  ;;  %v11555_v2 = vshrl.u32 %v3073_v36, 7  ;;  %v9385_v36 = vld [vmem:[%s13311_s7 + $0x384] ss:$16 sps:$4 sm:$0xff]  }
 0x4a9   :  { %v2950_v8 = vmax.f32 %v2936_v40, 0.0  ;;  %v2939_v0 = vadd.f32 %v2938_v3, %v2890_v4 }
 0x4ab   :  { %2954 = vst.msk [vmem:[#allocation5] sm:$0xff] %vm205_vm0, %v2950_v8  ;;  %v2951_v11 = vmax.f32 %v2939_v0, 0.0  ;;  %v9310_v0 = vld [vmem:[%s13311_s7 + $0x200] ss:$16 sps:$4 sm:$0xff]  }
 0x4ad   :  { %2955 = vst.msk [vmem:[#allocation5 + $0x8] sm:$0xff] %vm205_vm0, %v2951_v11  ;;  %v8845_v49 = vpop.f32.mrb[104].mxu0  ;;  %v9313_v11 = vld [vmem:[%s13311_s7 + $0x208] ss:$16 sps:$4 sm:$0xff]  }
 0x4ae   :  { %v8846_v51 = vpop.f32.mrb[105].mxu0 }
 0x4af   :  { %v8847_v54 = vadd.f32 %v8846_v51, %v8845_v49  ;;  %v8848_v56 = vpop.f32.mrb[106].mxu0  ;;  %v9322_v49 = vld [vmem:[%s13311_s7 + $0x22c] ss:$16 sps:$4 sm:$0xff]   ;;  %v9320_v51 = vld [vmem:[%s13311_s7 + $0x228] ss:$16 sps:$4 sm:$0xff]  }
 0x4b0   :  { %v8849_v58 = vpop.f32.mrb[107].mxu0 }
 0x4b1   :  { %v2895_v60 = vadd.f32 %v8847_v54, %v2846_v53  ;;  %v8850_v42 = vadd.f32 %v8849_v58, %v8848_v56  ;;  %v9323_v53 = vld [vmem:[%s13311_s7 + $0x240] ss:$16 sps:$4 sm:$0xff]   ;;  %v9326_v54 = vld [vmem:[%s13311_s7 + $0x248] ss:$16 sps:$4 sm:$0xff]   ;;  %v9331_v56 = vld [vmem:[%s13311_s7 + $0x264] ss:$16 sps:$4 sm:$0xff]  }
 0x4b2   :  { %v8125_v61 = vld.sshfl [vmem:[#allocation5 + $0x6] sm:$0x3 pattern:$0x76325410]  ;;  %v2973_v62 = vld [vmem:[#allocation5 + $0x4] sm:$0x3] }
 0x4b3   :  { %v2944_v63 = vadd.f32 %v8957_v12, %v2895_v60  ;;  %v2898_v45 = vadd.f32 %v8850_v42, %v2849_v59  ;;  %2984 = vrot.lane.b32.xlu1 %v8125_v61, %s10107_s20  ;;  %v8124_v5 = vld.sshfl [vmem:[#allocation5 + $0x2] sm:$0x3 pattern:$0x76325410]  ;;  %2974 = vst.msk [vmem:[#allocation6 + $0x2] sm:$0x3] %vm2165_vm10, %v2973_v62 }
 0x4b4   :  { %v2958_v7 = vld [vmem:[#allocation5] sm:$0x3]  ;;  %2969 = vrot.lane.b32.xlu0 %v8124_v5, %s10107_s20  ;;  %v8127_v18 = vld.sshfl [vmem:[#allocation5 + $0xe] sm:$0x3 pattern:$0x76325410] }
 0x4b5   :  { %2959 = vst.msk [vmem:[#allocation6] sm:$0x3] %vm2165_vm10, %v2958_v7  ;;  %v3003_v19 = vld [vmem:[#allocation5 + $0xc] sm:$0x3]  ;;  %v2952_v20 = vmax.f32 %v2944_v63, 0.0  ;;  %v2947_v21 = vadd.f32 %v8958_v1, %v2898_v45  ;;  %v3072_v1 = vunpack.c.0.s8 %v3071_v35 }
 0x4b6   :  { %v8126_v22 = vld.sshfl [vmem:[#allocation5 + $0xa] sm:$0x3 pattern:$0x76325410]  ;;  %3004 = vst.msk [vmem:[#allocation6 + $0x6] sm:$0x3] %vm2165_vm10, %v3003_v19 }
 0x4b7   :  { %v2988_v23 = vld [vmem:[#allocation5 + $0x8] sm:$0x3]  ;;  %2956 = vst.msk [vmem:[#allocation5 + $0x10] sm:$0xff] %vm205_vm0, %v2952_v20  ;;  %v2953_v25 = vmax.f32 %v2947_v21, 0.0  ;;  %3014 = vrot.lane.b32.xlu1 %v8127_v18, %s10107_s20  ;;  %v11558_v38 = vsub.s32 %v3072_v1, %v11555_v2  ;;  %v9329_v58 = vld [vmem:[%s13311_s7 + $0x260] ss:$16 sps:$4 sm:$0xff]  }
 0x4b8   :  { %2989 = vst.msk [vmem:[#allocation6 + $0x4] sm:$0x3] %vm2165_vm10, %v2988_v23  ;;  %2999 = vrot.lane.b32.xlu0 %v8126_v22, %s10107_s20  ;;  %v9332_v59 = vld [vmem:[%s13311_s7 + $0x268] ss:$16 sps:$4 sm:$0xff]   ;;  %v9337_v60 = vld [vmem:[%s13311_s7 + $0x284] ss:$16 sps:$4 sm:$0xff]  }
 0x4b9   :  { %2957 = vst.msk [vmem:[#allocation5 + $0x18] sm:$0x3f] %vm2160_vm14, %v2953_v25  ;;  %v9340_v42 = vld [vmem:[%s13311_s7 + $0x28c] ss:$16 sps:$4 sm:$0xff]   ;;  %v9335_v61 = vld [vmem:[%s13311_s7 + $0x280] ss:$16 sps:$4 sm:$0xff]  }
 0x4ba   :  { %v9338_v62 = vld [vmem:[%s13311_s7 + $0x288] ss:$16 sps:$4 sm:$0xff]   ;;  %v9343_v63 = vld [vmem:[%s13311_s7 + $0x2a4] ss:$16 sps:$4 sm:$0xff]   ;;  %v9346_v45 = vld [vmem:[%s13311_s7 + $0x2ac] ss:$16 sps:$4 sm:$0xff]  }
 0x4bb   :  { %v9341_v5 = vld [vmem:[%s13311_s7 + $0x2a0] ss:$16 sps:$4 sm:$0xff]   ;;  %v9344_v7 = vld [vmem:[%s13311_s7 + $0x2a8] ss:$16 sps:$4 sm:$0xff]   ;;  %v9349_v18 = vld [vmem:[%s13311_s7 + $0x2c4] ss:$16 sps:$4 sm:$0xff]  }
 0x4bc   :  { %v9352_v19 = vld [vmem:[%s13311_s7 + $0x2cc] ss:$16 sps:$4 sm:$0xff]   ;;  %v9347_v20 = vld [vmem:[%s13311_s7 + $0x2c0] ss:$16 sps:$4 sm:$0xff]   ;;  %v9350_v21 = vld [vmem:[%s13311_s7 + $0x2c8] ss:$16 sps:$4 sm:$0xff]  }
 0x4bd   :  { %v9355_v22 = vld [vmem:[%s13311_s7 + $0x2e4] ss:$16 sps:$4 sm:$0xff]   ;;  %v9358_v23 = vld [vmem:[%s13311_s7 + $0x2ec] ss:$16 sps:$4 sm:$0xff]   ;;  %v9380_v35 = vld [vmem:[%s13311_s7 + $0x368] ss:$16 sps:$4 sm:$0xff]  }
 0x4be   :  { %v8129_v29 = vld.sshfl [vmem:[#allocation5 + $0x16] sm:$0x3 pattern:$0x76325410]  ;;  %v3033_v30 = vld [vmem:[#allocation5 + $0x14] sm:$0x3] }
 0x4bf   :  { %3044 = vrot.lane.b32.xlu1 %v8129_v29, %s10107_s20  ;;  %v8128_v32 = vld.sshfl [vmem:[#allocation5 + $0x12] sm:$0x3 pattern:$0x76325410]  ;;  %3034 = vst.msk [vmem:[#allocation6 + $0xa] sm:$0x3] %vm2165_vm10, %v3033_v30 }
 0x4c0   :  { %v3018_v17 = vld [vmem:[#allocation5 + $0x10] sm:$0x3]  ;;  %v3063_v15 = vld [vmem:[#allocation5 + $0x1c] sm:$0x3]  ;;  %3029 = vrot.lane.b32.xlu0 %v8128_v32, %s10107_s20  ;;  %v3048_v33 = vld [vmem:[#allocation5 + $0x18] sm:$0x3] }
 0x4c1   :  { %3019 = vst.msk [vmem:[#allocation6 + $0x8] sm:$0x3] %vm2165_vm10, %v3018_v17  ;;  %3064 = vst.msk [vmem:[#allocation6 + $0xe] sm:$0x3] %vm2165_vm10, %v3063_v15  ;;  %v9361_v25 = vld [vmem:[%s13311_s7 + $0x304] ss:$16 sps:$4 sm:$0xff]  }
 0x4c2   :  { %3049 = vst.msk [vmem:[#allocation6 + $0xc] sm:$0x3] %vm2165_vm10, %v3048_v33  ;;  %v8130_v34 = vld.sshfl [vmem:[#allocation5 + $0x1a] sm:$0x3 pattern:$0x76325410] }
 0x4c3   :  { %v9370_v29 = vld [vmem:[%s13311_s7 + $0x32c] ss:$16 sps:$4 sm:$0xff]   ;;  %v9365_v30 = vld [vmem:[%s13311_s7 + $0x320] ss:$16 sps:$4 sm:$0xff]   ;;  %v9368_v32 = vld [vmem:[%s13311_s7 + $0x328] ss:$16 sps:$4 sm:$0xff]  }
 0x4c4   :  { %3059 = vrot.lane.b32.xlu0 %v8130_v34, %s10107_s20  ;;  %v9373_v17 = vld [vmem:[%s13311_s7 + $0x344] ss:$16 sps:$4 sm:$0xff]   ;;  %v9376_v15 = vld [vmem:[%s13311_s7 + $0x34c] ss:$16 sps:$4 sm:$0xff]   ;;  %v9371_v33 = vld [vmem:[%s13311_s7 + $0x340] ss:$16 sps:$4 sm:$0xff]  }
 0x4c5   :  { %v9374_v34 = vld [vmem:[%s13311_s7 + $0x348] ss:$16 sps:$4 sm:$0xff]  }
 0x4c6   :  { %v9386_v1 = vld [vmem:[%s13311_s7 + $0x388] ss:$16 sps:$4 sm:$0xff]  }
 0x525   :  { %v2985_v10 = vpop.permute.xlu1 %2984 }
 0x526   :  { %2987 = vst.msk [vmem:[#allocation6 + $0x2] sm:$0x3] %vm2206_vm2, %v2985_v10  ;;  %v2970_v12 = vpop.permute.xlu0 %2969  ;;  %v9379_v10 = vld [vmem:[%s13311_s7 + $0x364] ss:$16 sps:$4 sm:$0xff]  }
 0x527   :  { %2972 = vst.msk [vmem:[#allocation6] sm:$0x3] %vm2206_vm2, %v2970_v12  ;;  %v9382_v12 = vld [vmem:[%s13311_s7 + $0x36c] ss:$16 sps:$4 sm:$0xff]  }
 0x529   :  { %v3015_v16 = vpop.permute.xlu1 %3014 }
 0x52a   :  { %3017 = vst.msk [vmem:[#allocation6 + $0x6] sm:$0x3] %vm2206_vm2, %v3015_v16  ;;  %v3000_v37 = vpop.permute.xlu0 %2999  ;;  %v9388_v16 = vld [vmem:[%s13311_s7 + $0x38c] ss:$16 sps:$4 sm:$0xff]  }
 0x52b   :  { %3002 = vst.msk [vmem:[#allocation6 + $0x4] sm:$0x3] %vm2206_vm2, %v3000_v37  ;;  %v9383_v37 = vld [vmem:[%s13311_s7 + $0x380] ss:$16 sps:$4 sm:$0xff]  }
 0x531   :  { %v3045_v39 = vpop.permute.xlu1 %3044 }
 0x532   :  { %3047 = vst.msk [vmem:[#allocation6 + $0xa] sm:$0x3] %vm2206_vm2, %v3045_v39  ;;  %v3030_v3 = vpop.permute.xlu0 %3029  ;;  %v3065_v40 = vld [vmem:[#allocation6] sm:$0xff] }
 0x533   :  { %3032 = vst.msk [vmem:[#allocation6 + $0x8] sm:$0x3] %vm2206_vm2, %v3030_v3  ;;  %v3076_v4 = vrot.slane %v3065_v40, %v11558_v38  ;;  %v3069_v43 = vcombine.high %v3065_v40, %v3065_v40  ;;  %v9391_v39 = vld [vmem:[%s13311_s7 + $0x3a4] ss:$16 sps:$4 sm:$0xff]   ;;  %v9394_v3 = vld [vmem:[%s13311_s7 + $0x3ac] ss:$16 sps:$4 sm:$0xff]  }
 0x534   :  { %v9389_v40 = vld [vmem:[%s13311_s7 + $0x3a0] ss:$16 sps:$4 sm:$0xff]  }
 0x535   :  { %v3084_v41 = vcombine.high %v3076_v4, %v3076_v4  ;;  %v11564_v6 = vrot.slane %v3069_v43, %v11558_v38  ;;  %v3111_v14 = vpack.c.bf16 %v3076_v4, %v3076_v4  ;;  %v9392_v4 = vld [vmem:[%s13311_s7 + $0x3a8] ss:$16 sps:$4 sm:$0xff]   ;;  %v9397_v43 = vld [vmem:[%s13311_s7 + $0x3c4] ss:$16 sps:$4 sm:$0xff]  }
 0x536   :  { %v3060_v44 = vpop.permute.xlu0 %3059 }
 0x537   :  { %3062 = vst.msk [vmem:[#allocation6 + $0xc] sm:$0x3] %vm2206_vm2, %v3060_v44  ;;  %v3112_v8 = vpack.c.bf16 %v3084_v41, %v3084_v41  ;;  %v3085_v13 = vcombine.high %v11564_v6, %v11564_v6  ;;  %v9400_v41 = vld [vmem:[%s13311_s7 + $0x3cc] ss:$16 sps:$4 sm:$0xff]   ;;  %v9395_v44 = vld [vmem:[%s13311_s7 + $0x3c0] ss:$16 sps:$4 sm:$0xff]  }
 0x539   :  { %4616 = vmatprep.mubr.bf16.mxu0 %v3112_v8  ;;  %4780 = vmatprep.mubr.bf16.mxu1 %v3112_v8  ;;  %v3114_v47 = vpack.c.bf16 %v3085_v13, %v3085_v13  ;;  %v9406_v13 = vld [vmem:[%s13311_s7 + $0x3ec] ss:$16 sps:$4 sm:$0xff]  }
 0x53a   :  { %4617 = vmatmul.mubr.bf16.vlgmr.msra.gmra.mrb[108].mxu0 %v3111_v14  ;;  %4781 = vmatmul.mubr.bf16.vlgmr.msra.gmra.mrb[132].mxu1 %v3111_v14 }
 0x53b   :  { %4626 = vmatpush1.bf16.msra.mxu0 %v9310_v0  ;;  %4790 = vmatpush1.bf16.msra.mxu1 %v9313_v11  ;;  %v9398_v0 = vld [vmem:[%s13311_s7 + $0x3c8] ss:$16 sps:$4 sm:$0xff]   ;;  %v9403_v11 = vld [vmem:[%s13311_s7 + $0x3e4] ss:$16 sps:$4 sm:$0xff]  }
 0x53c   :  { %4657 = vmatprep.mubr.bf16.mxu0 %v3114_v47  ;;  %4821 = vmatprep.mubr.bf16.mxu1 %v3114_v47  ;;  %v9401_v47 = vld [vmem:[%s13311_s7 + $0x3e0] ss:$16 sps:$4 sm:$0xff]  }
 0x53d   :  { %4627 = vmatprep.subr.bf16.mxu0 %v9319_v48  ;;  %4791 = vmatprep.subr.bf16.mxu1 %v9322_v49  ;;  %v9404_v48 = vld [vmem:[%s13311_s7 + $0x3e8] ss:$16 sps:$4 sm:$0xff]   ;;  %v9409_v49 = vld [vmem:[%s13311_s7 + $0x404] ss:$16 sps:$4 sm:$0xff]  }
 0x53e   :  { %v11740_v8 = vld [vmem:[#allocation6 + $0x8] sm:$0xff] }
 0x53f   :  { %4628 = vmatpush1.bf16.msra.mxu0 %v9317_v50  ;;  %4792 = vmatpush1.bf16.msra.mxu1 %v9320_v51  ;;  %v11753_v14 = vrot.slane %v11740_v8, %v11558_v38  ;;  %v9412_v50 = vld [vmem:[%s13311_s7 + $0x40c] ss:$16 sps:$4 sm:$0xff]  }
 0x540   :  { %4629 = vmatprep.subr.bf16.mxu0 %v9325_v52  ;;  %4793 = vmatprep.subr.bf16.mxu1 %v9328_v46  ;;  %v9407_v52 = vld [vmem:[%s13311_s7 + $0x400] ss:$16 sps:$4 sm:$0xff]   ;;  %v3113_v46 = vpack.c.bf16 %v11564_v6, %v11564_v6  ;;  %v9417_v6 = vld [vmem:[%s13311_s7 + $0x428] ss:$16 sps:$4 sm:$0xff]  }
 0x541   :  { %v3101_v51 = vcombine.high %v11753_v14, %v11753_v14 }
 0x543   :  { %4630 = vmatpush1.bf16.msra.mxu0 %v9323_v53  ;;  %4794 = vmatpush1.bf16.msra.mxu1 %v9326_v54  ;;  %v9410_v53 = vld [vmem:[%s13311_s7 + $0x408] ss:$16 sps:$4 sm:$0xff]   ;;  %v9416_v54 = vld [vmem:[%s13311_s7 + $0x424] ss:$16 sps:$4 sm:$0xff]  }
 0x544   :  { %4631 = vmatprep.subr.bf16.mxu0 %v9331_v56  ;;  %4795 = vmatprep.subr.bf16.mxu1 %v9334_v57  ;;  %v3116_v56 = vpack.c.bf16 %v3101_v51, %v3101_v51  ;;  %v9414_v57 = vld [vmem:[%s13311_s7 + $0x420] ss:$16 sps:$4 sm:$0xff]  }
 0x545   :  { %v9492_v51 = vld [vmem:[%s13311_s7 + $0x5c0] ss:$16 sps:$4 sm:$0xff]  }
 0x547   :  { %4632 = vmatpush1.bf16.msra.mxu0 %v9329_v58  ;;  %4796 = vmatpush1.bf16.msra.mxu1 %v9332_v59  ;;  %v9419_v58 = vld [vmem:[%s13311_s7 + $0x42c] ss:$16 sps:$4 sm:$0xff]   ;;  %v9422_v59 = vld [vmem:[%s13311_s7 + $0x444] ss:$16 sps:$4 sm:$0xff]  }
 0x548   :  { %4633 = vmatprep.subr.bf16.mxu0 %v9337_v60  ;;  %4797 = vmatprep.subr.bf16.mxu1 %v9340_v42  ;;  %v9420_v60 = vld [vmem:[%s13311_s7 + $0x440] ss:$16 sps:$4 sm:$0xff]   ;;  %v9425_v42 = vld [vmem:[%s13311_s7 + $0x44c] ss:$16 sps:$4 sm:$0xff]  }
 0x54b   :  { %4634 = vmatpush1.bf16.msra.mxu0 %v9335_v61  ;;  %4798 = vmatpush1.bf16.msra.mxu1 %v9338_v62  ;;  %v9423_v61 = vld [vmem:[%s13311_s7 + $0x448] ss:$16 sps:$4 sm:$0xff]   ;;  %v9428_v62 = vld [vmem:[%s13311_s7 + $0x464] ss:$16 sps:$4 sm:$0xff]  }
 0x54c   :  { %4635 = vmatprep.subr.bf16.mxu0 %v9343_v63  ;;  %4799 = vmatprep.subr.bf16.mxu1 %v9346_v45  ;;  %v9426_v63 = vld [vmem:[%s13311_s7 + $0x460] ss:$16 sps:$4 sm:$0xff]   ;;  %v9431_v45 = vld [vmem:[%s13311_s7 + $0x46c] ss:$16 sps:$4 sm:$0xff]  }
 0x54f   :  { %4636 = vmatpush1.bf16.msra.mxu0 %v9341_v5  ;;  %4800 = vmatpush1.bf16.msra.mxu1 %v9344_v7  ;;  %v9429_v5 = vld [vmem:[%s13311_s7 + $0x468] ss:$16 sps:$4 sm:$0xff]   ;;  %v9434_v7 = vld [vmem:[%s13311_s7 + $0x484] ss:$16 sps:$4 sm:$0xff]  }
 0x550   :  { %4637 = vmatprep.subr.bf16.mxu0 %v9349_v18  ;;  %4801 = vmatprep.subr.bf16.mxu1 %v9352_v19  ;;  %v9432_v18 = vld [vmem:[%s13311_s7 + $0x480] ss:$16 sps:$4 sm:$0xff]   ;;  %v9437_v19 = vld [vmem:[%s13311_s7 + $0x48c] ss:$16 sps:$4 sm:$0xff]  }
 0x553   :  { %4638 = vmatpush1.bf16.msra.mxu0 %v9347_v20  ;;  %4802 = vmatpush1.bf16.msra.mxu1 %v9350_v21  ;;  %v9435_v20 = vld [vmem:[%s13311_s7 + $0x488] ss:$16 sps:$4 sm:$0xff]   ;;  %v9440_v21 = vld [vmem:[%s13311_s7 + $0x4a4] ss:$16 sps:$4 sm:$0xff]  }
 0x554   :  { %4639 = vmatprep.subr.bf16.mxu0 %v9355_v22  ;;  %4803 = vmatprep.subr.bf16.mxu1 %v9358_v23  ;;  %v9438_v22 = vld [vmem:[%s13311_s7 + $0x4a0] ss:$16 sps:$4 sm:$0xff]   ;;  %v9443_v23 = vld [vmem:[%s13311_s7 + $0x4ac] ss:$16 sps:$4 sm:$0xff]  }
 0x557   :  { %4640 = vmatpush1.bf16.msra.mxu0 %v9353_v24  ;;  %4804 = vmatpush1.bf16.msra.mxu1 %v9356_v55  ;;  %v9441_v24 = vld [vmem:[%s13311_s7 + $0x4a8] ss:$16 sps:$4 sm:$0xff]   ;;  %v9446_v55 = vld [vmem:[%s13311_s7 + $0x4c4] ss:$16 sps:$4 sm:$0xff]  }
 0x558   :  { %4641 = vmatprep.subr.bf16.mxu0 %v9361_v25  ;;  %4805 = vmatprep.subr.bf16.mxu1 %v9364_v26  ;;  %v9444_v25 = vld [vmem:[%s13311_s7 + $0x4c0] ss:$16 sps:$4 sm:$0xff]   ;;  %v9449_v26 = vld [vmem:[%s13311_s7 + $0x4cc] ss:$16 sps:$4 sm:$0xff]  }
 0x55b   :  { %4642 = vmatpush1.bf16.msra.mxu0 %v9359_v27  ;;  %4806 = vmatpush1.bf16.msra.mxu1 %v9362_v9  ;;  %v9447_v27 = vld [vmem:[%s13311_s7 + $0x4c8] ss:$16 sps:$4 sm:$0xff]   ;;  %v9452_v9 = vld [vmem:[%s13311_s7 + $0x4e4] ss:$16 sps:$4 sm:$0xff]  }
 0x55c   :  { %4643 = vmatprep.subr.bf16.mxu0 %v9367_v28  ;;  %4807 = vmatprep.subr.bf16.mxu1 %v9370_v29  ;;  %v9450_v28 = vld [vmem:[%s13311_s7 + $0x4e0] ss:$16 sps:$4 sm:$0xff]   ;;  %v9455_v29 = vld [vmem:[%s13311_s7 + $0x4ec] ss:$16 sps:$4 sm:$0xff]  }
 0x55f   :  { %4644 = vmatpush1.bf16.msra.mxu0 %v9365_v30  ;;  %4808 = vmatpush1.bf16.msra.mxu1 %v9368_v32  ;;  %v9453_v30 = vld [vmem:[%s13311_s7 + $0x4e8] ss:$16 sps:$4 sm:$0xff]   ;;  %v9458_v32 = vld [vmem:[%s13311_s7 + $0x504] ss:$16 sps:$4 sm:$0xff]  }
 0x560   :  { %4645 = vmatprep.subr.bf16.mxu0 %v9373_v17  ;;  %4809 = vmatprep.subr.bf16.mxu1 %v9376_v15  ;;  %v9456_v17 = vld [vmem:[%s13311_s7 + $0x500] ss:$16 sps:$4 sm:$0xff]   ;;  %v9461_v15 = vld [vmem:[%s13311_s7 + $0x50c] ss:$16 sps:$4 sm:$0xff]  }
 0x563   :  { %4646 = vmatpush1.bf16.msra.mxu0 %v9371_v33  ;;  %4810 = vmatpush1.bf16.msra.mxu1 %v9374_v34  ;;  %v9459_v33 = vld [vmem:[%s13311_s7 + $0x508] ss:$16 sps:$4 sm:$0xff]   ;;  %v9464_v34 = vld [vmem:[%s13311_s7 + $0x524] ss:$16 sps:$4 sm:$0xff]  }
 0x564   :  { %4647 = vmatprep.subr.bf16.mxu0 %v9379_v10  ;;  %4811 = vmatprep.subr.bf16.mxu1 %v9382_v12  ;;  %v9462_v10 = vld [vmem:[%s13311_s7 + $0x520] ss:$16 sps:$4 sm:$0xff]   ;;  %v9467_v12 = vld [vmem:[%s13311_s7 + $0x52c] ss:$16 sps:$4 sm:$0xff]  }
 0x567   :  { %4648 = vmatpush1.bf16.msra.mxu0 %v9377_v31  ;;  %4812 = vmatpush1.bf16.msra.mxu1 %v9380_v35  ;;  %v9465_v31 = vld [vmem:[%s13311_s7 + $0x528] ss:$16 sps:$4 sm:$0xff]   ;;  %v9470_v35 = vld [vmem:[%s13311_s7 + $0x544] ss:$16 sps:$4 sm:$0xff]  }
 0x568   :  { %4649 = vmatprep.subr.bf16.mxu0 %v9385_v36  ;;  %4813 = vmatprep.subr.bf16.mxu1 %v9388_v16  ;;  %v9468_v36 = vld [vmem:[%s13311_s7 + $0x540] ss:$16 sps:$4 sm:$0xff]   ;;  %v9473_v16 = vld [vmem:[%s13311_s7 + $0x54c] ss:$16 sps:$4 sm:$0xff]  }
 0x56b   :  { %4650 = vmatpush1.bf16.msra.mxu0 %v9383_v37  ;;  %4814 = vmatpush1.bf16.msra.mxu1 %v9386_v1  ;;  %v9471_v37 = vld [vmem:[%s13311_s7 + $0x548] ss:$16 sps:$4 sm:$0xff]   ;;  %v9476_v1 = vld [vmem:[%s13311_s7 + $0x564] ss:$16 sps:$4 sm:$0xff]  }
 0x56c   :  { %4651 = vmatprep.subr.bf16.mxu0 %v9391_v39  ;;  %4815 = vmatprep.subr.bf16.mxu1 %v9394_v3  ;;  %v9474_v39 = vld [vmem:[%s13311_s7 + $0x560] ss:$16 sps:$4 sm:$0xff]   ;;  %v9479_v3 = vld [vmem:[%s13311_s7 + $0x56c] ss:$16 sps:$4 sm:$0xff]  }
 0x56f   :  { %4652 = vmatpush1.bf16.msra.mxu0 %v9389_v40  ;;  %4816 = vmatpush1.bf16.msra.mxu1 %v9392_v4  ;;  %v9477_v40 = vld [vmem:[%s13311_s7 + $0x568] ss:$16 sps:$4 sm:$0xff]   ;;  %v9482_v4 = vld [vmem:[%s13311_s7 + $0x584] ss:$16 sps:$4 sm:$0xff]  }
 0x570   :  { %4653 = vmatprep.subr.bf16.mxu0 %v9397_v43  ;;  %4817 = vmatprep.subr.bf16.mxu1 %v9400_v41  ;;  %v9485_v43 = vld [vmem:[%s13311_s7 + $0x58c] ss:$16 sps:$4 sm:$0xff]   ;;  %v9480_v41 = vld [vmem:[%s13311_s7 + $0x580] ss:$16 sps:$4 sm:$0xff]  }
 0x573   :  { %4654 = vmatpush1.bf16.msra.mxu0 %v9395_v44  ;;  %4818 = vmatpush1.bf16.msra.mxu1 %v9398_v0  ;;  %v9483_v44 = vld [vmem:[%s13311_s7 + $0x588] ss:$16 sps:$4 sm:$0xff]   ;;  %v9488_v0 = vld [vmem:[%s13311_s7 + $0x5a4] ss:$16 sps:$4 sm:$0xff]  }
 0x574   :  { %4655 = vmatprep.subr.bf16.mxu0 %v9403_v11  ;;  %4819 = vmatprep.subr.bf16.mxu1 %v9406_v13  ;;  %v9491_v11 = vld [vmem:[%s13311_s7 + $0x5ac] ss:$16 sps:$4 sm:$0xff]   ;;  %v9486_v13 = vld [vmem:[%s13311_s7 + $0x5a0] ss:$16 sps:$4 sm:$0xff]  }
 0x577   :  { %4656 = vmatpush1.bf16.msra.mxu0 %v9401_v47  ;;  %4820 = vmatpush1.bf16.msra.mxu1 %v9404_v48  ;;  %v9489_v47 = vld [vmem:[%s13311_s7 + $0x5a8] ss:$16 sps:$4 sm:$0xff]   ;;  %v9494_v48 = vld [vmem:[%s13311_s7 + $0x5c4] ss:$16 sps:$4 sm:$0xff]  }
 0x578   :  { %4666 = vmatprep.subr.bf16.mxu0 %v9409_v49  ;;  %4830 = vmatprep.subr.bf16.mxu1 %v9412_v50  ;;  %v9497_v49 = vld [vmem:[%s13311_s7 + $0x5cc] ss:$16 sps:$4 sm:$0xff]   ;;  %v3086_v50 = vcombine.high %v11740_v8, %v11740_v8 }
 0x579   :  { %v9503_v8 = vld [vmem:[%s13311_s7 + $0x5ec] ss:$16 sps:$4 sm:$0xff]  }
 0x57a   :  { %4658 = vmatmul.mubr.bf16.vlgmr.msra.gmra.mrb[108].mxu0 %v3113_v46  ;;  %4822 = vmatmul.mubr.bf16.vlgmr.msra.gmra.mrb[132].mxu1 %v3113_v46  ;;  %v9500_v46 = vld [vmem:[%s13311_s7 + $0x5e4] ss:$16 sps:$4 sm:$0xff]  }
 0x57b   :  { %4667 = vmatpush1.bf16.msra.mxu0 %v9407_v52  ;;  %4698 = vmatprep.mubr.bf16.mxu0 %v3116_v56  ;;  %v9495_v52 = vld [vmem:[%s13311_s7 + $0x5c8] ss:$16 sps:$4 sm:$0xff]  }
 0x57c   :  { %4831 = vmatpush1.bf16.msra.mxu1 %v9410_v53  ;;  %4862 = vmatprep.mubr.bf16.mxu1 %v3116_v56  ;;  %v11954_v53 = vrot.slane %v3086_v50, %v11558_v38  ;;  %v9501_v56 = vld [vmem:[%s13311_s7 + $0x5e8] ss:$16 sps:$4 sm:$0xff]   ;;  %v9509_v38 = vld [vmem:[%s13311_s7 + $0x60c] ss:$16 sps:$4 sm:$0xff]  }
 0x57d   :  { %4668 = vmatprep.subr.bf16.mxu0 %v9416_v54  ;;  %4832 = vmatprep.subr.bf16.mxu1 %v9419_v58  ;;  %v9498_v54 = vld [vmem:[%s13311_s7 + $0x5e0] ss:$16 sps:$4 sm:$0xff]   ;;  %v9579_v50 = vld [vmem:[%s13313_s9 + $0x8] ss:$16 sps:$4 sm:$0xff]  }
 0x57e   :  { %v3102_v58 = vcombine.high %v11954_v53, %v11954_v53 }
 0x57f   :  { %4669 = vmatpush1.bf16.msra.mxu0 %v9414_v57  ;;  %v9506_v57 = vld [vmem:[%s13311_s7 + $0x604] ss:$16 sps:$4 sm:$0xff]  }
 0x580   :  { %4833 = vmatpush1.bf16.msra.mxu1 %v9417_v6  ;;  %4670 = vmatprep.subr.bf16.mxu0 %v9422_v59  ;;  %v9504_v6 = vld [vmem:[%s13311_s7 + $0x600] ss:$16 sps:$4 sm:$0xff]   ;;  %v3115_v59 = vpack.c.bf16 %v11753_v14, %v11753_v14 }
 0x581   :  { %4834 = vmatprep.subr.bf16.mxu1 %v9425_v42  ;;  %v9512_v42 = vld [vmem:[%s13311_s7 + $0x624] ss:$16 sps:$4 sm:$0xff]   ;;  %v9510_v14 = vld [vmem:[%s13311_s7 + $0x620] ss:$16 sps:$4 sm:$0xff]  }
 0x583   :  { %4671 = vmatpush1.bf16.msra.mxu0 %v9420_v60  ;;  %v9507_v60 = vld [vmem:[%s13311_s7 + $0x608] ss:$16 sps:$4 sm:$0xff]  }
 0x584   :  { %4835 = vmatpush1.bf16.msra.mxu1 %v9423_v61  ;;  %4672 = vmatprep.subr.bf16.mxu0 %v9428_v62  ;;  %v3118_v61 = vpack.c.bf16 %v3102_v58, %v3102_v58  ;;  %v9515_v62 = vld [vmem:[%s13311_s7 + $0x62c] ss:$16 sps:$4 sm:$0xff]  }
 0x585   :  { %4836 = vmatprep.subr.bf16.mxu1 %v9431_v45  ;;  %v9518_v45 = vld [vmem:[%s13311_s7 + $0x644] ss:$16 sps:$4 sm:$0xff]   ;;  %v9599_v58 = vld [vmem:[%s13313_s9 + $0x6c] ss:$16 sps:$4 sm:$0xff]  }
 0x587   :  { %4673 = vmatpush1.bf16.msra.mxu0 %v9426_v63  ;;  %v9513_v63 = vld [vmem:[%s13311_s7 + $0x628] ss:$16 sps:$4 sm:$0xff]  }
 0x588   :  { %4837 = vmatpush1.bf16.msra.mxu1 %v9429_v5  ;;  %4674 = vmatprep.subr.bf16.mxu0 %v9434_v7  ;;  %v9521_v5 = vld [vmem:[%s13311_s7 + $0x64c] ss:$16 sps:$4 sm:$0xff]   ;;  %v9516_v7 = vld [vmem:[%s13311_s7 + $0x640] ss:$16 sps:$4 sm:$0xff]  }
 0x589   :  { %4838 = vmatprep.subr.bf16.mxu1 %v9437_v19  ;;  %v9524_v19 = vld [vmem:[%s13311_s7 + $0x664] ss:$16 sps:$4 sm:$0xff]  }
 0x58b   :  { %4675 = vmatpush1.bf16.msra.mxu0 %v9432_v18  ;;  %v9519_v18 = vld [vmem:[%s13311_s7 + $0x648] ss:$16 sps:$4 sm:$0xff]  }
 0x58c   :  { %4839 = vmatpush1.bf16.msra.mxu1 %v9435_v20  ;;  %4676 = vmatprep.subr.bf16.mxu0 %v9440_v21  ;;  %v9527_v20 = vld [vmem:[%s13311_s7 + $0x66c] ss:$16 sps:$4 sm:$0xff]   ;;  %v9522_v21 = vld [vmem:[%s13311_s7 + $0x660] ss:$16 sps:$4 sm:$0xff]  }
 0x58d   :  { %4840 = vmatprep.subr.bf16.mxu1 %v9443_v23  ;;  %v9530_v23 = vld [vmem:[%s13311_s7 + $0x684] ss:$16 sps:$4 sm:$0xff]  }
 0x58f   :  { %4677 = vmatpush1.bf16.msra.mxu0 %v9438_v22  ;;  %v9525_v22 = vld [vmem:[%s13311_s7 + $0x668] ss:$16 sps:$4 sm:$0xff]  }
 0x590   :  { %4841 = vmatpush1.bf16.msra.mxu1 %v9441_v24  ;;  %4678 = vmatprep.subr.bf16.mxu0 %v9446_v55  ;;  %v9533_v24 = vld [vmem:[%s13311_s7 + $0x68c] ss:$16 sps:$4 sm:$0xff]   ;;  %v9528_v55 = vld [vmem:[%s13311_s7 + $0x680] ss:$16 sps:$4 sm:$0xff]  }
 0x591   :  { %4842 = vmatprep.subr.bf16.mxu1 %v9449_v26  ;;  %v9536_v26 = vld [vmem:[%s13311_s7 + $0x6a4] ss:$16 sps:$4 sm:$0xff]  }
 0x593   :  { %4679 = vmatpush1.bf16.msra.mxu0 %v9444_v25  ;;  %v9531_v25 = vld [vmem:[%s13311_s7 + $0x688] ss:$16 sps:$4 sm:$0xff]  }
 0x594   :  { %4843 = vmatpush1.bf16.msra.mxu1 %v9447_v27  ;;  %4680 = vmatprep.subr.bf16.mxu0 %v9452_v9  ;;  %v9539_v27 = vld [vmem:[%s13311_s7 + $0x6ac] ss:$16 sps:$4 sm:$0xff]   ;;  %v9534_v9 = vld [vmem:[%s13311_s7 + $0x6a0] ss:$16 sps:$4 sm:$0xff]  }
 0x595   :  { %4844 = vmatprep.subr.bf16.mxu1 %v9455_v29  ;;  %v9542_v29 = vld [vmem:[%s13311_s7 + $0x6c4] ss:$16 sps:$4 sm:$0xff]  }
 0x597   :  { %4681 = vmatpush1.bf16.msra.mxu0 %v9450_v28  ;;  %v9537_v28 = vld [vmem:[%s13311_s7 + $0x6a8] ss:$16 sps:$4 sm:$0xff]  }
 0x598   :  { %4845 = vmatpush1.bf16.msra.mxu1 %v9453_v30  ;;  %4682 = vmatprep.subr.bf16.mxu0 %v9458_v32  ;;  %v9545_v30 = vld [vmem:[%s13311_s7 + $0x6cc] ss:$16 sps:$4 sm:$0xff]   ;;  %v9540_v32 = vld [vmem:[%s13311_s7 + $0x6c0] ss:$16 sps:$4 sm:$0xff]  }
 0x599   :  { %4846 = vmatprep.subr.bf16.mxu1 %v9461_v15  ;;  %v9548_v15 = vld [vmem:[%s13311_s7 + $0x6e4] ss:$16 sps:$4 sm:$0xff]  }
 0x59b   :  { %4683 = vmatpush1.bf16.msra.mxu0 %v9456_v17  ;;  %v9543_v17 = vld [vmem:[%s13311_s7 + $0x6c8] ss:$16 sps:$4 sm:$0xff]  }
 0x59c   :  { %4847 = vmatpush1.bf16.msra.mxu1 %v9459_v33  ;;  %4684 = vmatprep.subr.bf16.mxu0 %v9464_v34  ;;  %v9551_v33 = vld [vmem:[%s13311_s7 + $0x6ec] ss:$16 sps:$4 sm:$0xff]   ;;  %v9546_v34 = vld [vmem:[%s13311_s7 + $0x6e0] ss:$16 sps:$4 sm:$0xff]  }
 0x59d   :  { %4848 = vmatprep.subr.bf16.mxu1 %v9467_v12  ;;  %v9554_v12 = vld [vmem:[%s13311_s7 + $0x704] ss:$16 sps:$4 sm:$0xff]  }
 0x59f   :  { %4685 = vmatpush1.bf16.msra.mxu0 %v9462_v10  ;;  %v9549_v10 = vld [vmem:[%s13311_s7 + $0x6e8] ss:$16 sps:$4 sm:$0xff]  }
 0x5a0   :  { %4849 = vmatpush1.bf16.msra.mxu1 %v9465_v31  ;;  %4686 = vmatprep.subr.bf16.mxu0 %v9470_v35  ;;  %v9557_v31 = vld [vmem:[%s13311_s7 + $0x70c] ss:$16 sps:$4 sm:$0xff]   ;;  %v9552_v35 = vld [vmem:[%s13311_s7 + $0x700] ss:$16 sps:$4 sm:$0xff]  }
 0x5a1   :  { %4850 = vmatprep.subr.bf16.mxu1 %v9473_v16  ;;  %v9560_v16 = vld [vmem:[%s13311_s7 + $0x724] ss:$16 sps:$4 sm:$0xff]  }
 0x5a3   :  { %4687 = vmatpush1.bf16.msra.mxu0 %v9468_v36  ;;  %v9555_v36 = vld [vmem:[%s13311_s7 + $0x708] ss:$16 sps:$4 sm:$0xff]  }
 0x5a4   :  { %4851 = vmatpush1.bf16.msra.mxu1 %v9471_v37  ;;  %4688 = vmatprep.subr.bf16.mxu0 %v9476_v1  ;;  %v9563_v37 = vld [vmem:[%s13311_s7 + $0x72c] ss:$16 sps:$4 sm:$0xff]   ;;  %v9558_v1 = vld [vmem:[%s13311_s7 + $0x720] ss:$16 sps:$4 sm:$0xff]  }
 0x5a5   :  { %4852 = vmatprep.subr.bf16.mxu1 %v9479_v3  ;;  %v9566_v3 = vld [vmem:[%s13311_s7 + $0x744] ss:$16 sps:$4 sm:$0xff]  }
 0x5a7   :  { %4689 = vmatpush1.bf16.msra.mxu0 %v9474_v39  ;;  %v9561_v39 = vld [vmem:[%s13311_s7 + $0x728] ss:$16 sps:$4 sm:$0xff]  }
 0x5a8   :  { %4853 = vmatpush1.bf16.msra.mxu1 %v9477_v40  ;;  %4690 = vmatprep.subr.bf16.mxu0 %v9482_v4  ;;  %v9569_v40 = vld [vmem:[%s13311_s7 + $0x74c] ss:$16 sps:$4 sm:$0xff]   ;;  %v9564_v4 = vld [vmem:[%s13311_s7 + $0x740] ss:$16 sps:$4 sm:$0xff]  }
 0x5a9   :  { %4854 = vmatprep.subr.bf16.mxu1 %v9485_v43  ;;  %v9567_v43 = vld [vmem:[%s13311_s7 + $0x748] ss:$16 sps:$4 sm:$0xff]  }
 0x5ab   :  { %4691 = vmatpush1.bf16.msra.mxu0 %v9480_v41  ;;  %v9572_v41 = vld [vmem:[%s13311_s7 + $0x764] ss:$16 sps:$4 sm:$0xff]  }
 0x5ac   :  { %4855 = vmatpush1.bf16.msra.mxu1 %v9483_v44  ;;  %4692 = vmatprep.subr.bf16.mxu0 %v9488_v0  ;;  %v9575_v44 = vld [vmem:[%s13311_s7 + $0x76c] ss:$16 sps:$4 sm:$0xff]   ;;  %v9570_v0 = vld [vmem:[%s13311_s7 + $0x760] ss:$16 sps:$4 sm:$0xff]  }
 0x5ad   :  { %4856 = vmatprep.subr.bf16.mxu1 %v9491_v11  ;;  %v9573_v11 = vld [vmem:[%s13311_s7 + $0x768] ss:$16 sps:$4 sm:$0xff]  }
 0x5af   :  { %4693 = vmatpush1.bf16.msra.mxu0 %v9486_v13  ;;  %v9578_v13 = vld [vmem:[%s13313_s9 + $0x4] ss:$16 sps:$4 sm:$0xff]  }
 0x5b0   :  { %4857 = vmatpush1.bf16.msra.mxu1 %v9489_v47  ;;  %4694 = vmatprep.subr.bf16.mxu0 %v9494_v48  ;;  %v9581_v47 = vld [vmem:[%s13313_s9 + $0xc] ss:$16 sps:$4 sm:$0xff]   ;;  %v9576_v48 = vld [vmem:[%s13313_s9] ss:$16 sps:$4 sm:$0xff]  }
 0x5b1   :  { %4858 = vmatprep.subr.bf16.mxu1 %v9497_v49  ;;  %v3117_v49 = vpack.c.bf16 %v11954_v53, %v11954_v53  ;;  %v9590_v53 = vld [vmem:[%s13313_s9 + $0x44] ss:$16 sps:$4 sm:$0xff]  }
 0x5b3   :  { %4695 = vmatpush1.bf16.msra.mxu0 %v9492_v51  ;;  %v9584_v51 = vld [vmem:[%s13313_s9 + $0x24] ss:$16 sps:$4 sm:$0xff]  }
 0x5b4   :  { %4859 = vmatpush1.bf16.msra.mxu1 %v9495_v52  ;;  %4696 = vmatprep.subr.bf16.mxu0 %v9500_v46  ;;  %v9587_v52 = vld [vmem:[%s13313_s9 + $0x2c] ss:$16 sps:$4 sm:$0xff]   ;;  %v9582_v46 = vld [vmem:[%s13313_s9 + $0x20] ss:$16 sps:$4 sm:$0xff]  }
 0x5b5   :  { %4860 = vmatprep.subr.bf16.mxu1 %v9503_v8  ;;  %v9585_v8 = vld [vmem:[%s13313_s9 + $0x28] ss:$16 sps:$4 sm:$0xff]  }
 0x5b7   :  { %4697 = vmatpush1.bf16.msra.mxu0 %v9498_v54  ;;  %v9593_v54 = vld [vmem:[%s13313_s9 + $0x4c] ss:$16 sps:$4 sm:$0xff]  }
 0x5b8   :  { %4861 = vmatpush1.bf16.msra.mxu1 %v9501_v56  ;;  %4707 = vmatprep.subr.bf16.mxu0 %v9506_v57  ;;  %v9588_v56 = vld [vmem:[%s13313_s9 + $0x40] ss:$16 sps:$4 sm:$0xff]   ;;  %v9591_v57 = vld [vmem:[%s13313_s9 + $0x48] ss:$16 sps:$4 sm:$0xff]  }
 0x5b9   :  { %4871 = vmatprep.subr.bf16.mxu1 %v9509_v38  ;;  %v9596_v38 = vld [vmem:[%s13313_s9 + $0x64] ss:$16 sps:$4 sm:$0xff]  }
 0x5ba   :  { %4699 = vmatmul.mubr.bf16.vlgmr.msra.gmra.mrb[108].mxu0 %v3115_v59 }
 0x5bb   :  { %4863 = vmatmul.mubr.bf16.vlgmr.msra.gmra.mrb[132].mxu1 %v3115_v59  ;;  %4708 = vmatpush1.bf16.msra.mxu0 %v9504_v6  ;;  %v9594_v6 = vld [vmem:[%s13313_s9 + $0x60] ss:$16 sps:$4 sm:$0xff]   ;;  %v9597_v59 = vld [vmem:[%s13313_s9 + $0x68] ss:$16 sps:$4 sm:$0xff]  }
 0x5bc   :  { %8371 = vmatprep.mubr.msk.bf16.mxu0 %vm205_vm0, %v3118_v61  ;;  %4872 = vmatpush1.bf16.msra.mxu1 %v9507_v60  ;;  %v9602_v60 = vld [vmem:[%s13313_s9 + $0x84] ss:$16 sps:$4 sm:$0xff]  }
 0x5bd   :  { %8372 = vmatprep.mubr.msk.bf16.mxu1 %vm205_vm0, %v3118_v61  ;;  %4709 = vmatprep.subr.bf16.mxu0 %v9512_v42  ;;  %v9605_v42 = vld [vmem:[%s13313_s9 + $0x8c] ss:$16 sps:$4 sm:$0xff]   ;;  %v9600_v61 = vld [vmem:[%s13313_s9 + $0x80] ss:$16 sps:$4 sm:$0xff]   ;;  %vm7835_vm0 = vcmask 17408  }
 0x5be   :  { %4873 = vmatprep.subr.bf16.mxu1 %v9515_v62  ;;  %v9603_v62 = vld [vmem:[%s13313_s9 + $0x88] ss:$16 sps:$4 sm:$0xff]  }
 0x5bf   :  { %4710 = vmatpush1.bf16.msra.mxu0 %v9510_v14  ;;  %v9608_v14 = vld [vmem:[%s13313_s9 + $0xa4] ss:$16 sps:$4 sm:$0xff]  }
 0x5c0   :  { %4874 = vmatpush1.bf16.msra.mxu1 %v9513_v63  ;;  %4711 = vmatprep.subr.bf16.mxu0 %v9518_v45  ;;  %v9611_v63 = vld [vmem:[%s13313_s9 + $0xac] ss:$16 sps:$4 sm:$0xff]   ;;  %v9606_v45 = vld [vmem:[%s13313_s9 + $0xa0] ss:$16 sps:$4 sm:$0xff]  }
 0x5c1   :  { %4875 = vmatprep.subr.bf16.mxu1 %v9521_v5  ;;  %v9609_v5 = vld [vmem:[%s13313_s9 + $0xa8] ss:$16 sps:$4 sm:$0xff]  }
 0x5c3   :  { %4712 = vmatpush1.bf16.msra.mxu0 %v9516_v7  ;;  %v9614_v7 = vld [vmem:[%s13313_s9 + $0xc4] ss:$16 sps:$4 sm:$0xff]  }
 0x5c4   :  { %4876 = vmatpush1.bf16.msra.mxu1 %v9519_v18  ;;  %4713 = vmatprep.subr.bf16.mxu0 %v9524_v19  ;;  %v9617_v18 = vld [vmem:[%s13313_s9 + $0xcc] ss:$16 sps:$4 sm:$0xff]   ;;  %v9612_v19 = vld [vmem:[%s13313_s9 + $0xc0] ss:$16 sps:$4 sm:$0xff]  }
 0x5c5   :  { %4877 = vmatprep.subr.bf16.mxu1 %v9527_v20  ;;  %v9615_v20 = vld [vmem:[%s13313_s9 + $0xc8] ss:$16 sps:$4 sm:$0xff]  }
 0x5c7   :  { %4714 = vmatpush1.bf16.msra.mxu0 %v9522_v21  ;;  %v9620_v21 = vld [vmem:[%s13313_s9 + $0xe4] ss:$16 sps:$4 sm:$0xff]  }
 0x5c8   :  { %4878 = vmatpush1.bf16.msra.mxu1 %v9525_v22  ;;  %4715 = vmatprep.subr.bf16.mxu0 %v9530_v23  ;;  %v9623_v22 = vld [vmem:[%s13313_s9 + $0xec] ss:$16 sps:$4 sm:$0xff]   ;;  %v9618_v23 = vld [vmem:[%s13313_s9 + $0xe0] ss:$16 sps:$4 sm:$0xff]  }
 0x5c9   :  { %4879 = vmatprep.subr.bf16.mxu1 %v9533_v24  ;;  %v9621_v24 = vld [vmem:[%s13313_s9 + $0xe8] ss:$16 sps:$4 sm:$0xff]  }
 0x5cb   :  { %4716 = vmatpush1.bf16.msra.mxu0 %v9528_v55  ;;  %v9626_v55 = vld [vmem:[%s13313_s9 + $0x104] ss:$16 sps:$4 sm:$0xff]  }
 0x5cc   :  { %4880 = vmatpush1.bf16.msra.mxu1 %v9531_v25  ;;  %4717 = vmatprep.subr.bf16.mxu0 %v9536_v26  ;;  %v9629_v25 = vld [vmem:[%s13313_s9 + $0x10c] ss:$16 sps:$4 sm:$0xff]   ;;  %v9624_v26 = vld [vmem:[%s13313_s9 + $0x100] ss:$16 sps:$4 sm:$0xff]  }
 0x5cd   :  { %4881 = vmatprep.subr.bf16.mxu1 %v9539_v27  ;;  %v9627_v27 = vld [vmem:[%s13313_s9 + $0x108] ss:$16 sps:$4 sm:$0xff]  }
 0x5cf   :  { %4718 = vmatpush1.bf16.msra.mxu0 %v9534_v9  ;;  %v9632_v9 = vld [vmem:[%s13313_s9 + $0x124] ss:$16 sps:$4 sm:$0xff]  }
 0x5d0   :  { %4882 = vmatpush1.bf16.msra.mxu1 %v9537_v28  ;;  %4719 = vmatprep.subr.bf16.mxu0 %v9542_v29  ;;  %v9635_v28 = vld [vmem:[%s13313_s9 + $0x12c] ss:$16 sps:$4 sm:$0xff]   ;;  %v9630_v29 = vld [vmem:[%s13313_s9 + $0x120] ss:$16 sps:$4 sm:$0xff]  }
 0x5d1   :  { %4883 = vmatprep.subr.bf16.mxu1 %v9545_v30  ;;  %v9633_v30 = vld [vmem:[%s13313_s9 + $0x128] ss:$16 sps:$4 sm:$0xff]  }
 0x5d3   :  { %4720 = vmatpush1.bf16.msra.mxu0 %v9540_v32  ;;  %v9638_v32 = vld [vmem:[%s13313_s9 + $0x144] ss:$16 sps:$4 sm:$0xff]  }
 0x5d4   :  { %4884 = vmatpush1.bf16.msra.mxu1 %v9543_v17  ;;  %4721 = vmatprep.subr.bf16.mxu0 %v9548_v15  ;;  %v9641_v17 = vld [vmem:[%s13313_s9 + $0x14c] ss:$16 sps:$4 sm:$0xff]   ;;  %v9636_v15 = vld [vmem:[%s13313_s9 + $0x140] ss:$16 sps:$4 sm:$0xff]  }
 0x5d5   :  { %4885 = vmatprep.subr.bf16.mxu1 %v9551_v33  ;;  %v9639_v33 = vld [vmem:[%s13313_s9 + $0x148] ss:$16 sps:$4 sm:$0xff]  }
 0x5d7   :  { %4722 = vmatpush1.bf16.msra.mxu0 %v9546_v34  ;;  %v9644_v34 = vld [vmem:[%s13313_s9 + $0x164] ss:$16 sps:$4 sm:$0xff]  }
 0x5d8   :  { %4886 = vmatpush1.bf16.msra.mxu1 %v9549_v10  ;;  %4723 = vmatprep.subr.bf16.mxu0 %v9554_v12  ;;  %v9647_v10 = vld [vmem:[%s13313_s9 + $0x16c] ss:$16 sps:$4 sm:$0xff]   ;;  %v9642_v12 = vld [vmem:[%s13313_s9 + $0x160] ss:$16 sps:$4 sm:$0xff]  }
 0x5d9   :  { %4887 = vmatprep.subr.bf16.mxu1 %v9557_v31  ;;  %v9645_v31 = vld [vmem:[%s13313_s9 + $0x168] ss:$16 sps:$4 sm:$0xff]  }
 0x5db   :  { %4724 = vmatpush1.bf16.msra.mxu0 %v9552_v35  ;;  %v9650_v35 = vld [vmem:[%s13313_s9 + $0x184] ss:$16 sps:$4 sm:$0xff]  }
 0x5dc   :  { %4888 = vmatpush1.bf16.msra.mxu1 %v9555_v36  ;;  %4725 = vmatprep.subr.bf16.mxu0 %v9560_v16  ;;  %v9653_v36 = vld [vmem:[%s13313_s9 + $0x18c] ss:$16 sps:$4 sm:$0xff]   ;;  %v9648_v16 = vld [vmem:[%s13313_s9 + $0x180] ss:$16 sps:$4 sm:$0xff]  }
 0x5dd   :  { %4889 = vmatprep.subr.bf16.mxu1 %v9563_v37  ;;  %v9651_v37 = vld [vmem:[%s13313_s9 + $0x188] ss:$16 sps:$4 sm:$0xff]  }
 0x5df   :  { %4726 = vmatpush1.bf16.msra.mxu0 %v9558_v1  ;;  %v9656_v1 = vld [vmem:[%s13313_s9 + $0x1a4] ss:$16 sps:$4 sm:$0xff]  }
 0x5e0   :  { %4890 = vmatpush1.bf16.msra.mxu1 %v9561_v39  ;;  %4727 = vmatprep.subr.bf16.mxu0 %v9566_v3  ;;  %v9659_v39 = vld [vmem:[%s13313_s9 + $0x1ac] ss:$16 sps:$4 sm:$0xff]   ;;  %v9654_v3 = vld [vmem:[%s13313_s9 + $0x1a0] ss:$16 sps:$4 sm:$0xff]  }
 0x5e1   :  { %4891 = vmatprep.subr.bf16.mxu1 %v9569_v40  ;;  %v9657_v40 = vld [vmem:[%s13313_s9 + $0x1a8] ss:$16 sps:$4 sm:$0xff]  }
 0x5e3   :  { %4728 = vmatpush1.bf16.msra.mxu0 %v9564_v4  ;;  %v9662_v4 = vld [vmem:[%s13313_s9 + $0x1c4] ss:$16 sps:$4 sm:$0xff]  }
 0x5e4   :  { %4892 = vmatpush1.bf16.msra.mxu1 %v9567_v43  ;;  %4729 = vmatprep.subr.bf16.mxu0 %v9572_v41  ;;  %v9665_v43 = vld [vmem:[%s13313_s9 + $0x1cc] ss:$16 sps:$4 sm:$0xff]   ;;  %v9660_v41 = vld [vmem:[%s13313_s9 + $0x1c0] ss:$16 sps:$4 sm:$0xff]  }
 0x5e5   :  { %4893 = vmatprep.subr.bf16.mxu1 %v9575_v44  ;;  %v9663_v44 = vld [vmem:[%s13313_s9 + $0x1c8] ss:$16 sps:$4 sm:$0xff]  }
 0x5e7   :  { %4730 = vmatpush1.bf16.msra.mxu0 %v9570_v0  ;;  %v9666_v0 = vld [vmem:[%s13313_s9 + $0x1e0] ss:$16 sps:$4 sm:$0xff]  }
 0x5e8   :  { %4894 = vmatpush1.bf16.msra.mxu1 %v9573_v11  ;;  %5710 = vmatprep.subr.bf16.mxu0 %v9578_v13  ;;  %v9668_v11 = vld [vmem:[%s13313_s9 + $0x1e4] ss:$16 sps:$4 sm:$0xff]   ;;  %v9669_v13 = vld [vmem:[%s13313_s9 + $0x1e8] ss:$16 sps:$4 sm:$0xff]  }
 0x5e9   :  { %5792 = vmatprep.subr.bf16.mxu1 %v9581_v47  ;;  %v9671_v47 = vld [vmem:[%s13313_s9 + $0x1ec] ss:$16 sps:$4 sm:$0xff]  }
 0x5ea   :  { %4740 = vmatmul.mubr.bf16.vlgmr.msra.gmra.mrb[108].mxu0 %v3117_v49 }
 0x5eb   :  { %4904 = vmatmul.mubr.bf16.vlgmr.msra.gmra.mrb[132].mxu1 %v3117_v49  ;;  %5711 = vmatpush1.bf16.msra.mxu0 %v9576_v48  ;;  %v9674_v48 = vld [vmem:[%s13313_s9 + $0x204] ss:$16 sps:$4 sm:$0xff]   ;;  %v9677_v49 = vld [vmem:[%s13313_s9 + $0x20c] ss:$16 sps:$4 sm:$0xff]  }
 0x5ec   :  { %5793 = vmatpush1.bf16.msra.mxu1 %v9579_v50  ;;  %5712 = vmatprep.subr.bf16.mxu0 %v9584_v51  ;;  %v12313_v50 = vsub.s32 0, %v11555_v2  ;;  %v12318_v51 = vld [vmem:[%s13315_s8] sm:$0xf] }
 0x5ed   :  { %5794 = vmatprep.subr.bf16.mxu1 %v9587_v52  ;;  %v12321_v52 = vsub.s32 1, %v11555_v2 }
 0x5ef   :  { %5713 = vmatpush1.bf16.msra.mxu0 %v9582_v46  ;;  %v12324_v46 = vsub.s32 3, %v11555_v2 }
 0x5f0   :  { %5795 = vmatpush1.bf16.msra.mxu1 %v9585_v8  ;;  %5714 = vmatprep.subr.bf16.mxu0 %v9590_v53  ;;  %v3364_v8 = vrot.slane %v12318_v51, %v12313_v50  ;;  %v3368_v53 = vrot.slane %v12318_v51, %v12321_v52 }
 0x5f1   :  { %5796 = vmatprep.subr.bf16.mxu1 %v9593_v54  ;;  %v3376_v54 = vrot.slane %v12318_v51, %v12324_v46 }
 0x5f3   :  { %5715 = vmatpush1.bf16.msra.mxu0 %v9588_v56 }
 0x5f4   :  { %5797 = vmatpush1.bf16.msra.mxu1 %v9591_v57  ;;  %5716 = vmatprep.subr.bf16.mxu0 %v9596_v38 }
 0x5f5   :  { %5798 = vmatprep.subr.bf16.mxu1 %v9599_v58 }
 0x5f7   :  { %5717 = vmatpush1.bf16.msra.mxu0 %v9594_v6 }
 0x5f8   :  { %5799 = vmatpush1.bf16.msra.mxu1 %v9597_v59  ;;  %5718 = vmatprep.subr.bf16.mxu0 %v9602_v60 }
 0x5f9   :  { %5800 = vmatprep.subr.bf16.mxu1 %v9605_v42 }
 0x5fb   :  { %5719 = vmatpush1.bf16.msra.mxu0 %v9600_v61 }
 0x5fc   :  { %5801 = vmatpush1.bf16.msra.mxu1 %v9603_v62  ;;  %5720 = vmatprep.subr.bf16.mxu0 %v9608_v14 }
 0x5fd   :  { %5802 = vmatprep.subr.bf16.mxu1 %v9611_v63 }
 0x5ff   :  { %5721 = vmatpush1.bf16.msra.mxu0 %v9606_v45 }
 0x600   :  { %5803 = vmatpush1.bf16.msra.mxu1 %v9609_v5  ;;  %5722 = vmatprep.subr.bf16.mxu0 %v9614_v7  ;;  %v9672_v5 = vld [vmem:[%s13313_s9 + $0x200] ss:$16 sps:$4 sm:$0xff]   ;;  %v9675_v7 = vld [vmem:[%s13313_s9 + $0x208] ss:$16 sps:$4 sm:$0xff]  }
 0x601   :  { %5804 = vmatprep.subr.bf16.mxu1 %v9617_v18 }
 0x603   :  { %5723 = vmatpush1.bf16.msra.mxu0 %v9612_v19 }
 0x604   :  { %5805 = vmatpush1.bf16.msra.mxu1 %v9615_v20  ;;  %5724 = vmatprep.subr.bf16.mxu0 %v9620_v21  ;;  %v9680_v20 = vld [vmem:[%s13313_s9 + $0x224] ss:$16 sps:$4 sm:$0xff]   ;;  %v9683_v21 = vld [vmem:[%s13313_s9 + $0x22c] ss:$16 sps:$4 sm:$0xff]  }
 0x605   :  { %5806 = vmatprep.subr.bf16.mxu1 %v9623_v22 }
 0x607   :  { %5725 = vmatpush1.bf16.msra.mxu0 %v9618_v23  ;;  %v9678_v23 = vld [vmem:[%s13313_s9 + $0x220] ss:$16 sps:$4 sm:$0xff]  }
 0x608   :  { %5807 = vmatpush1.bf16.msra.mxu1 %v9621_v24  ;;  %5726 = vmatprep.subr.bf16.mxu0 %v9626_v55  ;;  %v9681_v24 = vld [vmem:[%s13313_s9 + $0x228] ss:$16 sps:$4 sm:$0xff]  }
 0x609   :  { %5808 = vmatprep.subr.bf16.mxu1 %v9629_v25  ;;  %v9686_v25 = vld [vmem:[%s13313_s9 + $0x244] ss:$16 sps:$4 sm:$0xff]  }
 0x60b   :  { %5727 = vmatpush1.bf16.msra.mxu0 %v9624_v26  ;;  %v9689_v26 = vld [vmem:[%s13313_s9 + $0x24c] ss:$16 sps:$4 sm:$0xff]  }
 0x60c   :  { %5809 = vmatpush1.bf16.msra.mxu1 %v9627_v27  ;;  %5728 = vmatprep.subr.bf16.mxu0 %v9632_v9  ;;  %v9684_v27 = vld [vmem:[%s13313_s9 + $0x240] ss:$16 sps:$4 sm:$0xff]   ;;  %v9687_v9 = vld [vmem:[%s13313_s9 + $0x248] ss:$16 sps:$4 sm:$0xff]  }
 0x60d   :  { %5810 = vmatprep.subr.bf16.mxu1 %v9635_v28  ;;  %v9692_v28 = vld [vmem:[%s13313_s9 + $0x264] ss:$16 sps:$4 sm:$0xff]  }
 0x60f   :  { %5729 = vmatpush1.bf16.msra.mxu0 %v9630_v29  ;;  %v9695_v29 = vld [vmem:[%s13313_s9 + $0x26c] ss:$16 sps:$4 sm:$0xff]  }
 0x610   :  { %5811 = vmatpush1.bf16.msra.mxu1 %v9633_v30  ;;  %5730 = vmatprep.subr.bf16.mxu0 %v9638_v32  ;;  %v9690_v30 = vld [vmem:[%s13313_s9 + $0x260] ss:$16 sps:$4 sm:$0xff]   ;;  %v9693_v32 = vld [vmem:[%s13313_s9 + $0x268] ss:$16 sps:$4 sm:$0xff]  }
 0x611   :  { %5812 = vmatprep.subr.bf16.mxu1 %v9641_v17  ;;  %v9698_v17 = vld [vmem:[%s13313_s9 + $0x284] ss:$16 sps:$4 sm:$0xff]  }
 0x613   :  { %5731 = vmatpush1.bf16.msra.mxu0 %v9636_v15  ;;  %v9701_v15 = vld [vmem:[%s13313_s9 + $0x28c] ss:$16 sps:$4 sm:$0xff]  }
 0x614   :  { %5813 = vmatpush1.bf16.msra.mxu1 %v9639_v33  ;;  %5732 = vmatprep.subr.bf16.mxu0 %v9644_v34  ;;  %v9696_v33 = vld [vmem:[%s13313_s9 + $0x280] ss:$16 sps:$4 sm:$0xff]   ;;  %v9699_v34 = vld [vmem:[%s13313_s9 + $0x288] ss:$16 sps:$4 sm:$0xff]  }
 0x615   :  { %5814 = vmatprep.subr.bf16.mxu1 %v9647_v10  ;;  %v9704_v10 = vld [vmem:[%s13313_s9 + $0x2a4] ss:$16 sps:$4 sm:$0xff]  }
 0x617   :  { %5733 = vmatpush1.bf16.msra.mxu0 %v9642_v12  ;;  %v9707_v12 = vld [vmem:[%s13313_s9 + $0x2ac] ss:$16 sps:$4 sm:$0xff]  }
 0x618   :  { %5815 = vmatpush1.bf16.msra.mxu1 %v9645_v31  ;;  %5734 = vmatprep.subr.bf16.mxu0 %v9650_v35  ;;  %v9702_v31 = vld [vmem:[%s13313_s9 + $0x2a0] ss:$16 sps:$4 sm:$0xff]   ;;  %v9705_v35 = vld [vmem:[%s13313_s9 + $0x2a8] ss:$16 sps:$4 sm:$0xff]  }
 0x619   :  { %5816 = vmatprep.subr.bf16.mxu1 %v9653_v36  ;;  %v9710_v36 = vld [vmem:[%s13313_s9 + $0x2c4] ss:$16 sps:$4 sm:$0xff]  }
 0x61b   :  { %5735 = vmatpush1.bf16.msra.mxu0 %v9648_v16  ;;  %v9713_v16 = vld [vmem:[%s13313_s9 + $0x2cc] ss:$16 sps:$4 sm:$0xff]  }
 0x61c   :  { %5817 = vmatpush1.bf16.msra.mxu1 %v9651_v37  ;;  %5736 = vmatprep.subr.bf16.mxu0 %v9656_v1  ;;  %v9708_v37 = vld [vmem:[%s13313_s9 + $0x2c0] ss:$16 sps:$4 sm:$0xff]   ;;  %v9711_v1 = vld [vmem:[%s13313_s9 + $0x2c8] ss:$16 sps:$4 sm:$0xff]  }
 0x61d   :  { %5818 = vmatprep.subr.bf16.mxu1 %v9659_v39  ;;  %v9716_v39 = vld [vmem:[%s13313_s9 + $0x2e4] ss:$16 sps:$4 sm:$0xff]  }
 0x61f   :  { %5737 = vmatpush1.bf16.msra.mxu0 %v9654_v3  ;;  %v9719_v3 = vld [vmem:[%s13313_s9 + $0x2ec] ss:$16 sps:$4 sm:$0xff]  }
 0x620   :  { %5819 = vmatpush1.bf16.msra.mxu1 %v9657_v40  ;;  %5738 = vmatprep.subr.bf16.mxu0 %v9662_v4  ;;  %v9714_v40 = vld [vmem:[%s13313_s9 + $0x2e0] ss:$16 sps:$4 sm:$0xff]   ;;  %v9717_v4 = vld [vmem:[%s13313_s9 + $0x2e8] ss:$16 sps:$4 sm:$0xff]  }
 0x621   :  { %5820 = vmatprep.subr.bf16.mxu1 %v9665_v43  ;;  %v9722_v43 = vld [vmem:[%s13313_s9 + $0x304] ss:$16 sps:$4 sm:$0xff]  }
 0x623   :  { %5739 = vmatpush1.bf16.msra.mxu0 %v9660_v41  ;;  %v9725_v41 = vld [vmem:[%s13313_s9 + $0x30c] ss:$16 sps:$4 sm:$0xff]  }
 0x624   :  { %5821 = vmatpush1.bf16.msra.mxu1 %v9663_v44  ;;  %5740 = vmatprep.subr.bf16.mxu0 %v9668_v11  ;;  %v9720_v44 = vld [vmem:[%s13313_s9 + $0x300] ss:$16 sps:$4 sm:$0xff]   ;;  %v9728_v11 = vld [vmem:[%s13313_s9 + $0x324] ss:$16 sps:$4 sm:$0xff]  }
 0x625   :  { %5822 = vmatprep.subr.bf16.mxu1 %v9671_v47  ;;  %v9726_v47 = vld [vmem:[%s13313_s9 + $0x320] ss:$16 sps:$4 sm:$0xff]  }
 0x627   :  { %5741 = vmatpush1.bf16.msra.mxu0 %v9666_v0  ;;  %v9723_v0 = vld [vmem:[%s13313_s9 + $0x308] ss:$16 sps:$4 sm:$0xff]  }
 0x628   :  { %5823 = vmatpush1.bf16.msra.mxu1 %v9669_v13  ;;  %5751 = vmatprep.subr.bf16.mxu0 %v9674_v48  ;;  %v9731_v13 = vld [vmem:[%s13313_s9 + $0x32c] ss:$16 sps:$4 sm:$0xff]   ;;  %v9729_v48 = vld [vmem:[%s13313_s9 + $0x328] ss:$16 sps:$4 sm:$0xff]  }
 0x629   :  { %5833 = vmatprep.subr.bf16.mxu1 %v9677_v49  ;;  %v9734_v49 = vld [vmem:[%s13313_s9 + $0x344] ss:$16 sps:$4 sm:$0xff]  }
 0x6bd   :  { %v4741_v56 = vpop.f32.mrb[108].mxu0 }
 0x6be   :  { %v8959_v57 = vadd.f32 %v4741_v56, %v3364_v8  ;;  %v12332_v38 = vpop.f32.mrb[132].mxu1  ;;  %v4743_v58 = vpop.f32.mrb[109].mxu0  ;;  %v9737_v8 = vld [vmem:[%s13313_s9 + $0x34c] ss:$16 sps:$4 sm:$0xff]   ;;  %v9740_v56 = vld [vmem:[%s13313_s9 + $0x364] ss:$16 sps:$4 sm:$0xff]  }
 0x6bf   :  { %v8960_v6 = vadd.f32 %v4743_v58, %v3368_v53  ;;  %v4907_v59 = vpop.f32.mrb[133].mxu1  ;;  %v4745_v60 = vpop.f32.mrb[110].mxu0  ;;  %v9732_v53 = vld [vmem:[%s13313_s9 + $0x340] ss:$16 sps:$4 sm:$0xff]  }
 0x6c0   :  { %v4912_v42 = vmax.f32 %v8959_v57, 0.0  ;;  %v8962_v61 = vadd.f32 %v4907_v59, %v3376_v54  ;;  %v4909_v62 = vpop.f32.mrb[134].mxu1  ;;  %v4746_v14 = vpop.f32.mrb[111].mxu0  ;;  %v9735_v54 = vld [vmem:[%s13313_s9 + $0x348] ss:$16 sps:$4 sm:$0xff]  }
 0x6c1   :  { %v4913_v63 = vmax.f32 %v8960_v6, 0.0  ;;  %v4910_v45 = vpop.f32.mrb[135].mxu1  ;;  %v9743_v57 = vld [vmem:[%s13313_s9 + $0x36c] ss:$16 sps:$4 sm:$0xff]   ;;  %v9738_v58 = vld [vmem:[%s13313_s9 + $0x360] ss:$16 sps:$4 sm:$0xff]  }
 0x6c2   :  { %v4915_v18 = vmax.f32 %v8962_v61, 0.0  ;;  %v4916_v22 = vpack.c.bf16 %v4912_v42, %v4912_v42  ;;  %v9741_v6 = vld [vmem:[%s13313_s9 + $0x368] ss:$16 sps:$4 sm:$0xff]   ;;  %v9746_v59 = vld [vmem:[%s13313_s9 + $0x384] ss:$16 sps:$4 sm:$0xff]   ;;  %v12485_v62 = vsub.s32 2, %v11555_v2 }
 0x6c3   :  { %v4917_v19 = vpack.c.bf16 %v4913_v63, %v4913_v63  ;;  %v9749_v60 = vld [vmem:[%s13313_s9 + $0x38c] ss:$16 sps:$4 sm:$0xff]   ;;  %v9744_v42 = vld [vmem:[%s13313_s9 + $0x380] ss:$16 sps:$4 sm:$0xff]   ;;  %v9747_v61 = vld [vmem:[%s13313_s9 + $0x388] ss:$16 sps:$4 sm:$0xff]  }
 0x6c4   :  { %v4919_v55 = vpack.c.bf16 %v4915_v18, %v4915_v18  ;;  %v9752_v14 = vld [vmem:[%s13313_s9 + $0x3a4] ss:$16 sps:$4 sm:$0xff]   ;;  %v9755_v63 = vld [vmem:[%s13313_s9 + $0x3ac] ss:$16 sps:$4 sm:$0xff]   ;;  %v9750_v45 = vld [vmem:[%s13313_s9 + $0x3a0] ss:$16 sps:$4 sm:$0xff]  }
 0x6c5   :  { %5742 = vmatprep.mubr.bf16.mxu0 %v4917_v19  ;;  %5824 = vmatprep.mubr.bf16.mxu1 %v4917_v19  ;;  %v9758_v18 = vld [vmem:[%s13313_s9 + $0x3c4] ss:$16 sps:$4 sm:$0xff]   ;;  %v9761_v19 = vld [vmem:[%s13313_s9 + $0x3cc] ss:$16 sps:$4 sm:$0xff]  }
 0x6c6   :  { %5743 = vmatmul.mubr.bf16.vlgmr.msra.gmra.mrb[112].mxu0 %v4916_v22  ;;  %5825 = vmatmul.mubr.bf16.vlgmr.msra.gmra.mrb[136].mxu1 %v4916_v22  ;;  %v9764_v22 = vld [vmem:[%s13313_s9 + $0x3e4] ss:$16 sps:$4 sm:$0xff]  }
 0x6c7   :  { %5752 = vmatpush1.bf16.msra.mxu0 %v9672_v5  ;;  %5834 = vmatpush1.bf16.msra.mxu1 %v9675_v7  ;;  %v9753_v5 = vld [vmem:[%s13313_s9 + $0x3a8] ss:$16 sps:$4 sm:$0xff]   ;;  %v3372_v7 = vrot.slane %v12318_v51, %v12485_v62 }
 0x6c8   :  { %5783 = vmatprep.mubr.bf16.mxu0 %v4919_v55  ;;  %5865 = vmatprep.mubr.bf16.mxu1 %v4919_v55  ;;  %v9759_v51 = vld [vmem:[%s13313_s9 + $0x3c8] ss:$16 sps:$4 sm:$0xff]  }
 0x6c9   :  { %5753 = vmatprep.subr.bf16.mxu0 %v9680_v20  ;;  %5835 = vmatprep.subr.bf16.mxu1 %v9683_v21  ;;  %v9756_v20 = vld [vmem:[%s13313_s9 + $0x3c0] ss:$16 sps:$4 sm:$0xff]   ;;  %v8961_v21 = vadd.f32 %v12332_v38, %v3372_v7  ;;  %v9765_v38 = vld [vmem:[%s13313_s9 + $0x3e8] ss:$16 sps:$4 sm:$0xff]  }
 0x6ca   :  { %v9837_v7 = vld [vmem:[%s13314_s11 + $0x218] ss:$24 sps:$4 sm:$0xff]  }
 0x6cb   :  { %5754 = vmatpush1.bf16.msra.mxu0 %v9678_v23  ;;  %5836 = vmatpush1.bf16.msra.mxu1 %v9681_v24  ;;  %v9767_v23 = vld [vmem:[%s13313_s9 + $0x3ec] ss:$16 sps:$4 sm:$0xff]   ;;  %v9762_v24 = vld [vmem:[%s13313_s9 + $0x3e0] ss:$16 sps:$4 sm:$0xff]   ;;  %v4914_v55 = vmax.f32 %v8961_v21, 0.0 }
 0x6cc   :  { %5755 = vmatprep.subr.bf16.mxu0 %v9686_v25  ;;  %5837 = vmatprep.subr.bf16.mxu1 %v9689_v26  ;;  %v9770_v25 = vld [vmem:[%s13314_s11 + $0x4] ss:$24 sps:$4 sm:$0xff]   ;;  %v9848_v21 = vld [vmem:[%s13314_s11 + $0x274] ss:$24 sps:$4 sm:$0xff]  }
 0x6cd   :  { %v9773_v26 = vld [vmem:[%s13314_s11 + $0xc] ss:$24 sps:$4 sm:$0xff]  }
 0x6cf   :  { %5756 = vmatpush1.bf16.msra.mxu0 %v9684_v27  ;;  %5838 = vmatpush1.bf16.msra.mxu1 %v9687_v9  ;;  %v9768_v27 = vld [vmem:[%s13314_s11] ss:$24 sps:$4 sm:$0xff]  }
 0x6d0   :  { %5757 = vmatprep.subr.bf16.mxu0 %v9692_v28  ;;  %5839 = vmatprep.subr.bf16.mxu1 %v9695_v29  ;;  %v9771_v9 = vld [vmem:[%s13314_s11 + $0x8] ss:$24 sps:$4 sm:$0xff]   ;;  %v4918_v28 = vpack.c.bf16 %v4914_v55, %v4914_v55  ;;  %v9776_v29 = vld [vmem:[%s13314_s11 + $0x34] ss:$24 sps:$4 sm:$0xff]  }
 0x6d1   :  { %v9857_v55 = vld [vmem:[%s13314_s11 + $0x2ac] ss:$24 sps:$4 sm:$0xff]  }
 0x6d3   :  { %5758 = vmatpush1.bf16.msra.mxu0 %v9690_v30  ;;  %5840 = vmatpush1.bf16.msra.mxu1 %v9693_v32  ;;  %v9779_v30 = vld [vmem:[%s13314_s11 + $0x3c] ss:$24 sps:$4 sm:$0xff]   ;;  %v9774_v32 = vld [vmem:[%s13314_s11 + $0x30] ss:$24 sps:$4 sm:$0xff]  }
 0x6d4   :  { %5759 = vmatprep.subr.bf16.mxu0 %v9698_v17  ;;  %5841 = vmatprep.subr.bf16.mxu1 %v9701_v15  ;;  %v9777_v17 = vld [vmem:[%s13314_s11 + $0x38] ss:$24 sps:$4 sm:$0xff]   ;;  %v9782_v15 = vld [vmem:[%s13314_s11 + $0x64] ss:$24 sps:$4 sm:$0xff]  }
 0x6d7   :  { %5760 = vmatpush1.bf16.msra.mxu0 %v9696_v33  ;;  %5842 = vmatpush1.bf16.msra.mxu1 %v9699_v34  ;;  %v9785_v33 = vld [vmem:[%s13314_s11 + $0x6c] ss:$24 sps:$4 sm:$0xff]   ;;  %v9780_v34 = vld [vmem:[%s13314_s11 + $0x60] ss:$24 sps:$4 sm:$0xff]  }
 0x6d8   :  { %5761 = vmatprep.subr.bf16.mxu0 %v9704_v10  ;;  %5843 = vmatprep.subr.bf16.mxu1 %v9707_v12  ;;  %v9783_v10 = vld [vmem:[%s13314_s11 + $0x68] ss:$24 sps:$4 sm:$0xff]   ;;  %v9788_v12 = vld [vmem:[%s13314_s11 + $0x94] ss:$24 sps:$4 sm:$0xff]  }
 0x6db   :  { %5762 = vmatpush1.bf16.msra.mxu0 %v9702_v31  ;;  %5844 = vmatpush1.bf16.msra.mxu1 %v9705_v35  ;;  %v9791_v31 = vld [vmem:[%s13314_s11 + $0x9c] ss:$24 sps:$4 sm:$0xff]   ;;  %v9786_v35 = vld [vmem:[%s13314_s11 + $0x90] ss:$24 sps:$4 sm:$0xff]  }
 0x6dc   :  { %5763 = vmatprep.subr.bf16.mxu0 %v9710_v36  ;;  %5845 = vmatprep.subr.bf16.mxu1 %v9713_v16  ;;  %v9789_v36 = vld [vmem:[%s13314_s11 + $0x98] ss:$24 sps:$4 sm:$0xff]   ;;  %v9794_v16 = vld [vmem:[%s13314_s11 + $0xc4] ss:$24 sps:$4 sm:$0xff]  }
 0x6df   :  { %5764 = vmatpush1.bf16.msra.mxu0 %v9708_v37  ;;  %5846 = vmatpush1.bf16.msra.mxu1 %v9711_v1  ;;  %v9797_v37 = vld [vmem:[%s13314_s11 + $0xcc] ss:$24 sps:$4 sm:$0xff]   ;;  %v9792_v1 = vld [vmem:[%s13314_s11 + $0xc0] ss:$24 sps:$4 sm:$0xff]  }
 0x6e0   :  { %5765 = vmatprep.subr.bf16.mxu0 %v9716_v39  ;;  %5847 = vmatprep.subr.bf16.mxu1 %v9719_v3  ;;  %v9795_v39 = vld [vmem:[%s13314_s11 + $0xc8] ss:$24 sps:$4 sm:$0xff]   ;;  %v9800_v3 = vld [vmem:[%s13314_s11 + $0xf4] ss:$24 sps:$4 sm:$0xff]  }
 0x6e3   :  { %5766 = vmatpush1.bf16.msra.mxu0 %v9714_v40  ;;  %5848 = vmatpush1.bf16.msra.mxu1 %v9717_v4  ;;  %v9803_v40 = vld [vmem:[%s13314_s11 + $0xfc] ss:$24 sps:$4 sm:$0xff]   ;;  %v9798_v4 = vld [vmem:[%s13314_s11 + $0xf0] ss:$24 sps:$4 sm:$0xff]  }
 0x6e4   :  { %5767 = vmatprep.subr.bf16.mxu0 %v9722_v43  ;;  %5849 = vmatprep.subr.bf16.mxu1 %v9725_v41  ;;  %v9801_v43 = vld [vmem:[%s13314_s11 + $0xf8] ss:$24 sps:$4 sm:$0xff]   ;;  %v9806_v41 = vld [vmem:[%s13314_s11 + $0x124] ss:$24 sps:$4 sm:$0xff]  }
 0x6e7   :  { %5768 = vmatpush1.bf16.msra.mxu0 %v9720_v44  ;;  %5850 = vmatpush1.bf16.msra.mxu1 %v9723_v0  ;;  %v9809_v44 = vld [vmem:[%s13314_s11 + $0x12c] ss:$24 sps:$4 sm:$0xff]   ;;  %v9804_v0 = vld [vmem:[%s13314_s11 + $0x120] ss:$24 sps:$4 sm:$0xff]  }
 0x6e8   :  { %5769 = vmatprep.subr.bf16.mxu0 %v9728_v11  ;;  %5851 = vmatprep.subr.bf16.mxu1 %v9731_v13  ;;  %v9807_v11 = vld [vmem:[%s13314_s11 + $0x128] ss:$24 sps:$4 sm:$0xff]   ;;  %v9812_v13 = vld [vmem:[%s13314_s11 + $0x154] ss:$24 sps:$4 sm:$0xff]  }
 0x6eb   :  { %5770 = vmatpush1.bf16.msra.mxu0 %v9726_v47  ;;  %5852 = vmatpush1.bf16.msra.mxu1 %v9729_v48  ;;  %v9815_v47 = vld [vmem:[%s13314_s11 + $0x15c] ss:$24 sps:$4 sm:$0xff]   ;;  %v9810_v48 = vld [vmem:[%s13314_s11 + $0x150] ss:$24 sps:$4 sm:$0xff]  }
 0x6ec   :  { %5771 = vmatprep.subr.bf16.mxu0 %v9734_v49  ;;  %5853 = vmatprep.subr.bf16.mxu1 %v9737_v8  ;;  %v9813_v49 = vld [vmem:[%s13314_s11 + $0x158] ss:$24 sps:$4 sm:$0xff]   ;;  %v9818_v8 = vld [vmem:[%s13314_s11 + $0x184] ss:$24 sps:$4 sm:$0xff]  }
 0x6ef   :  { %5772 = vmatpush1.bf16.msra.mxu0 %v9732_v53  ;;  %5854 = vmatpush1.bf16.msra.mxu1 %v9735_v54  ;;  %v9821_v53 = vld [vmem:[%s13314_s11 + $0x18c] ss:$24 sps:$4 sm:$0xff]   ;;  %v9816_v54 = vld [vmem:[%s13314_s11 + $0x180] ss:$24 sps:$4 sm:$0xff]  }
 0x6f0   :  { %5773 = vmatprep.subr.bf16.mxu0 %v9740_v56  ;;  %5855 = vmatprep.subr.bf16.mxu1 %v9743_v57  ;;  %v9819_v56 = vld [vmem:[%s13314_s11 + $0x188] ss:$24 sps:$4 sm:$0xff]   ;;  %v9824_v57 = vld [vmem:[%s13314_s11 + $0x1b4] ss:$24 sps:$4 sm:$0xff]  }
 0x6f3   :  { %5774 = vmatpush1.bf16.msra.mxu0 %v9738_v58  ;;  %5856 = vmatpush1.bf16.msra.mxu1 %v9741_v6  ;;  %v9827_v58 = vld [vmem:[%s13314_s11 + $0x1bc] ss:$24 sps:$4 sm:$0xff]   ;;  %v9822_v6 = vld [vmem:[%s13314_s11 + $0x1b0] ss:$24 sps:$4 sm:$0xff]  }
 0x6f4   :  { %5775 = vmatprep.subr.bf16.mxu0 %v9746_v59  ;;  %5857 = vmatprep.subr.bf16.mxu1 %v9749_v60  ;;  %v9825_v59 = vld [vmem:[%s13314_s11 + $0x1b8] ss:$24 sps:$4 sm:$0xff]   ;;  %v9830_v60 = vld [vmem:[%s13314_s11 + $0x1e4] ss:$24 sps:$4 sm:$0xff]  }
 0x6f7   :  { %5776 = vmatpush1.bf16.msra.mxu0 %v9744_v42  ;;  %5858 = vmatpush1.bf16.msra.mxu1 %v9747_v61  ;;  %v9833_v42 = vld [vmem:[%s13314_s11 + $0x1ec] ss:$24 sps:$4 sm:$0xff]   ;;  %v9828_v61 = vld [vmem:[%s13314_s11 + $0x1e0] ss:$24 sps:$4 sm:$0xff]  }
 0x6f8   :  { %5777 = vmatprep.subr.bf16.mxu0 %v9752_v14  ;;  %5859 = vmatprep.subr.bf16.mxu1 %v9755_v63  ;;  %v9831_v14 = vld [vmem:[%s13314_s11 + $0x1e8] ss:$24 sps:$4 sm:$0xff]   ;;  %v9836_v63 = vld [vmem:[%s13314_s11 + $0x214] ss:$24 sps:$4 sm:$0xff]  }
 0x6fb   :  { %5778 = vmatpush1.bf16.msra.mxu0 %v9750_v45  ;;  %5860 = vmatpush1.bf16.msra.mxu1 %v9753_v5  ;;  %v9839_v45 = vld [vmem:[%s13314_s11 + $0x21c] ss:$24 sps:$4 sm:$0xff]   ;;  %v9834_v5 = vld [vmem:[%s13314_s11 + $0x210] ss:$24 sps:$4 sm:$0xff]  }
 0x6fc   :  { %5779 = vmatprep.subr.bf16.mxu0 %v9758_v18  ;;  %5861 = vmatprep.subr.bf16.mxu1 %v9761_v19  ;;  %v9842_v18 = vld [vmem:[%s13314_s11 + $0x244] ss:$24 sps:$4 sm:$0xff]  }
 0x6fd   :  { %v9845_v19 = vld [vmem:[%s13314_s11 + $0x24c] ss:$24 sps:$4 sm:$0xff]  }
 0x6ff   :  { %5780 = vmatpush1.bf16.msra.mxu0 %v9756_v20  ;;  %5862 = vmatpush1.bf16.msra.mxu1 %v9759_v51  ;;  %v9840_v20 = vld [vmem:[%s13314_s11 + $0x240] ss:$24 sps:$4 sm:$0xff]  }
 0x700   :  { %5781 = vmatprep.subr.bf16.mxu0 %v9764_v22  ;;  %5863 = vmatprep.subr.bf16.mxu1 %v9767_v23  ;;  %v9843_v51 = vld [vmem:[%s13314_s11 + $0x248] ss:$24 sps:$4 sm:$0xff]   ;;  %v9851_v22 = vld [vmem:[%s13314_s11 + $0x27c] ss:$24 sps:$4 sm:$0xff]  }
 0x701   :  { %v9846_v23 = vld [vmem:[%s13314_s11 + $0x270] ss:$24 sps:$4 sm:$0xff]  }
 0x703   :  { %5782 = vmatpush1.bf16.msra.mxu0 %v9762_v24  ;;  %5864 = vmatpush1.bf16.msra.mxu1 %v9765_v38  ;;  %v9849_v24 = vld [vmem:[%s13314_s11 + $0x278] ss:$24 sps:$4 sm:$0xff]   ;;  %v9854_v38 = vld [vmem:[%s13314_s11 + $0x2a4] ss:$24 sps:$4 sm:$0xff]  }
 0x704   :  { %7066 = vmatprep.subr.bf16.mxu0 %v9770_v25  ;;  %7148 = vmatprep.subr.bf16.mxu1 %v9773_v26  ;;  %v9852_v25 = vld [vmem:[%s13314_s11 + $0x2a0] ss:$24 sps:$4 sm:$0xff]  }
 0x705   :  { %v9855_v26 = vld [vmem:[%s13314_s11 + $0x2a8] ss:$24 sps:$4 sm:$0xff]  }
 0x706   :  { %5784 = vmatmul.mubr.bf16.vlgmr.msra.gmra.mrb[112].mxu0 %v4918_v28  ;;  %5866 = vmatmul.mubr.bf16.vlgmr.msra.gmra.mrb[136].mxu1 %v4918_v28  ;;  %v9861_v28 = vld [vmem:[%s13314_s11 + $0x2d8] ss:$24 sps:$4 sm:$0xff]  }
 0x707   :  { %7067 = vmatpush1.bf16.msra.mxu0 %v9768_v27  ;;  %7149 = vmatpush1.bf16.msra.mxu1 %v9771_v9  ;;  %v9858_v27 = vld [vmem:[%s13314_s11 + $0x2d0] ss:$24 sps:$4 sm:$0xff]   ;;  %v9860_v9 = vld [vmem:[%s13314_s11 + $0x2d4] ss:$24 sps:$4 sm:$0xff]  }
 0x708   :  { %7068 = vmatprep.subr.bf16.mxu0 %v9776_v29  ;;  %7150 = vmatprep.subr.bf16.mxu1 %v9779_v30  ;;  %v9863_v29 = vld [vmem:[%s13314_s11 + $0x2dc] ss:$24 sps:$4 sm:$0xff]  }
 0x709   :  { %v9866_v30 = vld [vmem:[%s13314_s11 + $0x304] ss:$24 sps:$4 sm:$0xff]  }
 0x70b   :  { %7069 = vmatpush1.bf16.msra.mxu0 %v9774_v32  ;;  %7151 = vmatpush1.bf16.msra.mxu1 %v9777_v17  ;;  %v9869_v32 = vld [vmem:[%s13314_s11 + $0x30c] ss:$24 sps:$4 sm:$0xff]   ;;  %v12727_v17 = vld [vmem:[%s13316_s10] sm:$0xf] }
 0x70c   :  { %7070 = vmatprep.subr.bf16.mxu0 %v9782_v15  ;;  %7152 = vmatprep.subr.bf16.mxu1 %v9785_v33  ;;  %v5053_v15 = vrot.slane %v12727_v17, %v12313_v50  ;;  %v5057_v33 = vrot.slane %v12727_v17, %v12321_v52 }
 0x70f   :  { %7071 = vmatpush1.bf16.msra.mxu0 %v9780_v34  ;;  %7153 = vmatpush1.bf16.msra.mxu1 %v9783_v10  ;;  %v5065_v34 = vrot.slane %v12727_v17, %v12324_v46 }
 0x710   :  { %7072 = vmatprep.subr.bf16.mxu0 %v9788_v12  ;;  %7154 = vmatprep.subr.bf16.mxu1 %v9791_v31 }
 0x713   :  { %7073 = vmatpush1.bf16.msra.mxu0 %v9786_v35  ;;  %7155 = vmatpush1.bf16.msra.mxu1 %v9789_v36 }
 0x714   :  { %7074 = vmatprep.subr.bf16.mxu0 %v9794_v16  ;;  %7156 = vmatprep.subr.bf16.mxu1 %v9797_v37 }
 0x717   :  { %7075 = vmatpush1.bf16.msra.mxu0 %v9792_v1  ;;  %7157 = vmatpush1.bf16.msra.mxu1 %v9795_v39 }
 0x718   :  { %7076 = vmatprep.subr.bf16.mxu0 %v9800_v3  ;;  %7158 = vmatprep.subr.bf16.mxu1 %v9803_v40 }
 0x71b   :  { %7077 = vmatpush1.bf16.msra.mxu0 %v9798_v4  ;;  %7159 = vmatpush1.bf16.msra.mxu1 %v9801_v43 }
 0x71c   :  { %7078 = vmatprep.subr.bf16.mxu0 %v9806_v41  ;;  %7160 = vmatprep.subr.bf16.mxu1 %v9809_v44 }
 0x71f   :  { %7079 = vmatpush1.bf16.msra.mxu0 %v9804_v0  ;;  %7161 = vmatpush1.bf16.msra.mxu1 %v9807_v11  ;;  %v9864_v0 = vld [vmem:[%s13314_s11 + $0x300] ss:$24 sps:$4 sm:$0xff]  }
 0x720   :  { %7080 = vmatprep.subr.bf16.mxu0 %v9812_v13  ;;  %7162 = vmatprep.subr.bf16.mxu1 %v9815_v47  ;;  %v9867_v11 = vld [vmem:[%s13314_s11 + $0x308] ss:$24 sps:$4 sm:$0xff]   ;;  %v9872_v47 = vld [vmem:[%s13314_s11 + $0x334] ss:$24 sps:$4 sm:$0xff]  }
 0x723   :  { %7081 = vmatpush1.bf16.msra.mxu0 %v9810_v48  ;;  %7163 = vmatpush1.bf16.msra.mxu1 %v9813_v49  ;;  %v9875_v48 = vld [vmem:[%s13314_s11 + $0x33c] ss:$24 sps:$4 sm:$0xff]  }
 0x724   :  { %7082 = vmatprep.subr.bf16.mxu0 %v9818_v8  ;;  %7164 = vmatprep.subr.bf16.mxu1 %v9821_v53  ;;  %v9870_v8 = vld [vmem:[%s13314_s11 + $0x330] ss:$24 sps:$4 sm:$0xff]  }
 0x725   :  { %v9873_v53 = vld [vmem:[%s13314_s11 + $0x338] ss:$24 sps:$4 sm:$0xff]  }
 0x727   :  { %7083 = vmatpush1.bf16.msra.mxu0 %v9816_v54  ;;  %7165 = vmatpush1.bf16.msra.mxu1 %v9819_v56  ;;  %v9878_v54 = vld [vmem:[%s13314_s11 + $0x364] ss:$24 sps:$4 sm:$0xff]  }
 0x728   :  { %7084 = vmatprep.subr.bf16.mxu0 %v9824_v57  ;;  %7166 = vmatprep.subr.bf16.mxu1 %v9827_v58  ;;  %v9881_v56 = vld [vmem:[%s13314_s11 + $0x36c] ss:$24 sps:$4 sm:$0xff]   ;;  %v9876_v57 = vld [vmem:[%s13314_s11 + $0x360] ss:$24 sps:$4 sm:$0xff]  }
 0x729   :  { %v9879_v58 = vld [vmem:[%s13314_s11 + $0x368] ss:$24 sps:$4 sm:$0xff]  }
 0x72b   :  { %7085 = vmatpush1.bf16.msra.mxu0 %v9822_v6  ;;  %7167 = vmatpush1.bf16.msra.mxu1 %v9825_v59  ;;  %v9884_v6 = vld [vmem:[%s13314_s11 + $0x394] ss:$24 sps:$4 sm:$0xff]  }
 0x72c   :  { %7086 = vmatprep.subr.bf16.mxu0 %v9830_v60  ;;  %7168 = vmatprep.subr.bf16.mxu1 %v9833_v42  ;;  %v9887_v59 = vld [vmem:[%s13314_s11 + $0x39c] ss:$24 sps:$4 sm:$0xff]   ;;  %v9882_v60 = vld [vmem:[%s13314_s11 + $0x390] ss:$24 sps:$4 sm:$0xff]  }
 0x72d   :  { %v9885_v42 = vld [vmem:[%s13314_s11 + $0x398] ss:$24 sps:$4 sm:$0xff]  }
 0x72f   :  { %7087 = vmatpush1.bf16.msra.mxu0 %v9828_v61  ;;  %7169 = vmatpush1.bf16.msra.mxu1 %v9831_v14  ;;  %v9890_v61 = vld [vmem:[%s13314_s11 + $0x3c4] ss:$24 sps:$4 sm:$0xff]  }
 0x730   :  { %7088 = vmatprep.subr.bf16.mxu0 %v9836_v63  ;;  %7170 = vmatprep.subr.bf16.mxu1 %v9839_v45  ;;  %v9893_v14 = vld [vmem:[%s13314_s11 + $0x3cc] ss:$24 sps:$4 sm:$0xff]   ;;  %v9888_v63 = vld [vmem:[%s13314_s11 + $0x3c0] ss:$24 sps:$4 sm:$0xff]  }
 0x731   :  { %v9891_v45 = vld [vmem:[%s13314_s11 + $0x3c8] ss:$24 sps:$4 sm:$0xff]  }
 0x733   :  { %7089 = vmatpush1.bf16.msra.mxu0 %v9834_v5  ;;  %7171 = vmatpush1.bf16.msra.mxu1 %v9837_v7  ;;  %v9896_v5 = vld [vmem:[%s13314_s11 + $0x3f4] ss:$24 sps:$4 sm:$0xff]  }
 0x734   :  { %7090 = vmatprep.subr.bf16.mxu0 %v9842_v18  ;;  %7172 = vmatprep.subr.bf16.mxu1 %v9845_v19  ;;  %v9899_v7 = vld [vmem:[%s13314_s11 + $0x3fc] ss:$24 sps:$4 sm:$0xff]   ;;  %v9894_v18 = vld [vmem:[%s13314_s11 + $0x3f0] ss:$24 sps:$4 sm:$0xff]  }
 0x735   :  { %v9897_v19 = vld [vmem:[%s13314_s11 + $0x3f8] ss:$24 sps:$4 sm:$0xff]  }
 0x737   :  { %7091 = vmatpush1.bf16.msra.mxu0 %v9840_v20  ;;  %7173 = vmatpush1.bf16.msra.mxu1 %v9843_v51  ;;  %v9902_v20 = vld [vmem:[%s13314_s11 + $0x424] ss:$24 sps:$4 sm:$0xff]  }
 0x738   :  { %7092 = vmatprep.subr.bf16.mxu0 %v9848_v21  ;;  %7174 = vmatprep.subr.bf16.mxu1 %v9851_v22  ;;  %v9905_v51 = vld [vmem:[%s13314_s11 + $0x42c] ss:$24 sps:$4 sm:$0xff]   ;;  %v9900_v21 = vld [vmem:[%s13314_s11 + $0x420] ss:$24 sps:$4 sm:$0xff]  }
 0x739   :  { %v9903_v22 = vld [vmem:[%s13314_s11 + $0x428] ss:$24 sps:$4 sm:$0xff]  }
 0x73b   :  { %7093 = vmatpush1.bf16.msra.mxu0 %v9846_v23  ;;  %7175 = vmatpush1.bf16.msra.mxu1 %v9849_v24  ;;  %v9908_v23 = vld [vmem:[%s13314_s11 + $0x454] ss:$24 sps:$4 sm:$0xff]  }
 0x73c   :  { %7094 = vmatprep.subr.bf16.mxu0 %v9854_v38  ;;  %7176 = vmatprep.subr.bf16.mxu1 %v9857_v55  ;;  %v9911_v24 = vld [vmem:[%s13314_s11 + $0x45c] ss:$24 sps:$4 sm:$0xff]   ;;  %v9906_v38 = vld [vmem:[%s13314_s11 + $0x450] ss:$24 sps:$4 sm:$0xff]  }
 0x73d   :  { %v9909_v55 = vld [vmem:[%s13314_s11 + $0x458] ss:$24 sps:$4 sm:$0xff]  }
 0x73f   :  { %7095 = vmatpush1.bf16.msra.mxu0 %v9852_v25  ;;  %7177 = vmatpush1.bf16.msra.mxu1 %v9855_v26  ;;  %v9914_v25 = vld [vmem:[%s13314_s11 + $0x484] ss:$24 sps:$4 sm:$0xff]  }
 0x740   :  { %7096 = vmatprep.subr.bf16.mxu0 %v9860_v9  ;;  %7178 = vmatprep.subr.bf16.mxu1 %v9863_v29  ;;  %v9917_v26 = vld [vmem:[%s13314_s11 + $0x48c] ss:$24 sps:$4 sm:$0xff]   ;;  %v9915_v9 = vld [vmem:[%s13314_s11 + $0x488] ss:$24 sps:$4 sm:$0xff]   ;;  %v9923_v29 = vld [vmem:[%s13314_s11 + $0x4bc] ss:$24 sps:$4 sm:$0xff]  }
 0x743   :  { %7097 = vmatpush1.bf16.msra.mxu0 %v9858_v27  ;;  %7179 = vmatpush1.bf16.msra.mxu1 %v9861_v28  ;;  %v9912_v27 = vld [vmem:[%s13314_s11 + $0x480] ss:$24 sps:$4 sm:$0xff]   ;;  %v9920_v28 = vld [vmem:[%s13314_s11 + $0x4b4] ss:$24 sps:$4 sm:$0xff]  }
 0x744   :  { %7107 = vmatprep.subr.bf16.mxu0 %v9866_v30  ;;  %7189 = vmatprep.subr.bf16.mxu1 %v9869_v32  ;;  %v9918_v30 = vld [vmem:[%s13314_s11 + $0x4b0] ss:$24 sps:$4 sm:$0xff]  }
 0x745   :  { %v9921_v32 = vld [vmem:[%s13314_s11 + $0x4b8] ss:$24 sps:$4 sm:$0xff]  }
 0x7d9   :  { %v5785_v10 = vpop.f32.mrb[112].mxu0  ;;  %v12735_v12 = vpop.f32.mrb[136].mxu1 }
 0x7da   :  { %v8963_v31 = vadd.f32 %v5785_v10, %v5053_v15  ;;  %v5787_v35 = vpop.f32.mrb[113].mxu0  ;;  %v5869_v36 = vpop.f32.mrb[137].mxu1  ;;  %v9926_v15 = vld [vmem:[%s13314_s11 + $0x4e4] ss:$24 sps:$4 sm:$0xff]   ;;  %v9927_v10 = vld [vmem:[%s13314_s11 + $0x4e8] ss:$24 sps:$4 sm:$0xff]  }
 0x7db   :  { %v8964_v16 = vadd.f32 %v5787_v35, %v5057_v33  ;;  %v8966_v37 = vadd.f32 %v5869_v36, %v5065_v34  ;;  %v5789_v1 = vpop.f32.mrb[114].mxu0  ;;  %v5871_v39 = vpop.f32.mrb[138].mxu1  ;;  %v9929_v33 = vld [vmem:[%s13314_s11 + $0x4ec] ss:$24 sps:$4 sm:$0xff]   ;;  %v9924_v34 = vld [vmem:[%s13314_s11 + $0x4e0] ss:$24 sps:$4 sm:$0xff]  }
 0x7dc   :  { %v5874_v3 = vmax.f32 %v8963_v31, 0.0  ;;  %v5790_v40 = vpop.f32.mrb[115].mxu0  ;;  %v5872_v4 = vpop.f32.mrb[139].mxu1  ;;  %v9932_v31 = vld [vmem:[%s13314_s11 + $0x514] ss:$24 sps:$4 sm:$0xff]  }
 0x7dd   :  { %v5875_v43 = vmax.f32 %v8964_v16, 0.0  ;;  %v5877_v41 = vmax.f32 %v8966_v37, 0.0  ;;  %v9935_v35 = vld [vmem:[%s13314_s11 + $0x51c] ss:$24 sps:$4 sm:$0xff]   ;;  %v9930_v36 = vld [vmem:[%s13314_s11 + $0x510] ss:$24 sps:$4 sm:$0xff]  }
 0x7de   :  { %v12745_v13 = vpack.c.bf16 %v5874_v3, %v5874_v3  ;;  %v9933_v16 = vld [vmem:[%s13314_s11 + $0x518] ss:$24 sps:$4 sm:$0xff]   ;;  %v9938_v37 = vld [vmem:[%s13314_s11 + $0x544] ss:$24 sps:$4 sm:$0xff]   ;;  %v9939_v3 = vld [vmem:[%s13314_s11 + $0x548] ss:$24 sps:$4 sm:$0xff]  }
 0x7df   :  { %v12737_v44 = vpack.c.bf16 %v5875_v43, %v5875_v43  ;;  %v12755_v49 = vpack.c.bf16 %v5877_v41, %v5877_v41  ;;  %v9941_v1 = vld [vmem:[%s13314_s11 + $0x54c] ss:$24 sps:$4 sm:$0xff]   ;;  %v9936_v39 = vld [vmem:[%s13314_s11 + $0x540] ss:$24 sps:$4 sm:$0xff]   ;;  %v9947_v4 = vld [vmem:[%s13314_s11 + $0x57c] ss:$24 sps:$4 sm:$0xff]  }
 0x7e0   :  { %v9944_v40 = vld [vmem:[%s13314_s11 + $0x574] ss:$24 sps:$4 sm:$0xff]   ;;  %v9942_v43 = vld [vmem:[%s13314_s11 + $0x570] ss:$24 sps:$4 sm:$0xff]  }
 0x7e1   :  { %7098 = vmatprep.mubr.bf16.mxu0 %v12737_v44  ;;  %7180 = vmatprep.mubr.bf16.mxu1 %v12737_v44  ;;  %v9945_v41 = vld [vmem:[%s13314_s11 + $0x578] ss:$24 sps:$4 sm:$0xff]  }
 0x7e2   :  { %7099 = vmatmul.mubr.bf16.vlgmr.msra.gmra.mrb[116].mxu0 %v12745_v13  ;;  %7181 = vmatmul.mubr.bf16.vlgmr.msra.gmra.mrb[140].mxu1 %v12745_v13 }
 0x7e3   :  { %7108 = vmatpush1.bf16.msra.mxu0 %v9864_v0  ;;  %7190 = vmatpush1.bf16.msra.mxu1 %v9867_v11  ;;  %v5061_v0 = vrot.slane %v12727_v17, %v12485_v62  ;;  %v9950_v11 = vld [vmem:[%s13314_s11 + $0x5a4] ss:$24 sps:$4 sm:$0xff]   ;;  %v9951_v17 = vld [vmem:[%s13314_s11 + $0x5a8] ss:$24 sps:$4 sm:$0xff]  }
 0x7e4   :  { %7139 = vmatprep.mubr.bf16.mxu0 %v12755_v49  ;;  %7221 = vmatprep.mubr.bf16.mxu1 %v12755_v49 }
 0x7e5   :  { %7109 = vmatprep.subr.bf16.mxu0 %v9872_v47  ;;  %7191 = vmatprep.subr.bf16.mxu1 %v9875_v48  ;;  %v9953_v47 = vld [vmem:[%s13314_s11 + $0x5ac] ss:$24 sps:$4 sm:$0xff]   ;;  %v9948_v48 = vld [vmem:[%s13314_s11 + $0x5a0] ss:$24 sps:$4 sm:$0xff]  }
 0x7e7   :  { %7110 = vmatpush1.bf16.msra.mxu0 %v9870_v8  ;;  %7192 = vmatpush1.bf16.msra.mxu1 %v9873_v53  ;;  %v8965_v8 = vadd.f32 %v12735_v12, %v5061_v0  ;;  %v9956_v53 = vld [vmem:[%s13314_s11 + $0x5d4] ss:$24 sps:$4 sm:$0xff]   ;;  %v9957_v12 = vld [vmem:[%s13314_s11 + $0x5d8] ss:$24 sps:$4 sm:$0xff]  }
 0x7e8   :  { %7111 = vmatprep.subr.bf16.mxu0 %v9878_v54  ;;  %7193 = vmatprep.subr.bf16.mxu1 %v9881_v56  ;;  %v9959_v54 = vld [vmem:[%s13314_s11 + $0x5dc] ss:$24 sps:$4 sm:$0xff]   ;;  %v9954_v56 = vld [vmem:[%s13314_s11 + $0x5d0] ss:$24 sps:$4 sm:$0xff]  }
 0x7e9   :  { %v10008_v0 = vld [vmem:[%s13314_s11 + $0x310] ss:$24 sps:$4 sm:$0xff]  }
 0x7eb   :  { %7112 = vmatpush1.bf16.msra.mxu0 %v9876_v57  ;;  %7194 = vmatpush1.bf16.msra.mxu1 %v9879_v58  ;;  %v5876_v57 = vmax.f32 %v8965_v8, 0.0  ;;  %v9962_v58 = vld [vmem:[%s13314_s11 + $0x14] ss:$24 sps:$4 sm:$0xff]  }
 0x7ec   :  { %7113 = vmatprep.subr.bf16.mxu0 %v9884_v6  ;;  %7195 = vmatprep.subr.bf16.mxu1 %v9887_v59  ;;  %v9960_v6 = vld [vmem:[%s13314_s11 + $0x10] ss:$24 sps:$4 sm:$0xff]   ;;  %v10022_v8 = vld [vmem:[%s13314_s11 + $0x3d4] ss:$24 sps:$4 sm:$0xff]  }
 0x7ed   :  { %v12944_v59 = vpack.c.bf16 %v5876_v57, %v5876_v57  ;;  %v10026_v57 = vld [vmem:[%s13314_s11 + $0x430] ss:$24 sps:$4 sm:$0xff]  }
 0x7ef   :  { %7114 = vmatpush1.bf16.msra.mxu0 %v9882_v60  ;;  %7196 = vmatpush1.bf16.msra.mxu1 %v9885_v42  ;;  %v9965_v60 = vld [vmem:[%s13314_s11 + $0x44] ss:$24 sps:$4 sm:$0xff]   ;;  %v9963_v42 = vld [vmem:[%s13314_s11 + $0x40] ss:$24 sps:$4 sm:$0xff]  }
 0x7f0   :  { %7115 = vmatprep.subr.bf16.mxu0 %v9890_v61  ;;  %7197 = vmatprep.subr.bf16.mxu1 %v9893_v14  ;;  %v9968_v61 = vld [vmem:[%s13314_s11 + $0x74] ss:$24 sps:$4 sm:$0xff]   ;;  %v10056_v14 = vld [vmem:[%s13317_s13 + $0x40] sm:$0xff]  }
 0x7f3   :  { %7116 = vmatpush1.bf16.msra.mxu0 %v9888_v63  ;;  %7198 = vmatpush1.bf16.msra.mxu1 %v9891_v45  ;;  %v10057_v63 = vld [vmem:[%s13317_s13] sm:$0xff]   ;;  %v9966_v45 = vld [vmem:[%s13314_s11 + $0x70] ss:$24 sps:$4 sm:$0xff]  }
 0x7f4   :  { %7117 = vmatprep.subr.bf16.mxu0 %v9896_v5  ;;  %7199 = vmatprep.subr.bf16.mxu1 %v9899_v7  ;;  %v10058_v5 = vld [vmem:[%s13317_s13 + $0x48] sm:$0xff]   ;;  %v10060_v7 = vld [vmem:[%s13317_s13 + $0x50] sm:$0xff]  }
 0x7f7   :  { %7118 = vmatpush1.bf16.msra.mxu0 %v9894_v18  ;;  %7200 = vmatpush1.bf16.msra.mxu1 %v9897_v19  ;;  %v9971_v18 = vld [vmem:[%s13314_s11 + $0xa4] ss:$24 sps:$4 sm:$0xff]   ;;  %v9969_v19 = vld [vmem:[%s13314_s11 + $0xa0] ss:$24 sps:$4 sm:$0xff]  }
 0x7f8   :  { %7119 = vmatprep.subr.bf16.mxu0 %v9902_v20  ;;  %7201 = vmatprep.subr.bf16.mxu1 %v9905_v51  ;;  %v10061_v20 = vld [vmem:[%s13317_s13 + $0x10] sm:$0xff]   ;;  %v10062_v51 = vld [vmem:[%s13317_s13 + $0x58] sm:$0xff]  }
 0x7fb   :  { %7120 = vmatpush1.bf16.msra.mxu0 %v9900_v21  ;;  %7202 = vmatpush1.bf16.msra.mxu1 %v9903_v22  ;;  %v9974_v21 = vld [vmem:[%s13314_s11 + $0xd4] ss:$24 sps:$4 sm:$0xff]   ;;  %v9972_v22 = vld [vmem:[%s13314_s11 + $0xd0] ss:$24 sps:$4 sm:$0xff]  }
 0x7fc   :  { %7121 = vmatprep.subr.bf16.mxu0 %v9908_v23  ;;  %7203 = vmatprep.subr.bf16.mxu1 %v9911_v24  ;;  %v9977_v23 = vld [vmem:[%s13314_s11 + $0x104] ss:$24 sps:$4 sm:$0xff]  }
 0x7fd   :  { %v10063_v24 = vld [vmem:[%s13317_s13 + $0x18] sm:$0xff]  }
 0x7ff   :  { %7122 = vmatpush1.bf16.msra.mxu0 %v9906_v38  ;;  %7204 = vmatpush1.bf16.msra.mxu1 %v9909_v55  ;;  %v10064_v38 = vld [vmem:[%s13317_s13 + $0x60] sm:$0xff]  }
 0x800   :  { %7123 = vmatprep.subr.bf16.mxu0 %v9914_v25  ;;  %7205 = vmatprep.subr.bf16.mxu1 %v9917_v26  ;;  %v10065_v55 = vld [vmem:[%s13317_s13 + $0x20] sm:$0xff]   ;;  %v10066_v26 = vld [vmem:[%s13317_s13 + $0x68] sm:$0xff]  }
 0x801   :  { %v9975_v25 = vld [vmem:[%s13314_s11 + $0x100] ss:$24 sps:$4 sm:$0xff]  }
 0x803   :  { %7124 = vmatpush1.bf16.msra.mxu0 %v9912_v27  ;;  %7206 = vmatpush1.bf16.msra.mxu1 %v9915_v9  ;;  %v9980_v27 = vld [vmem:[%s13314_s11 + $0x134] ss:$24 sps:$4 sm:$0xff]  }
 0x804   :  { %7125 = vmatprep.subr.bf16.mxu0 %v9920_v28  ;;  %7207 = vmatprep.subr.bf16.mxu1 %v9923_v29  ;;  %v10067_v9 = vld [vmem:[%s13317_s13 + $0x28] sm:$0xff]   ;;  %v9983_v29 = vld [vmem:[%s13314_s11 + $0x164] ss:$24 sps:$4 sm:$0xff]  }
 0x805   :  { %v9978_v28 = vld [vmem:[%s13314_s11 + $0x130] ss:$24 sps:$4 sm:$0xff]  }
 0x807   :  { %7126 = vmatpush1.bf16.msra.mxu0 %v9918_v30  ;;  %7208 = vmatpush1.bf16.msra.mxu1 %v9921_v32  ;;  %v9981_v30 = vld [vmem:[%s13314_s11 + $0x160] ss:$24 sps:$4 sm:$0xff]   ;;  %v9986_v32 = vld [vmem:[%s13314_s11 + $0x194] ss:$24 sps:$4 sm:$0xff]  }
 0x808   :  { %7127 = vmatprep.subr.bf16.mxu0 %v9926_v15  ;;  %7209 = vmatprep.subr.bf16.mxu1 %v9929_v33  ;;  %v9984_v15 = vld [vmem:[%s13314_s11 + $0x190] ss:$24 sps:$4 sm:$0xff]   ;;  %v9989_v33 = vld [vmem:[%s13314_s11 + $0x1c4] ss:$24 sps:$4 sm:$0xff]  }
 0x80b   :  { %7128 = vmatpush1.bf16.msra.mxu0 %v9924_v34  ;;  %7210 = vmatpush1.bf16.msra.mxu1 %v9927_v10  ;;  %v9987_v34 = vld [vmem:[%s13314_s11 + $0x1c0] ss:$24 sps:$4 sm:$0xff]   ;;  %v9992_v10 = vld [vmem:[%s13314_s11 + $0x1f4] ss:$24 sps:$4 sm:$0xff]  }
 0x80c   :  { %7129 = vmatprep.subr.bf16.mxu0 %v9932_v31  ;;  %7211 = vmatprep.subr.bf16.mxu1 %v9935_v35  ;;  %v9990_v31 = vld [vmem:[%s13314_s11 + $0x1f0] ss:$24 sps:$4 sm:$0xff]   ;;  %v9995_v35 = vld [vmem:[%s13314_s11 + $0x224] ss:$24 sps:$4 sm:$0xff]  }
 0x80f   :  { %7130 = vmatpush1.bf16.msra.mxu0 %v9930_v36  ;;  %7212 = vmatpush1.bf16.msra.mxu1 %v9933_v16  ;;  %v9993_v36 = vld [vmem:[%s13314_s11 + $0x220] ss:$24 sps:$4 sm:$0xff]   ;;  %v9998_v16 = vld [vmem:[%s13314_s11 + $0x254] ss:$24 sps:$4 sm:$0xff]  }
 0x810   :  { %7131 = vmatprep.subr.bf16.mxu0 %v9938_v37  ;;  %7213 = vmatprep.subr.bf16.mxu1 %v9941_v1  ;;  %v9996_v37 = vld [vmem:[%s13314_s11 + $0x250] ss:$24 sps:$4 sm:$0xff]   ;;  %v10001_v1 = vld [vmem:[%s13314_s11 + $0x284] ss:$24 sps:$4 sm:$0xff]  }
 0x813   :  { %7132 = vmatpush1.bf16.msra.mxu0 %v9936_v39  ;;  %7214 = vmatpush1.bf16.msra.mxu1 %v9939_v3  ;;  %v9999_v39 = vld [vmem:[%s13314_s11 + $0x280] ss:$24 sps:$4 sm:$0xff]   ;;  %v10004_v3 = vld [vmem:[%s13314_s11 + $0x2b4] ss:$24 sps:$4 sm:$0xff]  }
 0x814   :  { %7133 = vmatprep.subr.bf16.mxu0 %v9944_v40  ;;  %7215 = vmatprep.subr.bf16.mxu1 %v9947_v4  ;;  %v10002_v40 = vld [vmem:[%s13314_s11 + $0x2b0] ss:$24 sps:$4 sm:$0xff]   ;;  %v10007_v4 = vld [vmem:[%s13314_s11 + $0x2e4] ss:$24 sps:$4 sm:$0xff]  }
 0x817   :  { %7134 = vmatpush1.bf16.msra.mxu0 %v9942_v43  ;;  %7216 = vmatpush1.bf16.msra.mxu1 %v9945_v41  ;;  %v10005_v43 = vld [vmem:[%s13314_s11 + $0x2e0] ss:$24 sps:$4 sm:$0xff]   ;;  %v10010_v41 = vld [vmem:[%s13314_s11 + $0x314] ss:$24 sps:$4 sm:$0xff]  }
 0x818   :  { %7135 = vmatprep.subr.bf16.mxu0 %v9950_v11  ;;  %7217 = vmatprep.subr.bf16.mxu1 %v9953_v47  ;;  %v10013_v11 = vld [vmem:[%s13314_s11 + $0x344] ss:$24 sps:$4 sm:$0xff]   ;;  %v10011_v47 = vld [vmem:[%s13314_s11 + $0x340] ss:$24 sps:$4 sm:$0xff]  }
 0x81b   :  { %7136 = vmatpush1.bf16.msra.mxu0 %v9948_v48  ;;  %7218 = vmatpush1.bf16.msra.mxu1 %v9951_v17  ;;  %v10016_v48 = vld [vmem:[%s13314_s11 + $0x374] ss:$24 sps:$4 sm:$0xff]   ;;  %v10014_v17 = vld [vmem:[%s13314_s11 + $0x370] ss:$24 sps:$4 sm:$0xff]  }
 0x81c   :  { %7137 = vmatprep.subr.bf16.mxu0 %v9956_v53  ;;  %7219 = vmatprep.subr.bf16.mxu1 %v9959_v54  ;;  %v10020_v53 = vld [vmem:[%s13314_s11 + $0x3d0] ss:$24 sps:$4 sm:$0xff]   ;;  %v10025_v54 = vld [vmem:[%s13314_s11 + $0x404] ss:$24 sps:$4 sm:$0xff]  }
 0x81f   :  { %7138 = vmatpush1.bf16.msra.mxu0 %v9954_v56  ;;  %7220 = vmatpush1.bf16.msra.mxu1 %v9957_v12  ;;  %v10023_v56 = vld [vmem:[%s13314_s11 + $0x400] ss:$24 sps:$4 sm:$0xff]   ;;  %v10028_v12 = vld [vmem:[%s13314_s11 + $0x434] ss:$24 sps:$4 sm:$0xff]  }
 0x820   :  { %7230 = vmatprep.subr.bf16.mxu0 %v9962_v58  ;;  %8857 = vmatprep.subr.bf16.mxu1 %v10056_v14  ;;  %v10068_v58 = vld [vmem:[%s13317_s13 + $0x70] sm:$0xff]   ;;  %v10071_v14 = vld [vmem:[%s13317_s13 + $0x38] sm:$0xff]  }
 0x822   :  { %7140 = vmatmul.mubr.bf16.vlgmr.msra.gmra.mrb[116].mxu0 %v12944_v59  ;;  %7222 = vmatmul.mubr.bf16.vlgmr.msra.gmra.mrb[140].mxu1 %v12944_v59 }
 0x823   :  { %7231 = vmatpush1.bf16.msra.mxu0 %v9960_v6  ;;  %7262 = vmatprep.mubr.bf16.mxu0 %v12737_v44  ;;  %v10059_v44 = vld [vmem:[%s13317_s13 + $0x8] sm:$0xff]   ;;  %v10031_v6 = vld [vmem:[%s13314_s11 + $0x464] ss:$24 sps:$4 sm:$0xff]  }
 0x824   :  { %7232 = vmatprep.subr.bf16.mxu0 %v9965_v60  ;;  %8858 = vmatpush3.bf16.msra.mxu1 %v10057_v63  ;;  %v10069_v60 = vld [vmem:[%s13317_s13 + $0x30] sm:$0xff]  }
 0x825   :  { %8859 = vmatprep.subr.bf16.mxu1 %v10058_v5  ;;  %v10034_v63 = vld [vmem:[%s13314_s11 + $0x494] ss:$24 sps:$4 sm:$0xff]   ;;  %v10032_v5 = vld [vmem:[%s13314_s11 + $0x490] ss:$24 sps:$4 sm:$0xff]  }
 0x827   :  { %7233 = vmatpush1.bf16.msra.mxu0 %v9963_v42  ;;  %v10029_v42 = vld [vmem:[%s13314_s11 + $0x460] ss:$24 sps:$4 sm:$0xff]  }
 0x828   :  { %7234 = vmatprep.subr.bf16.mxu0 %v9968_v61  ;;  %8860 = vmatpush3.bf16.msra.mxu1 %v10059_v44  ;;  %v10070_v61 = vld [vmem:[%s13317_s13 + $0x78] sm:$0xff]  }
 0x829   :  { %8861 = vmatprep.subr.bf16.mxu1 %v10060_v7  ;;  %v10037_v44 = vld [vmem:[%s13314_s11 + $0x4c4] ss:$24 sps:$4 sm:$0xff]   ;;  %v10035_v7 = vld [vmem:[%s13314_s11 + $0x4c0] ss:$24 sps:$4 sm:$0xff]  }
 0x82b   :  { %7235 = vmatpush1.bf16.msra.mxu0 %v9966_v45  ;;  %v10072_v45 = vld [vmem:[%s13317_s13 + $0xc0] sm:$0xff]  }
 0x82c   :  { %7236 = vmatprep.subr.bf16.mxu0 %v9971_v18  ;;  %8862 = vmatpush3.bf16.msra.mxu1 %v10061_v20  ;;  %v10040_v18 = vld [vmem:[%s13314_s11 + $0x4f4] ss:$24 sps:$4 sm:$0xff]   ;;  %v10043_v20 = vld [vmem:[%s13314_s11 + $0x524] ss:$24 sps:$4 sm:$0xff]  }
 0x82d   :  { %8863 = vmatprep.subr.bf16.mxu1 %v10062_v51  ;;  %v10041_v51 = vld [vmem:[%s13314_s11 + $0x520] ss:$24 sps:$4 sm:$0xff]  }
 0x82f   :  { %7237 = vmatpush1.bf16.msra.mxu0 %v9969_v19  ;;  %v10038_v19 = vld [vmem:[%s13314_s11 + $0x4f0] ss:$24 sps:$4 sm:$0xff]  }
 0x830   :  { %7238 = vmatprep.subr.bf16.mxu0 %v9974_v21  ;;  %8864 = vmatpush3.bf16.msra.mxu1 %v10063_v24  ;;  %v10046_v21 = vld [vmem:[%s13314_s11 + $0x554] ss:$24 sps:$4 sm:$0xff]   ;;  %v10047_v24 = vld [vmem:[%s13314_s11 + $0x580] ss:$24 sps:$4 sm:$0xff]  }
 0x831   :  { %8865 = vmatprep.subr.bf16.mxu1 %v10064_v38  ;;  %v10052_v38 = vld [vmem:[%s13314_s11 + $0x5b4] ss:$24 sps:$4 sm:$0xff]  }
 0x833   :  { %7239 = vmatpush1.bf16.msra.mxu0 %v9972_v22  ;;  %v10044_v22 = vld [vmem:[%s13314_s11 + $0x550] ss:$24 sps:$4 sm:$0xff]  }
 0x834   :  { %7240 = vmatprep.subr.bf16.mxu0 %v9977_v23  ;;  %8866 = vmatpush3.bf16.msra.mxu1 %v10065_v55  ;;  %v10049_v23 = vld [vmem:[%s13314_s11 + $0x584] ss:$24 sps:$4 sm:$0xff]   ;;  %v10050_v55 = vld [vmem:[%s13314_s11 + $0x5b0] ss:$24 sps:$4 sm:$0xff]  }
 0x835   :  { %8867 = vmatprep.subr.bf16.mxu1 %v10066_v26  ;;  %v10053_v26 = vld [vmem:[%s13314_s11 + $0x5e0] ss:$24 sps:$4 sm:$0xff]  }
 0x837   :  { %7241 = vmatpush1.bf16.msra.mxu0 %v9975_v25  ;;  %v10055_v25 = vld [vmem:[%s13314_s11 + $0x5e4] ss:$24 sps:$4 sm:$0xff]  }
 0x838   :  { %7242 = vmatprep.subr.bf16.mxu0 %v9980_v27  ;;  %8868 = vmatpush3.bf16.msra.mxu1 %v10067_v9  ;;  %v13192_v27 = vld [vmem:[%s13318_s12] sm:$0x3f] }
 0x839   :  { %8869 = vmatprep.subr.bf16.mxu1 %v10068_v58  ;;  %v6079_v9 = vrot.slane %v13192_v27, %v12313_v50  ;;  %v10089_v58 = vld [vmem:[%s13317_s13 + $0x100] sm:$0xff]  }
 0x83b   :  { %7243 = vmatpush1.bf16.msra.mxu0 %v9978_v28  ;;  %v6083_v28 = vrot.slane %v13192_v27, %v12321_v52  ;;  %v10073_v52 = vld [vmem:[%s13317_s13 + $0x80] sm:$0xff]  }
 0x83c   :  { %7244 = vmatprep.subr.bf16.mxu0 %v9983_v29  ;;  %8870 = vmatpush3.bf16.msra.mxu1 %v10069_v60  ;;  %v6091_v29 = vrot.slane %v13192_v27, %v12324_v46  ;;  %v10090_v60 = vld [vmem:[%s13317_s13 + $0x148] sm:$0xff]  }
 0x83d   :  { %8871 = vmatprep.subr.bf16.mxu1 %v10070_v61  ;;  %v10092_v61 = vld [vmem:[%s13317_s13 + $0x150] sm:$0xff]  }
 0x83f   :  { %7245 = vmatpush1.bf16.msra.mxu0 %v9981_v30 }
 0x840   :  { %7246 = vmatprep.subr.bf16.mxu0 %v9986_v32  ;;  %8872 = vmatpush3.bf16.msra.mxu1 %v10071_v14  ;;  %v10093_v14 = vld [vmem:[%s13317_s13 + $0x110] sm:$0xff]  }
 0x841   :  { %8879 = vmatprep.subr.bf16.mxu1 %v10072_v45  ;;  %v10095_v45 = vld [vmem:[%s13317_s13 + $0x118] sm:$0xff]  }
 0x843   :  { %7247 = vmatpush1.bf16.msra.mxu0 %v9984_v15 }
 0x844   :  { %7248 = vmatprep.subr.bf16.mxu0 %v9989_v33 }
 0x847   :  { %7249 = vmatpush1.bf16.msra.mxu0 %v9987_v34 }
 0x848   :  { %7250 = vmatprep.subr.bf16.mxu0 %v9992_v10 }
 0x84b   :  { %7251 = vmatpush1.bf16.msra.mxu0 %v9990_v31 }
 0x84c   :  { %7252 = vmatprep.subr.bf16.mxu0 %v9995_v35 }
 0x84f   :  { %7253 = vmatpush1.bf16.msra.mxu0 %v9993_v36 }
 0x850   :  { %7254 = vmatprep.subr.bf16.mxu0 %v9998_v16 }
 0x853   :  { %7255 = vmatpush1.bf16.msra.mxu0 %v9996_v37 }
 0x854   :  { %7256 = vmatprep.subr.bf16.mxu0 %v10001_v1 }
 0x857   :  { %7257 = vmatpush1.bf16.msra.mxu0 %v9999_v39 }
 0x858   :  { %7258 = vmatprep.subr.bf16.mxu0 %v10004_v3  ;;  %v10074_v3 = vld [vmem:[%s13317_s13 + $0xc8] sm:$0xff]  }
 0x85b   :  { %7259 = vmatpush1.bf16.msra.mxu0 %v10002_v40 }
 0x85c   :  { %7260 = vmatprep.subr.bf16.mxu0 %v10007_v4  ;;  %v10075_v4 = vld [vmem:[%s13317_s13 + $0x88] sm:$0xff]  }
 0x85f   :  { %7261 = vmatpush1.bf16.msra.mxu0 %v10005_v43  ;;  %v10076_v43 = vld [vmem:[%s13317_s13 + $0xd0] sm:$0xff]  }
 0x860   :  { %7271 = vmatprep.subr.bf16.mxu0 %v10010_v41  ;;  %v10077_v41 = vld [vmem:[%s13317_s13 + $0x90] sm:$0xff]  }
 0x862   :  { %7263 = vmatmul.mubr.bf16.vlgmr.msra.gmra.mrb[120].mxu0 %v12745_v13  ;;  %v10019_v13 = vld [vmem:[%s13314_s11 + $0x3a4] ss:$24 sps:$4 sm:$0xff]  }
 0x863   :  { %7272 = vmatpush1.bf16.msra.mxu0 %v10008_v0  ;;  %7303 = vmatprep.mubr.bf16.mxu0 %v12755_v49  ;;  %v10017_v49 = vld [vmem:[%s13314_s11 + $0x3a0] ss:$24 sps:$4 sm:$0xff]  }
 0x864   :  { %7273 = vmatprep.subr.bf16.mxu0 %v10013_v11  ;;  %v10078_v0 = vld [vmem:[%s13317_s13 + $0xd8] sm:$0xff]  }
 0x865   :  { %v10079_v11 = vld [vmem:[%s13317_s13 + $0x98] sm:$0xff]  }
 0x867   :  { %7274 = vmatpush1.bf16.msra.mxu0 %v10011_v47  ;;  %v10080_v47 = vld [vmem:[%s13317_s13 + $0xe0] sm:$0xff]  }
 0x868   :  { %7275 = vmatprep.subr.bf16.mxu0 %v10016_v48  ;;  %v10081_v48 = vld [vmem:[%s13317_s13 + $0xa0] sm:$0xff]  }
 0x86b   :  { %7276 = vmatpush1.bf16.msra.mxu0 %v10014_v17  ;;  %v10082_v17 = vld [vmem:[%s13317_s13 + $0xe8] sm:$0xff]  }
 0x86c   :  { %7277 = vmatprep.subr.bf16.mxu0 %v10019_v13  ;;  %v10083_v13 = vld [vmem:[%s13317_s13 + $0xa8] sm:$0xff]  }
 0x86f   :  { %7278 = vmatpush1.bf16.msra.mxu0 %v10017_v49  ;;  %v6087_v49 = vrot.slane %v13192_v27, %v12485_v62  ;;  %v10087_v62 = vld [vmem:[%s13317_s13 + $0xb8] sm:$0xff]  }
 0x870   :  { %7279 = vmatprep.subr.bf16.mxu0 %v10022_v8  ;;  %v10084_v8 = vld [vmem:[%s13317_s13 + $0xf0] sm:$0xff]  }
 0x873   :  { %7280 = vmatpush1.bf16.msra.mxu0 %v10020_v53  ;;  %v10085_v53 = vld [vmem:[%s13317_s13 + $0xb0] sm:$0xff]  }
 0x874   :  { %7281 = vmatprep.subr.bf16.mxu0 %v10025_v54 }
 0x877   :  { %7282 = vmatpush1.bf16.msra.mxu0 %v10023_v56  ;;  %v10086_v56 = vld [vmem:[%s13317_s13 + $0xf8] sm:$0xff]  }
 0x878   :  { %7283 = vmatprep.subr.bf16.mxu0 %v10028_v12 }
 0x87b   :  { %7284 = vmatpush1.bf16.msra.mxu0 %v10026_v57  ;;  %v10088_v57 = vld [vmem:[%s13317_s13 + $0x140] sm:$0xff]  }
 0x87c   :  { %7285 = vmatprep.subr.bf16.mxu0 %v10031_v6 }
 0x87f   :  { %7286 = vmatpush1.bf16.msra.mxu0 %v10029_v42  ;;  %v10091_v42 = vld [vmem:[%s13317_s13 + $0x108] sm:$0xff]  }
 0x880   :  { %7287 = vmatprep.subr.bf16.mxu0 %v10034_v63  ;;  %v10094_v63 = vld [vmem:[%s13317_s13 + $0x158] sm:$0xff]  }
 0x883   :  { %7288 = vmatpush1.bf16.msra.mxu0 %v10032_v5  ;;  %v10096_v5 = vld [vmem:[%s13317_s13 + $0x160] sm:$0xff]  }
 0x884   :  { %7289 = vmatprep.subr.bf16.mxu0 %v10037_v44  ;;  %v10097_v44 = vld [vmem:[%s13317_s13 + $0x120] sm:$0xff]  }
 0x887   :  { %7290 = vmatpush1.bf16.msra.mxu0 %v10035_v7  ;;  %v10098_v7 = vld [vmem:[%s13317_s13 + $0x168] sm:$0xff]  }
 0x888   :  { %7291 = vmatprep.subr.bf16.mxu0 %v10040_v18  ;;  %v10099_v18 = vld [vmem:[%s13317_s13 + $0x128] sm:$0xff]  }
 0x88b   :  { %7292 = vmatpush1.bf16.msra.mxu0 %v10038_v19  ;;  %v10100_v19 = vld [vmem:[%s13317_s13 + $0x170] sm:$0xff]  }
 0x88c   :  { %7293 = vmatprep.subr.bf16.mxu0 %v10043_v20  ;;  %v10101_v20 = vld [vmem:[%s13317_s13 + $0x130] sm:$0xff]  }
 0x88f   :  { %7294 = vmatpush1.bf16.msra.mxu0 %v10041_v51  ;;  %v10102_v51 = vld [vmem:[%s13317_s13 + $0x178] sm:$0xff]  }
 0x890   :  { %7295 = vmatprep.subr.bf16.mxu0 %v10046_v21  ;;  %v10103_v21 = vld [vmem:[%s13317_s13 + $0x138] sm:$0xff]  }
 0x893   :  { %7296 = vmatpush1.bf16.msra.mxu0 %v10044_v22  ;;  %v6094_v22 = vsub.s32 4, %v11555_v2 }
 0x894   :  { %7297 = vmatprep.subr.bf16.mxu0 %v10049_v23  ;;  %v6098_v23 = vsub.s32 5, %v11555_v2 }
 0x897   :  { %7298 = vmatpush1.bf16.msra.mxu0 %v10047_v24  ;;  %v6095_v24 = vrot.slane %v13192_v27, %v6094_v22 }
 0x898   :  { %7299 = vmatprep.subr.bf16.mxu0 %v10052_v38  ;;  %v6099_v38 = vrot.slane %v13192_v27, %v6098_v23  ;;  %v8693_v27 = vld [vmem:[%s13319_s14] ss:$0 sm:$0xff] }
 0x89b   :  { %7300 = vmatpush1.bf16.msra.mxu0 %v10050_v55 }
 0x89c   :  { %7301 = vmatprep.subr.bf16.mxu0 %v10055_v25 }
 0x89f   :  { %7302 = vmatpush1.bf16.msra.mxu0 %v10053_v26 }
 0x8a2   :  { %7304 = vmatmul.mubr.bf16.vlgmr.msra.gmra.mrb[120].mxu0 %v12944_v59 }
 0x8f5   :  { %v7141_v30 = vpop.f32.mrb[116].mxu0  ;;  %v7223_v32 = vpop.f32.mrb[140].mxu1 }
 0x8f6   :  { %v8967_v15 = vadd.f32 %v7141_v30, %v6079_v9  ;;  %v7143_v33 = vpop.f32.mrb[117].mxu0  ;;  %v7225_v34 = vpop.f32.mrb[141].mxu1  ;;  %v8969_v54 = vadd.f32 %v7223_v32, %v6087_v49 }
 0x8f7   :  { %v8968_v59 = vadd.f32 %v7143_v33, %v6083_v28  ;;  %v8970_v10 = vadd.f32 %v7225_v34, %v6091_v29  ;;  %v7145_v31 = vpop.f32.mrb[118].mxu0  ;;  %v7227_v35 = vpop.f32.mrb[142].mxu1 }
 0x8f8   :  { %v7312_v36 = vmax.f32 %v8967_v15, 0.0  ;;  %v7146_v16 = vpop.f32.mrb[119].mxu0  ;;  %v7228_v37 = vpop.f32.mrb[143].mxu1  ;;  %v7314_v12 = vmax.f32 %v8969_v54, 0.0 }
 0x8f9   :  { %v7313_v1 = vmax.f32 %v8968_v59, 0.0  ;;  %v7315_v50 = vmax.f32 %v8970_v10, 0.0 }
 0x8fa   :  { %v7318_v46 = vpack.c.bf16 %v7312_v36, %v7312_v36  ;;  %v7320_v6 = vpack.c.bf16 %v7314_v12, %v7314_v12 }
 0x8fb   :  { %v7319_v39 = vpack.c.bf16 %v7313_v1, %v7313_v1  ;;  %v7321_v40 = vpack.c.bf16 %v7315_v50, %v7315_v50 }
 0x8fd   :  { %7747 = vmatprep.mubr.bf16.mxu1 %v7319_v39 }
 0x8fe   :  { %7748 = vmatmul.mubr.bf16.vlgmr.msra.gmra.mrb[144].mxu1 %v7318_v46 }
 0x8ff   :  { %8880 = vmatpush3.bf16.msra.mxu1 %v10073_v52  ;;  %7787 = vmatprep.mubr.bf16.mxu1 %v7321_v40 }
 0x900   :  { %8881 = vmatprep.subr.bf16.mxu1 %v10074_v3 }
 0x903   :  { %8882 = vmatpush3.bf16.msra.mxu1 %v10075_v4 }
 0x904   :  { %8883 = vmatprep.subr.bf16.mxu1 %v10076_v43 }
 0x907   :  { %8884 = vmatpush3.bf16.msra.mxu1 %v10077_v41 }
 0x908   :  { %8885 = vmatprep.subr.bf16.mxu1 %v10078_v0 }
 0x90b   :  { %8886 = vmatpush3.bf16.msra.mxu1 %v10079_v11 }
 0x90c   :  { %8887 = vmatprep.subr.bf16.mxu1 %v10080_v47 }
 0x90f   :  { %8888 = vmatpush3.bf16.msra.mxu1 %v10081_v48 }
 0x910   :  { %8889 = vmatprep.subr.bf16.mxu1 %v10082_v17 }
 0x913   :  { %8890 = vmatpush3.bf16.msra.mxu1 %v10083_v13 }
 0x914   :  { %8891 = vmatprep.subr.bf16.mxu1 %v10084_v8 }
 0x917   :  { %8892 = vmatpush3.bf16.msra.mxu1 %v10085_v53 }
 0x918   :  { %8893 = vmatprep.subr.bf16.mxu1 %v10086_v56 }
 0x91b   :  { %8894 = vmatpush3.bf16.msra.mxu1 %v10087_v62 }
 0x91c   :  { %8901 = vmatprep.subr.bf16.mxu1 %v10088_v57 }
 0x91e   :  { %7788 = vmatmul.mubr.bf16.vlgmr.msra.gmra.mrb[148].mxu1 %v7320_v6 }
 0x91f   :  { %8902 = vmatpush3.bf16.msra.mxu1 %v10089_v58 }
 0x920   :  { %8903 = vmatprep.subr.bf16.mxu1 %v10090_v60 }
 0x923   :  { %8904 = vmatpush3.bf16.msra.mxu1 %v10091_v42 }
 0x924   :  { %8905 = vmatprep.subr.bf16.mxu1 %v10092_v61 }
 0x927   :  { %8906 = vmatpush3.bf16.msra.mxu1 %v10093_v14 }
 0x928   :  { %8907 = vmatprep.subr.bf16.mxu1 %v10094_v63 }
 0x92b   :  { %8908 = vmatpush3.bf16.msra.mxu1 %v10095_v45 }
 0x92c   :  { %8909 = vmatprep.subr.bf16.mxu1 %v10096_v5 }
 0x92f   :  { %8910 = vmatpush3.bf16.msra.mxu1 %v10097_v44 }
 0x930   :  { %8911 = vmatprep.subr.bf16.mxu1 %v10098_v7 }
 0x933   :  { %8912 = vmatpush3.bf16.msra.mxu1 %v10099_v18 }
 0x934   :  { %8913 = vmatprep.subr.bf16.mxu1 %v10100_v19 }
 0x937   :  { %8914 = vmatpush3.bf16.msra.mxu1 %v10101_v20 }
 0x938   :  { %8915 = vmatprep.subr.bf16.mxu1 %v10102_v51 }
 0x93b   :  { %8916 = vmatpush3.bf16.msra.mxu1 %v10103_v21 }
 0x975   :  { %v7305_v55 = vpop.f32.mrb[120].mxu0 }
 0x976   :  { %v8971_v25 = vadd.f32 %v7305_v55, %v6095_v24  ;;  %v7307_v26 = vpop.f32.mrb[121].mxu0 }
 0x977   :  { %v8972_v9 = vadd.f32 %v7307_v26, %v6099_v38  ;;  %v7309_v28 = vpop.f32.mrb[122].mxu0 }
 0x978   :  { %v7316_v29 = vmax.f32 %v8971_v25, 0.0  ;;  %v7310_v30 = vpop.f32.mrb[123].mxu0 }
 0x979   :  { %v7317_v32 = vmax.f32 %v8972_v9, 0.0 }
 0x97a   :  { %v7322_v33 = vpack.c.bf16 %v7316_v29, %v7316_v29 }
 0x97b   :  { %v7323_v15 = vpack.c.bf16 %v7317_v32, %v7317_v32 }
 0x97d   :  { %7827 = vmatprep.mubr.bf16.mxu1 %v7323_v15 }
 0x97e   :  { %7828 = vmatmul.mubr.bf16.vlgmr.msra.gmra.mrb[152].mxu1 %v7322_v33 }
 0x9d1   :  { %v8873_v34 = vpop.f32.mrb[144].mxu1 }
 0x9d2   :  { %v8874_v59 = vpop.f32.mrb[145].mxu1 }
 0x9d3   :  { %v8875_v10 = vadd.f32 %v8874_v59, %v8873_v34  ;;  %v8876_v2 = vpop.f32.mrb[146].mxu1 }
 0x9d4   :  { %v8877_v31 = vpop.f32.mrb[147].mxu1 }
 0x9d5   :  { %v7750_v16 = vadd.f32 %v8875_v10, %v8693_v27 }
 0x9f1   :  { %v8895_v35 = vpop.f32.mrb[148].mxu1 }
 0x9f2   :  { %v8896_v36 = vpop.f32.mrb[149].mxu1 }
 0x9f3   :  { %v8897_v37 = vadd.f32 %v8896_v36, %v8895_v35  ;;  %v8898_v1 = vpop.f32.mrb[150].mxu1 }
 0x9f4   :  { %v8899_v50 = vpop.f32.mrb[151].mxu1 }
 0x9f5   :  { %v7790_v39 = vadd.f32 %v8897_v37, %v7750_v16 }
 0xa51   :  { %v8917_v52 = vpop.f32.mrb[152].mxu1 }
 0xa52   :  { %v8918_v46 = vpop.f32.mrb[153].mxu1 }
 0xa53   :  { %v8919_v3 = vadd.f32 %v8918_v46, %v8917_v52  ;;  %v8920_v40 = vpop.f32.mrb[154].mxu1 }
 0xa54   :  { %v8921_v4 = vpop.f32.mrb[155].mxu1 }
 0xa55   :  { %v7830_v43 = vadd.f32 %v8919_v3, %v7790_v39 }
 0xa57   :  { %7836 = vst.msk [vmem:[%s13320_s15] sm:$0x3] %vm7835_vm0, %v7830_v43 }

</bundles_post_ra>
